<compile_context>
chip_gen: v5e
topology: v5e:2x2
jax: 0.10.0
libtpu: 0.0.40
codegen_flags: <defaults>
</compile_context>

<pallas_src>
import jax
import jax.numpy as jnp
import numpy as np
from jax.experimental import pallas as pl
from jax.experimental.pallas import tpu as pltpu


# ----------------------------------------------------------------------------
# Fused kernel
# ----------------------------------------------------------------------------
def _make_fused_lstm_kernel(num_layers, B, T, H):
    """Builds a kernel: refs = [x2d, (w_ih, w_hh, b) * L, lin_w, lin_b, out,
    (hseq scratch if L > 1)]."""

    def kernel(*refs):
        x_ref = refs[0]
        layer_refs = refs[1:1 + 3 * num_layers]
        lin_w_ref = refs[1 + 3 * num_layers]
        lin_b_ref = refs[2 + 3 * num_layers]
        out_ref = refs[3 + 3 * num_layers]
        hseq_scr = refs[4 + 3 * num_layers] if num_layers > 1 else None

        # Layer-0 input: (B*T, I) slab, row index = b*T + t (row-major view).
        z2d = x_ref[...].astype(jnp.bfloat16)

        h = None
        for layer in range(num_layers):
            w_ih = layer_refs[3 * layer][...]        # (in, 4H) bf16
            w_hh = layer_refs[3 * layer + 1][...]    # (H, 4H) bf16
            bias = layer_refs[3 * layer + 2][...]    # (1, 4H) f32

            # Hoisted input projection: one big MXU matmul per layer.
            gx = jnp.dot(z2d, w_ih,
                         preferred_element_type=jnp.float32) + bias  # (B*T, 4H)
            gx = gx.reshape(B, T, 4 * H)             # [b, t, gate]

            h = jnp.zeros((B, H), jnp.float32)
            c = jnp.zeros((B, H), jnp.float32)
            for t in range(T):                       # static unroll (T small)
                gates = gx[:, t, :] + jnp.dot(
                    h.astype(jnp.bfloat16), w_hh,
                    preferred_element_type=jnp.float32)              # (B, 4H)
                i_g = jax.nn.sigmoid(gates[:, 0 * H:1 * H])
                f_g = jax.nn.sigmoid(gates[:, 1 * H:2 * H])
                g_g = jnp.tanh(gates[:, 2 * H:3 * H])
                o_g = jax.nn.sigmoid(gates[:, 3 * H:4 * H])
                c = f_g * c + i_g * g_g
                h = o_g * jnp.tanh(c)
                if layer < num_layers - 1:
                    hseq_scr[:, t, :] = h            # stash for next layer
            if layer < num_layers - 1:
                # Next layer's input: full hidden sequence, flattened to
                # (B*T, H) so its input projection is one matmul again.
                z2d = hseq_scr[...].astype(jnp.bfloat16).reshape(B * T, H)
                # TODO(synk): inter-layer dropout (training-only) skipped.

        # Fused Linear(H, 2) on the last timestep's hidden state.
        out_ref[...] = (
            jnp.dot(h, lin_w_ref[...], preferred_element_type=jnp.float32)
            + lin_b_ref[...])

    return kernel


# ----------------------------------------------------------------------------
# Wrapper
# ----------------------------------------------------------------------------
@jax.jit
def lstm_block_forward(x, params):
    """x: (B, T, input_size) batch_first, like the PyTorch module."""
    B, T, I = x.shape
    layers = params["lstm_layers"]
    num_layers = len(layers)
    H = layers[0]["w_hh"].shape[0]

    args = [x.reshape(B * T, I)]  # free contiguous view, no transpose
    for lyr in layers:
        args += [lyr["w_ih"].astype(jnp.bfloat16),   # bf16 MXU operands
                 lyr["w_hh"].astype(jnp.bfloat16),
                 lyr["b"]]
    args += [params["lin_w"], params["lin_b"]]

    scratch = ([pltpu.VMEM((B, T, H), jnp.float32)]
               if num_layers > 1 else [])

    return pl.pallas_call(
        _make_fused_lstm_kernel(num_layers, B, T, H),
        out_shape=jax.ShapeDtypeStruct((B, 2), jnp.float32),
        scratch_shapes=scratch,
    )(*args)


# ----------------------------------------------------------------------------
# Deterministic parameter init (PyTorch-style uniform(-1/sqrt(H), 1/sqrt(H)))
# ----------------------------------------------------------------------------
def init_params(key, input_size, hidden_size, num_layers):
    bound = 1.0 / np.sqrt(hidden_size)
    layers = []
    for layer_idx in range(num_layers):
        in_sz = input_size if layer_idx == 0 else hidden_size
        key, k1, k2, k3, k4 = jax.random.split(key, 5)
        # PyTorch stores (4H, in); we keep the transposed (in, 4H) layout.
        w_ih = jax.random.uniform(k1, (in_sz, 4 * hidden_size), jnp.float32,
                                  -bound, bound)
        w_hh = jax.random.uniform(k2, (hidden_size, 4 * hidden_size),
                                  jnp.float32, -bound, bound)
        b_ih = jax.random.uniform(k3, (4 * hidden_size,), jnp.float32,
                                  -bound, bound)
        b_hh = jax.random.uniform(k4, (4 * hidden_size,), jnp.float32,
                                  -bound, bound)
        layers.append(dict(w_ih=w_ih, w_hh=w_hh,
                           b=(b_ih + b_hh).reshape(1, 4 * hidden_size)))
    key, k5, k6 = jax.random.split(key, 3)
    lin_bound = 1.0 / np.sqrt(hidden_size)
    lin_w = jax.random.uniform(k5, (hidden_size, 2), jnp.float32,
                               -lin_bound, lin_bound)
    lin_b = jax.random.uniform(k6, (1, 2), jnp.float32, -lin_bound, lin_bound)
    return dict(lstm_layers=layers, lin_w=lin_w, lin_b=lin_b)


# ----------------------------------------------------------------------------
# Pure-JAX reference (f32 everywhere) for a sanity check
# ----------------------------------------------------------------------------
def reference_forward(x, params):
    z = x  # (B, T, I)
    for layer in params["lstm_layers"]:
        B, T, _ = z.shape
        H = layer["w_hh"].shape[0]
        h = jnp.zeros((B, H), jnp.float32)
        c = jnp.zeros((B, H), jnp.float32)

        def step(carry, x_t):
            h, c = carry
            gates = x_t @ layer["w_ih"] + h @ layer["w_hh"] + layer["b"]
            i_g = jax.nn.sigmoid(gates[:, 0 * H:1 * H])
            f_g = jax.nn.sigmoid(gates[:, 1 * H:2 * H])
            g_g = jnp.tanh(gates[:, 2 * H:3 * H])
            o_g = jax.nn.sigmoid(gates[:, 3 * H:4 * H])
            c = f_g * c + i_g * g_g
            h = o_g * jnp.tanh(c)
            return (h, c), h

        (_, _), hs = jax.lax.scan(step, (h, c), jnp.transpose(z, (1, 0, 2)))
        z = jnp.transpose(hs, (1, 0, 2))
    return z[:, -1, :] @ params["lin_w"] + params["lin_b"]


# ----------------------------------------------------------------------------
if __name__ == "__main__":
    # cfg.model.lstm_input_size=16, lstm_hidden_size=32, lstm_num_layers=2
    B, T, INPUT, HIDDEN, LAYERS = 2, 8, 16, 32, 2

    root = jax.random.PRNGKey(0)
    kx, kp = jax.random.split(root)
    x = jax.random.normal(kx, (B, T, INPUT), jnp.float32)
    params = init_params(kp, INPUT, HIDDEN, LAYERS)

    out = lstm_block_forward(x, params)
    out = jax.block_until_ready(out)
    assert out.shape == (B, 2), out.shape

    ref = jax.block_until_ready(reference_forward(x, params))
    np.testing.assert_allclose(np.asarray(out), np.asarray(ref),
                               rtol=2e-2, atol=2e-2)

    print("KERNEL_OK")
</pallas_src>

<mosaic_0001>
module attributes {stable_mosaic.version = 11 : i64} {
  func.func @kernel(%arg0: memref<16x16xf32, #tpu.memory_space<vmem>>, %arg1: memref<16x128xbf16, #tpu.memory_space<vmem>>, %arg2: memref<32x128xbf16, #tpu.memory_space<vmem>>, %arg3: memref<1x128xf32, #tpu.memory_space<vmem>>, %arg4: memref<32x128xbf16, #tpu.memory_space<vmem>>, %arg5: memref<32x128xbf16, #tpu.memory_space<vmem>>, %arg6: memref<1x128xf32, #tpu.memory_space<vmem>>, %arg7: memref<32x2xf32, #tpu.memory_space<vmem>>, %arg8: memref<1x2xf32, #tpu.memory_space<vmem>>, %arg9: memref<2x2xf32, #tpu.memory_space<vmem>>, %arg10: memref<2x8x32xf32, #tpu.memory_space<vmem>>) attributes {dimension_semantics = [], scalar_prefetch = 0 : i64, scratch_operands = 1 : i64, tpu.core_type = #tpu.core_type<tc>} {
    %c0 = arith.constant 0 : index
    %c0_0 = arith.constant 0 : index
    %0 = vector.load %arg0[%c0, %c0_0] : memref<16x16xf32, #tpu.memory_space<vmem>>, vector<16x16xf32>
    %1 = arith.truncf %0 : vector<16x16xf32> to vector<16x16xbf16>
    %c0_1 = arith.constant 0 : index
    %c0_2 = arith.constant 0 : index
    %2 = vector.load %arg1[%c0_1, %c0_2] : memref<16x128xbf16, #tpu.memory_space<vmem>>, vector<16x128xbf16>
    %c0_3 = arith.constant 0 : index
    %c0_4 = arith.constant 0 : index
    %3 = vector.load %arg2[%c0_3, %c0_4] : memref<32x128xbf16, #tpu.memory_space<vmem>>, vector<32x128xbf16>
    %c0_5 = arith.constant 0 : index
    %c0_6 = arith.constant 0 : index
    %4 = vector.load %arg3[%c0_5, %c0_6] : memref<1x128xf32, #tpu.memory_space<vmem>>, vector<1x128xf32>
    %cst = arith.constant dense<0.000000e+00> : vector<16x128xf32>
    %5 = tpu.matmul %1, %2, %cst {dimension_numbers = #tpu.dot_dimension_numbers<[1], [0], [0], [1], [0, 0, 1, 1], [], []>} : vector<16x16xbf16>, vector<16x128xbf16>, vector<16x128xf32> -> vector<16x128xf32>
    %6 = vector.broadcast %4 : vector<1x128xf32> to vector<16x128xf32>
    %7 = arith.addf %5, %6 : vector<16x128xf32>
    %8 = vector.shape_cast %7 : vector<16x128xf32> to vector<2x8x128xf32>
    %cst_7 = arith.constant 0.000000e+00 : f32
    %9 = vector.broadcast %cst_7 : f32 to vector<2x32xf32>
    %cst_8 = arith.constant 0.000000e+00 : f32
    %10 = vector.broadcast %cst_8 : f32 to vector<2x32xf32>
    %11 = vector.extract_strided_slice %8 {offsets = [0, 0, 0], sizes = [2, 1, 128], strides = [1, 1, 1]} : vector<2x8x128xf32> to vector<2x1x128xf32>
    %12 = vector.shape_cast %11 : vector<2x1x128xf32> to vector<2x128xf32>
    %13 = arith.truncf %9 : vector<2x32xf32> to vector<2x32xbf16>
    %cst_9 = arith.constant dense<0.000000e+00> : vector<2x128xf32>
    %14 = tpu.matmul %13, %3, %cst_9 {dimension_numbers = #tpu.dot_dimension_numbers<[1], [0], [0], [1], [0, 0, 1, 1], [], []>} : vector<2x32xbf16>, vector<32x128xbf16>, vector<2x128xf32> -> vector<2x128xf32>
    %15 = arith.addf %12, %14 : vector<2x128xf32>
    %16 = vector.extract_strided_slice %15 {offsets = [0, 0], sizes = [2, 32], strides = [1, 1]} : vector<2x128xf32> to vector<2x32xf32>
    %17 = arith.negf %16 : vector<2x32xf32>
    %18 = math.exp %17 : vector<2x32xf32>
    %cst_10 = arith.constant 1.000000e+00 : f32
    %19 = vector.broadcast %cst_10 : f32 to vector<2x32xf32>
    %20 = arith.addf %19, %18 : vector<2x32xf32>
    %21 = arith.divf %19, %20 : vector<2x32xf32>
    %22 = vector.extract_strided_slice %15 {offsets = [0, 32], sizes = [2, 32], strides = [1, 1]} : vector<2x128xf32> to vector<2x32xf32>
    %23 = arith.negf %22 : vector<2x32xf32>
    %24 = math.exp %23 : vector<2x32xf32>
    %cst_11 = arith.constant 1.000000e+00 : f32
    %25 = vector.broadcast %cst_11 : f32 to vector<2x32xf32>
    %26 = arith.addf %25, %24 : vector<2x32xf32>
    %27 = arith.divf %25, %26 : vector<2x32xf32>
    %28 = vector.extract_strided_slice %15 {offsets = [0, 64], sizes = [2, 32], strides = [1, 1]} : vector<2x128xf32> to vector<2x32xf32>
    %29 = math.tanh %28 : vector<2x32xf32>
    %30 = vector.extract_strided_slice %15 {offsets = [0, 96], sizes = [2, 32], strides = [1, 1]} : vector<2x128xf32> to vector<2x32xf32>
    %31 = arith.negf %30 : vector<2x32xf32>
    %32 = math.exp %31 : vector<2x32xf32>
    %cst_12 = arith.constant 1.000000e+00 : f32
    %33 = vector.broadcast %cst_12 : f32 to vector<2x32xf32>
    %34 = arith.addf %33, %32 : vector<2x32xf32>
    %35 = arith.divf %33, %34 : vector<2x32xf32>
    %36 = arith.mulf %27, %10 : vector<2x32xf32>
    %37 = arith.mulf %21, %29 : vector<2x32xf32>
    %38 = arith.addf %36, %37 : vector<2x32xf32>
    %39 = math.tanh %38 : vector<2x32xf32>
    %40 = arith.mulf %35, %39 : vector<2x32xf32>
    %c0_13 = arith.constant 0 : index
    %c0_14 = arith.constant 0 : index
    %c0_15 = arith.constant 0 : index
    %41 = vector.load %arg10[%c0_13, %c0_14, %c0_15] : memref<2x8x32xf32, #tpu.memory_space<vmem>>, vector<2x1x32xf32>
    %42 = vector.shape_cast %41 : vector<2x1x32xf32> to vector<2x32xf32>
    %43 = vector.shape_cast %40 : vector<2x32xf32> to vector<2x1x32xf32>
    tpu.vector_store %arg10[%c0_13, %c0_14, %c0_15], %43 {strides = array<i32>} : memref<2x8x32xf32, #tpu.memory_space<vmem>>, vector<2x1x32xf32>,
    %44 = vector.extract_strided_slice %8 {offsets = [0, 1, 0], sizes = [2, 1, 128], strides = [1, 1, 1]} : vector<2x8x128xf32> to vector<2x1x128xf32>
    %45 = vector.shape_cast %44 : vector<2x1x128xf32> to vector<2x128xf32>
    %46 = arith.truncf %40 : vector<2x32xf32> to vector<2x32xbf16>
    %cst_16 = arith.constant dense<0.000000e+00> : vector<2x128xf32>
    %47 = tpu.matmul %46, %3, %cst_16 {dimension_numbers = #tpu.dot_dimension_numbers<[1], [0], [0], [1], [0, 0, 1, 1], [], []>} : vector<2x32xbf16>, vector<32x128xbf16>, vector<2x128xf32> -> vector<2x128xf32>
    %48 = arith.addf %45, %47 : vector<2x128xf32>
    %49 = vector.extract_strided_slice %48 {offsets = [0, 0], sizes = [2, 32], strides = [1, 1]} : vector<2x128xf32> to vector<2x32xf32>
    %50 = arith.negf %49 : vector<2x32xf32>
    %51 = math.exp %50 : vector<2x32xf32>
    %cst_17 = arith.constant 1.000000e+00 : f32
    %52 = vector.broadcast %cst_17 : f32 to vector<2x32xf32>
    %53 = arith.addf %52, %51 : vector<2x32xf32>
    %54 = arith.divf %52, %53 : vector<2x32xf32>
    %55 = vector.extract_strided_slice %48 {offsets = [0, 32], sizes = [2, 32], strides = [1, 1]} : vector<2x128xf32> to vector<2x32xf32>
    %56 = arith.negf %55 : vector<2x32xf32>
    %57 = math.exp %56 : vector<2x32xf32>
    %cst_18 = arith.constant 1.000000e+00 : f32
    %58 = vector.broadcast %cst_18 : f32 to vector<2x32xf32>
    %59 = arith.addf %58, %57 : vector<2x32xf32>
    %60 = arith.divf %58, %59 : vector<2x32xf32>
    %61 = vector.extract_strided_slice %48 {offsets = [0, 64], sizes = [2, 32], strides = [1, 1]} : vector<2x128xf32> to vector<2x32xf32>
    %62 = math.tanh %61 : vector<2x32xf32>
    %63 = vector.extract_strided_slice %48 {offsets = [0, 96], sizes = [2, 32], strides = [1, 1]} : vector<2x128xf32> to vector<2x32xf32>
    %64 = arith.negf %63 : vector<2x32xf32>
    %65 = math.exp %64 : vector<2x32xf32>
    %cst_19 = arith.constant 1.000000e+00 : f32
    %66 = vector.broadcast %cst_19 : f32 to vector<2x32xf32>
    %67 = arith.addf %66, %65 : vector<2x32xf32>
    %68 = arith.divf %66, %67 : vector<2x32xf32>
    %69 = arith.mulf %60, %38 : vector<2x32xf32>
    %70 = arith.mulf %54, %62 : vector<2x32xf32>
    %71 = arith.addf %69, %70 : vector<2x32xf32>
    %72 = math.tanh %71 : vector<2x32xf32>
    %73 = arith.mulf %68, %72 : vector<2x32xf32>
    %c0_20 = arith.constant 0 : index
    %c1 = arith.constant 1 : index
    %c0_21 = arith.constant 0 : index
    %74 = vector.load %arg10[%c0_20, %c1, %c0_21] : memref<2x8x32xf32, #tpu.memory_space<vmem>>, vector<2x1x32xf32>
    %75 = vector.shape_cast %74 : vector<2x1x32xf32> to vector<2x32xf32>
    %76 = vector.shape_cast %73 : vector<2x32xf32> to vector<2x1x32xf32>
    tpu.vector_store %arg10[%c0_20, %c1, %c0_21], %76 {strides = array<i32>} : memref<2x8x32xf32, #tpu.memory_space<vmem>>, vector<2x1x32xf32>,
    %77 = vector.extract_strided_slice %8 {offsets = [0, 2, 0], sizes = [2, 1, 128], strides = [1, 1, 1]} : vector<2x8x128xf32> to vector<2x1x128xf32>
    %78 = vector.shape_cast %77 : vector<2x1x128xf32> to vector<2x128xf32>
    %79 = arith.truncf %73 : vector<2x32xf32> to vector<2x32xbf16>
    %cst_22 = arith.constant dense<0.000000e+00> : vector<2x128xf32>
    %80 = tpu.matmul %79, %3, %cst_22 {dimension_numbers = #tpu.dot_dimension_numbers<[1], [0], [0], [1], [0, 0, 1, 1], [], []>} : vector<2x32xbf16>, vector<32x128xbf16>, vector<2x128xf32> -> vector<2x128xf32>
    %81 = arith.addf %78, %80 : vector<2x128xf32>
    %82 = vector.extract_strided_slice %81 {offsets = [0, 0], sizes = [2, 32], strides = [1, 1]} : vector<2x128xf32> to vector<2x32xf32>
    %83 = arith.negf %82 : vector<2x32xf32>
    %84 = math.exp %83 : vector<2x32xf32>
    %cst_23 = arith.constant 1.000000e+00 : f32
    %85 = vector.broadcast %cst_23 : f32 to vector<2x32xf32>
    %86 = arith.addf %85, %84 : vector<2x32xf32>
    %87 = arith.divf %85, %86 : vector<2x32xf32>
    %88 = vector.extract_strided_slice %81 {offsets = [0, 32], sizes = [2, 32], strides = [1, 1]} : vector<2x128xf32> to vector<2x32xf32>
    %89 = arith.negf %88 : vector<2x32xf32>
    %90 = math.exp %89 : vector<2x32xf32>
    %cst_24 = arith.constant 1.000000e+00 : f32
    %91 = vector.broadcast %cst_24 : f32 to vector<2x32xf32>
    %92 = arith.addf %91, %90 : vector<2x32xf32>
    %93 = arith.divf %91, %92 : vector<2x32xf32>
    %94 = vector.extract_strided_slice %81 {offsets = [0, 64], sizes = [2, 32], strides = [1, 1]} : vector<2x128xf32> to vector<2x32xf32>
    %95 = math.tanh %94 : vector<2x32xf32>
    %96 = vector.extract_strided_slice %81 {offsets = [0, 96], sizes = [2, 32], strides = [1, 1]} : vector<2x128xf32> to vector<2x32xf32>
    %97 = arith.negf %96 : vector<2x32xf32>
    %98 = math.exp %97 : vector<2x32xf32>
    %cst_25 = arith.constant 1.000000e+00 : f32
    %99 = vector.broadcast %cst_25 : f32 to vector<2x32xf32>
    %100 = arith.addf %99, %98 : vector<2x32xf32>
    %101 = arith.divf %99, %100 : vector<2x32xf32>
    %102 = arith.mulf %93, %71 : vector<2x32xf32>
    %103 = arith.mulf %87, %95 : vector<2x32xf32>
    %104 = arith.addf %102, %103 : vector<2x32xf32>
    %105 = math.tanh %104 : vector<2x32xf32>
    %106 = arith.mulf %101, %105 : vector<2x32xf32>
    %c0_26 = arith.constant 0 : index
    %c2 = arith.constant 2 : index
    %c0_27 = arith.constant 0 : index
    %107 = vector.load %arg10[%c0_26, %c2, %c0_27] : memref<2x8x32xf32, #tpu.memory_space<vmem>>, vector<2x1x32xf32>
    %108 = vector.shape_cast %107 : vector<2x1x32xf32> to vector<2x32xf32>
    %109 = vector.shape_cast %106 : vector<2x32xf32> to vector<2x1x32xf32>
    tpu.vector_store %arg10[%c0_26, %c2, %c0_27], %109 {strides = array<i32>} : memref<2x8x32xf32, #tpu.memory_space<vmem>>, vector<2x1x32xf32>,
    %110 = vector.extract_strided_slice %8 {offsets = [0, 3, 0], sizes = [2, 1, 128], strides = [1, 1, 1]} : vector<2x8x128xf32> to vector<2x1x128xf32>
    %111 = vector.shape_cast %110 : vector<2x1x128xf32> to vector<2x128xf32>
    %112 = arith.truncf %106 : vector<2x32xf32> to vector<2x32xbf16>
    %cst_28 = arith.constant dense<0.000000e+00> : vector<2x128xf32>
    %113 = tpu.matmul %112, %3, %cst_28 {dimension_numbers = #tpu.dot_dimension_numbers<[1], [0], [0], [1], [0, 0, 1, 1], [], []>} : vector<2x32xbf16>, vector<32x128xbf16>, vector<2x128xf32> -> vector<2x128xf32>
    %114 = arith.addf %111, %113 : vector<2x128xf32>
    %115 = vector.extract_strided_slice %114 {offsets = [0, 0], sizes = [2, 32], strides = [1, 1]} : vector<2x128xf32> to vector<2x32xf32>
    %116 = arith.negf %115 : vector<2x32xf32>
    %117 = math.exp %116 : vector<2x32xf32>
    %cst_29 = arith.constant 1.000000e+00 : f32
    %118 = vector.broadcast %cst_29 : f32 to vector<2x32xf32>
    %119 = arith.addf %118, %117 : vector<2x32xf32>
    %120 = arith.divf %118, %119 : vector<2x32xf32>
    %121 = vector.extract_strided_slice %114 {offsets = [0, 32], sizes = [2, 32], strides = [1, 1]} : vector<2x128xf32> to vector<2x32xf32>
    %122 = arith.negf %121 : vector<2x32xf32>
    %123 = math.exp %122 : vector<2x32xf32>
    %cst_30 = arith.constant 1.000000e+00 : f32
    %124 = vector.broadcast %cst_30 : f32 to vector<2x32xf32>
    %125 = arith.addf %124, %123 : vector<2x32xf32>
    %126 = arith.divf %124, %125 : vector<2x32xf32>
    %127 = vector.extract_strided_slice %114 {offsets = [0, 64], sizes = [2, 32], strides = [1, 1]} : vector<2x128xf32> to vector<2x32xf32>
    %128 = math.tanh %127 : vector<2x32xf32>
    %129 = vector.extract_strided_slice %114 {offsets = [0, 96], sizes = [2, 32], strides = [1, 1]} : vector<2x128xf32> to vector<2x32xf32>
    %130 = arith.negf %129 : vector<2x32xf32>
    %131 = math.exp %130 : vector<2x32xf32>
    %cst_31 = arith.constant 1.000000e+00 : f32
    %132 = vector.broadcast %cst_31 : f32 to vector<2x32xf32>
    %133 = arith.addf %132, %131 : vector<2x32xf32>
    %134 = arith.divf %132, %133 : vector<2x32xf32>
    %135 = arith.mulf %126, %104 : vector<2x32xf32>
    %136 = arith.mulf %120, %128 : vector<2x32xf32>
    %137 = arith.addf %135, %136 : vector<2x32xf32>
    %138 = math.tanh %137 : vector<2x32xf32>
    %139 = arith.mulf %134, %138 : vector<2x32xf32>
    %c0_32 = arith.constant 0 : index
    %c3 = arith.constant 3 : index
    %c0_33 = arith.constant 0 : index
    %140 = vector.load %arg10[%c0_32, %c3, %c0_33] : memref<2x8x32xf32, #tpu.memory_space<vmem>>, vector<2x1x32xf32>
    %141 = vector.shape_cast %140 : vector<2x1x32xf32> to vector<2x32xf32>
    %142 = vector.shape_cast %139 : vector<2x32xf32> to vector<2x1x32xf32>
    tpu.vector_store %arg10[%c0_32, %c3, %c0_33], %142 {strides = array<i32>} : memref<2x8x32xf32, #tpu.memory_space<vmem>>, vector<2x1x32xf32>,
    %143 = vector.extract_strided_slice %8 {offsets = [0, 4, 0], sizes = [2, 1, 128], strides = [1, 1, 1]} : vector<2x8x128xf32> to vector<2x1x128xf32>
    %144 = vector.shape_cast %143 : vector<2x1x128xf32> to vector<2x128xf32>
    %145 = arith.truncf %139 : vector<2x32xf32> to vector<2x32xbf16>
    %cst_34 = arith.constant dense<0.000000e+00> : vector<2x128xf32>
    %146 = tpu.matmul %145, %3, %cst_34 {dimension_numbers = #tpu.dot_dimension_numbers<[1], [0], [0], [1], [0, 0, 1, 1], [], []>} : vector<2x32xbf16>, vector<32x128xbf16>, vector<2x128xf32> -> vector<2x128xf32>
    %147 = arith.addf %144, %146 : vector<2x128xf32>
    %148 = vector.extract_strided_slice %147 {offsets = [0, 0], sizes = [2, 32], strides = [1, 1]} : vector<2x128xf32> to vector<2x32xf32>
    %149 = arith.negf %148 : vector<2x32xf32>
    %150 = math.exp %149 : vector<2x32xf32>
    %cst_35 = arith.constant 1.000000e+00 : f32
    %151 = vector.broadcast %cst_35 : f32 to vector<2x32xf32>
    %152 = arith.addf %151, %150 : vector<2x32xf32>
    %153 = arith.divf %151, %152 : vector<2x32xf32>
    %154 = vector.extract_strided_slice %147 {offsets = [0, 32], sizes = [2, 32], strides = [1, 1]} : vector<2x128xf32> to vector<2x32xf32>
    %155 = arith.negf %154 : vector<2x32xf32>
    %156 = math.exp %155 : vector<2x32xf32>
    %cst_36 = arith.constant 1.000000e+00 : f32
    %157 = vector.broadcast %cst_36 : f32 to vector<2x32xf32>
    %158 = arith.addf %157, %156 : vector<2x32xf32>
    %159 = arith.divf %157, %158 : vector<2x32xf32>
    %160 = vector.extract_strided_slice %147 {offsets = [0, 64], sizes = [2, 32], strides = [1, 1]} : vector<2x128xf32> to vector<2x32xf32>
    %161 = math.tanh %160 : vector<2x32xf32>
    %162 = vector.extract_strided_slice %147 {offsets = [0, 96], sizes = [2, 32], strides = [1, 1]} : vector<2x128xf32> to vector<2x32xf32>
    %163 = arith.negf %162 : vector<2x32xf32>
    %164 = math.exp %163 : vector<2x32xf32>
    %cst_37 = arith.constant 1.000000e+00 : f32
    %165 = vector.broadcast %cst_37 : f32 to vector<2x32xf32>
    %166 = arith.addf %165, %164 : vector<2x32xf32>
    %167 = arith.divf %165, %166 : vector<2x32xf32>
    %168 = arith.mulf %159, %137 : vector<2x32xf32>
    %169 = arith.mulf %153, %161 : vector<2x32xf32>
    %170 = arith.addf %168, %169 : vector<2x32xf32>
    %171 = math.tanh %170 : vector<2x32xf32>
    %172 = arith.mulf %167, %171 : vector<2x32xf32>
    %c0_38 = arith.constant 0 : index
    %c4 = arith.constant 4 : index
    %c0_39 = arith.constant 0 : index
    %173 = vector.load %arg10[%c0_38, %c4, %c0_39] : memref<2x8x32xf32, #tpu.memory_space<vmem>>, vector<2x1x32xf32>
    %174 = vector.shape_cast %173 : vector<2x1x32xf32> to vector<2x32xf32>
    %175 = vector.shape_cast %172 : vector<2x32xf32> to vector<2x1x32xf32>
    tpu.vector_store %arg10[%c0_38, %c4, %c0_39], %175 {strides = array<i32>} : memref<2x8x32xf32, #tpu.memory_space<vmem>>, vector<2x1x32xf32>,
    %176 = vector.extract_strided_slice %8 {offsets = [0, 5, 0], sizes = [2, 1, 128], strides = [1, 1, 1]} : vector<2x8x128xf32> to vector<2x1x128xf32>
    %177 = vector.shape_cast %176 : vector<2x1x128xf32> to vector<2x128xf32>
    %178 = arith.truncf %172 : vector<2x32xf32> to vector<2x32xbf16>
    %cst_40 = arith.constant dense<0.000000e+00> : vector<2x128xf32>
    %179 = tpu.matmul %178, %3, %cst_40 {dimension_numbers = #tpu.dot_dimension_numbers<[1], [0], [0], [1], [0, 0, 1, 1], [], []>} : vector<2x32xbf16>, vector<32x128xbf16>, vector<2x128xf32> -> vector<2x128xf32>
    %180 = arith.addf %177, %179 : vector<2x128xf32>
    %181 = vector.extract_strided_slice %180 {offsets = [0, 0], sizes = [2, 32], strides = [1, 1]} : vector<2x128xf32> to vector<2x32xf32>
    %182 = arith.negf %181 : vector<2x32xf32>
    %183 = math.exp %182 : vector<2x32xf32>
    %cst_41 = arith.constant 1.000000e+00 : f32
    %184 = vector.broadcast %cst_41 : f32 to vector<2x32xf32>
    %185 = arith.addf %184, %183 : vector<2x32xf32>
    %186 = arith.divf %184, %185 : vector<2x32xf32>
    %187 = vector.extract_strided_slice %180 {offsets = [0, 32], sizes = [2, 32], strides = [1, 1]} : vector<2x128xf32> to vector<2x32xf32>
    %188 = arith.negf %187 : vector<2x32xf32>
    %189 = math.exp %188 : vector<2x32xf32>
    %cst_42 = arith.constant 1.000000e+00 : f32
    %190 = vector.broadcast %cst_42 : f32 to vector<2x32xf32>
    %191 = arith.addf %190, %189 : vector<2x32xf32>
    %192 = arith.divf %190, %191 : vector<2x32xf32>
    %193 = vector.extract_strided_slice %180 {offsets = [0, 64], sizes = [2, 32], strides = [1, 1]} : vector<2x128xf32> to vector<2x32xf32>
    %194 = math.tanh %193 : vector<2x32xf32>
    %195 = vector.extract_strided_slice %180 {offsets = [0, 96], sizes = [2, 32], strides = [1, 1]} : vector<2x128xf32> to vector<2x32xf32>
    %196 = arith.negf %195 : vector<2x32xf32>
    %197 = math.exp %196 : vector<2x32xf32>
    %cst_43 = arith.constant 1.000000e+00 : f32
    %198 = vector.broadcast %cst_43 : f32 to vector<2x32xf32>
    %199 = arith.addf %198, %197 : vector<2x32xf32>
    %200 = arith.divf %198, %199 : vector<2x32xf32>
    %201 = arith.mulf %192, %170 : vector<2x32xf32>
    %202 = arith.mulf %186, %194 : vector<2x32xf32>
    %203 = arith.addf %201, %202 : vector<2x32xf32>
    %204 = math.tanh %203 : vector<2x32xf32>
    %205 = arith.mulf %200, %204 : vector<2x32xf32>
    %c0_44 = arith.constant 0 : index
    %c5 = arith.constant 5 : index
    %c0_45 = arith.constant 0 : index
    %206 = vector.load %arg10[%c0_44, %c5, %c0_45] : memref<2x8x32xf32, #tpu.memory_space<vmem>>, vector<2x1x32xf32>
    %207 = vector.shape_cast %206 : vector<2x1x32xf32> to vector<2x32xf32>
    %208 = vector.shape_cast %205 : vector<2x32xf32> to vector<2x1x32xf32>
    tpu.vector_store %arg10[%c0_44, %c5, %c0_45], %208 {strides = array<i32>} : memref<2x8x32xf32, #tpu.memory_space<vmem>>, vector<2x1x32xf32>,
    %209 = vector.extract_strided_slice %8 {offsets = [0, 6, 0], sizes = [2, 1, 128], strides = [1, 1, 1]} : vector<2x8x128xf32> to vector<2x1x128xf32>
    %210 = vector.shape_cast %209 : vector<2x1x128xf32> to vector<2x128xf32>
    %211 = arith.truncf %205 : vector<2x32xf32> to vector<2x32xbf16>
    %cst_46 = arith.constant dense<0.000000e+00> : vector<2x128xf32>
    %212 = tpu.matmul %211, %3, %cst_46 {dimension_numbers = #tpu.dot_dimension_numbers<[1], [0], [0], [1], [0, 0, 1, 1], [], []>} : vector<2x32xbf16>, vector<32x128xbf16>, vector<2x128xf32> -> vector<2x128xf32>
    %213 = arith.addf %210, %212 : vector<2x128xf32>
    %214 = vector.extract_strided_slice %213 {offsets = [0, 0], sizes = [2, 32], strides = [1, 1]} : vector<2x128xf32> to vector<2x32xf32>
    %215 = arith.negf %214 : vector<2x32xf32>
    %216 = math.exp %215 : vector<2x32xf32>
    %cst_47 = arith.constant 1.000000e+00 : f32
    %217 = vector.broadcast %cst_47 : f32 to vector<2x32xf32>
    %218 = arith.addf %217, %216 : vector<2x32xf32>
    %219 = arith.divf %217, %218 : vector<2x32xf32>
    %220 = vector.extract_strided_slice %213 {offsets = [0, 32], sizes = [2, 32], strides = [1, 1]} : vector<2x128xf32> to vector<2x32xf32>
    %221 = arith.negf %220 : vector<2x32xf32>
    %222 = math.exp %221 : vector<2x32xf32>
    %cst_48 = arith.constant 1.000000e+00 : f32
    %223 = vector.broadcast %cst_48 : f32 to vector<2x32xf32>
    %224 = arith.addf %223, %222 : vector<2x32xf32>
    %225 = arith.divf %223, %224 : vector<2x32xf32>
    %226 = vector.extract_strided_slice %213 {offsets = [0, 64], sizes = [2, 32], strides = [1, 1]} : vector<2x128xf32> to vector<2x32xf32>
    %227 = math.tanh %226 : vector<2x32xf32>
    %228 = vector.extract_strided_slice %213 {offsets = [0, 96], sizes = [2, 32], strides = [1, 1]} : vector<2x128xf32> to vector<2x32xf32>
    %229 = arith.negf %228 : vector<2x32xf32>
    %230 = math.exp %229 : vector<2x32xf32>
    %cst_49 = arith.constant 1.000000e+00 : f32
    %231 = vector.broadcast %cst_49 : f32 to vector<2x32xf32>
    %232 = arith.addf %231, %230 : vector<2x32xf32>
    %233 = arith.divf %231, %232 : vector<2x32xf32>
    %234 = arith.mulf %225, %203 : vector<2x32xf32>
    %235 = arith.mulf %219, %227 : vector<2x32xf32>
    %236 = arith.addf %234, %235 : vector<2x32xf32>
    %237 = math.tanh %236 : vector<2x32xf32>
    %238 = arith.mulf %233, %237 : vector<2x32xf32>
    %c0_50 = arith.constant 0 : index
    %c6 = arith.constant 6 : index
    %c0_51 = arith.constant 0 : index
    %239 = vector.load %arg10[%c0_50, %c6, %c0_51] : memref<2x8x32xf32, #tpu.memory_space<vmem>>, vector<2x1x32xf32>
    %240 = vector.shape_cast %239 : vector<2x1x32xf32> to vector<2x32xf32>
    %241 = vector.shape_cast %238 : vector<2x32xf32> to vector<2x1x32xf32>
    tpu.vector_store %arg10[%c0_50, %c6, %c0_51], %241 {strides = array<i32>} : memref<2x8x32xf32, #tpu.memory_space<vmem>>, vector<2x1x32xf32>,
    %242 = vector.extract_strided_slice %8 {offsets = [0, 7, 0], sizes = [2, 1, 128], strides = [1, 1, 1]} : vector<2x8x128xf32> to vector<2x1x128xf32>
    %243 = vector.shape_cast %242 : vector<2x1x128xf32> to vector<2x128xf32>
    %244 = arith.truncf %238 : vector<2x32xf32> to vector<2x32xbf16>
    %cst_52 = arith.constant dense<0.000000e+00> : vector<2x128xf32>
    %245 = tpu.matmul %244, %3, %cst_52 {dimension_numbers = #tpu.dot_dimension_numbers<[1], [0], [0], [1], [0, 0, 1, 1], [], []>} : vector<2x32xbf16>, vector<32x128xbf16>, vector<2x128xf32> -> vector<2x128xf32>
    %246 = arith.addf %243, %245 : vector<2x128xf32>
    %247 = vector.extract_strided_slice %246 {offsets = [0, 0], sizes = [2, 32], strides = [1, 1]} : vector<2x128xf32> to vector<2x32xf32>
    %248 = arith.negf %247 : vector<2x32xf32>
    %249 = math.exp %248 : vector<2x32xf32>
    %cst_53 = arith.constant 1.000000e+00 : f32
    %250 = vector.broadcast %cst_53 : f32 to vector<2x32xf32>
    %251 = arith.addf %250, %249 : vector<2x32xf32>
    %252 = arith.divf %250, %251 : vector<2x32xf32>
    %253 = vector.extract_strided_slice %246 {offsets = [0, 32], sizes = [2, 32], strides = [1, 1]} : vector<2x128xf32> to vector<2x32xf32>
    %254 = arith.negf %253 : vector<2x32xf32>
    %255 = math.exp %254 : vector<2x32xf32>
    %cst_54 = arith.constant 1.000000e+00 : f32
    %256 = vector.broadcast %cst_54 : f32 to vector<2x32xf32>
    %257 = arith.addf %256, %255 : vector<2x32xf32>
    %258 = arith.divf %256, %257 : vector<2x32xf32>
    %259 = vector.extract_strided_slice %246 {offsets = [0, 64], sizes = [2, 32], strides = [1, 1]} : vector<2x128xf32> to vector<2x32xf32>
    %260 = math.tanh %259 : vector<2x32xf32>
    %261 = vector.extract_strided_slice %246 {offsets = [0, 96], sizes = [2, 32], strides = [1, 1]} : vector<2x128xf32> to vector<2x32xf32>
    %262 = arith.negf %261 : vector<2x32xf32>
    %263 = math.exp %262 : vector<2x32xf32>
    %cst_55 = arith.constant 1.000000e+00 : f32
    %264 = vector.broadcast %cst_55 : f32 to vector<2x32xf32>
    %265 = arith.addf %264, %263 : vector<2x32xf32>
    %266 = arith.divf %264, %265 : vector<2x32xf32>
    %267 = arith.mulf %258, %236 : vector<2x32xf32>
    %268 = arith.mulf %252, %260 : vector<2x32xf32>
    %269 = arith.addf %267, %268 : vector<2x32xf32>
    %270 = math.tanh %269 : vector<2x32xf32>
    %271 = arith.mulf %266, %270 : vector<2x32xf32>
    %c0_56 = arith.constant 0 : index
    %c7 = arith.constant 7 : index
    %c0_57 = arith.constant 0 : index
    %272 = vector.load %arg10[%c0_56, %c7, %c0_57] : memref<2x8x32xf32, #tpu.memory_space<vmem>>, vector<2x1x32xf32>
    %273 = vector.shape_cast %272 : vector<2x1x32xf32> to vector<2x32xf32>
    %274 = vector.shape_cast %271 : vector<2x32xf32> to vector<2x1x32xf32>
    tpu.vector_store %arg10[%c0_56, %c7, %c0_57], %274 {strides = array<i32>} : memref<2x8x32xf32, #tpu.memory_space<vmem>>, vector<2x1x32xf32>,
    %c0_58 = arith.constant 0 : index
    %c0_59 = arith.constant 0 : index
    %c0_60 = arith.constant 0 : index
    %275 = vector.load %arg10[%c0_58, %c0_59, %c0_60] : memref<2x8x32xf32, #tpu.memory_space<vmem>>, vector<2x8x32xf32>
    %276 = arith.truncf %275 : vector<2x8x32xf32> to vector<2x8x32xbf16>
    %277 = vector.shape_cast %276 : vector<2x8x32xbf16> to vector<16x32xbf16>
    %c0_61 = arith.constant 0 : index
    %c0_62 = arith.constant 0 : index
    %278 = vector.load %arg4[%c0_61, %c0_62] : memref<32x128xbf16, #tpu.memory_space<vmem>>, vector<32x128xbf16>
    %c0_63 = arith.constant 0 : index
    %c0_64 = arith.constant 0 : index
    %279 = vector.load %arg5[%c0_63, %c0_64] : memref<32x128xbf16, #tpu.memory_space<vmem>>, vector<32x128xbf16>
    %c0_65 = arith.constant 0 : index
    %c0_66 = arith.constant 0 : index
    %280 = vector.load %arg6[%c0_65, %c0_66] : memref<1x128xf32, #tpu.memory_space<vmem>>, vector<1x128xf32>
    %cst_67 = arith.constant dense<0.000000e+00> : vector<16x128xf32>
    %281 = tpu.matmul %277, %278, %cst_67 {dimension_numbers = #tpu.dot_dimension_numbers<[1], [0], [0], [1], [0, 0, 1, 1], [], []>} : vector<16x32xbf16>, vector<32x128xbf16>, vector<16x128xf32> -> vector<16x128xf32>
    %282 = vector.broadcast %280 : vector<1x128xf32> to vector<16x128xf32>
    %283 = arith.addf %281, %282 : vector<16x128xf32>
    %284 = vector.shape_cast %283 : vector<16x128xf32> to vector<2x8x128xf32>
    %cst_68 = arith.constant 0.000000e+00 : f32
    %285 = vector.broadcast %cst_68 : f32 to vector<2x32xf32>
    %cst_69 = arith.constant 0.000000e+00 : f32
    %286 = vector.broadcast %cst_69 : f32 to vector<2x32xf32>
    %287 = vector.extract_strided_slice %284 {offsets = [0, 0, 0], sizes = [2, 1, 128], strides = [1, 1, 1]} : vector<2x8x128xf32> to vector<2x1x128xf32>
    %288 = vector.shape_cast %287 : vector<2x1x128xf32> to vector<2x128xf32>
    %289 = arith.truncf %285 : vector<2x32xf32> to vector<2x32xbf16>
    %cst_70 = arith.constant dense<0.000000e+00> : vector<2x128xf32>
    %290 = tpu.matmul %289, %279, %cst_70 {dimension_numbers = #tpu.dot_dimension_numbers<[1], [0], [0], [1], [0, 0, 1, 1], [], []>} : vector<2x32xbf16>, vector<32x128xbf16>, vector<2x128xf32> -> vector<2x128xf32>
    %291 = arith.addf %288, %290 : vector<2x128xf32>
    %292 = vector.extract_strided_slice %291 {offsets = [0, 0], sizes = [2, 32], strides = [1, 1]} : vector<2x128xf32> to vector<2x32xf32>
    %293 = arith.negf %292 : vector<2x32xf32>
    %294 = math.exp %293 : vector<2x32xf32>
    %cst_71 = arith.constant 1.000000e+00 : f32
    %295 = vector.broadcast %cst_71 : f32 to vector<2x32xf32>
    %296 = arith.addf %295, %294 : vector<2x32xf32>
    %297 = arith.divf %295, %296 : vector<2x32xf32>
    %298 = vector.extract_strided_slice %291 {offsets = [0, 32], sizes = [2, 32], strides = [1, 1]} : vector<2x128xf32> to vector<2x32xf32>
    %299 = arith.negf %298 : vector<2x32xf32>
    %300 = math.exp %299 : vector<2x32xf32>
    %cst_72 = arith.constant 1.000000e+00 : f32
    %301 = vector.broadcast %cst_72 : f32 to vector<2x32xf32>
    %302 = arith.addf %301, %300 : vector<2x32xf32>
    %303 = arith.divf %301, %302 : vector<2x32xf32>
    %304 = vector.extract_strided_slice %291 {offsets = [0, 64], sizes = [2, 32], strides = [1, 1]} : vector<2x128xf32> to vector<2x32xf32>
    %305 = math.tanh %304 : vector<2x32xf32>
    %306 = vector.extract_strided_slice %291 {offsets = [0, 96], sizes = [2, 32], strides = [1, 1]} : vector<2x128xf32> to vector<2x32xf32>
    %307 = arith.negf %306 : vector<2x32xf32>
    %308 = math.exp %307 : vector<2x32xf32>
    %cst_73 = arith.constant 1.000000e+00 : f32
    %309 = vector.broadcast %cst_73 : f32 to vector<2x32xf32>
    %310 = arith.addf %309, %308 : vector<2x32xf32>
    %311 = arith.divf %309, %310 : vector<2x32xf32>
    %312 = arith.mulf %303, %286 : vector<2x32xf32>
    %313 = arith.mulf %297, %305 : vector<2x32xf32>
    %314 = arith.addf %312, %313 : vector<2x32xf32>
    %315 = math.tanh %314 : vector<2x32xf32>
    %316 = arith.mulf %311, %315 : vector<2x32xf32>
    %317 = vector.extract_strided_slice %284 {offsets = [0, 1, 0], sizes = [2, 1, 128], strides = [1, 1, 1]} : vector<2x8x128xf32> to vector<2x1x128xf32>
    %318 = vector.shape_cast %317 : vector<2x1x128xf32> to vector<2x128xf32>
    %319 = arith.truncf %316 : vector<2x32xf32> to vector<2x32xbf16>
    %cst_74 = arith.constant dense<0.000000e+00> : vector<2x128xf32>
    %320 = tpu.matmul %319, %279, %cst_74 {dimension_numbers = #tpu.dot_dimension_numbers<[1], [0], [0], [1], [0, 0, 1, 1], [], []>} : vector<2x32xbf16>, vector<32x128xbf16>, vector<2x128xf32> -> vector<2x128xf32>
    %321 = arith.addf %318, %320 : vector<2x128xf32>
    %322 = vector.extract_strided_slice %321 {offsets = [0, 0], sizes = [2, 32], strides = [1, 1]} : vector<2x128xf32> to vector<2x32xf32>
    %323 = arith.negf %322 : vector<2x32xf32>
    %324 = math.exp %323 : vector<2x32xf32>
    %cst_75 = arith.constant 1.000000e+00 : f32
    %325 = vector.broadcast %cst_75 : f32 to vector<2x32xf32>
    %326 = arith.addf %325, %324 : vector<2x32xf32>
    %327 = arith.divf %325, %326 : vector<2x32xf32>
    %328 = vector.extract_strided_slice %321 {offsets = [0, 32], sizes = [2, 32], strides = [1, 1]} : vector<2x128xf32> to vector<2x32xf32>
    %329 = arith.negf %328 : vector<2x32xf32>
    %330 = math.exp %329 : vector<2x32xf32>
    %cst_76 = arith.constant 1.000000e+00 : f32
    %331 = vector.broadcast %cst_76 : f32 to vector<2x32xf32>
    %332 = arith.addf %331, %330 : vector<2x32xf32>
    %333 = arith.divf %331, %332 : vector<2x32xf32>
    %334 = vector.extract_strided_slice %321 {offsets = [0, 64], sizes = [2, 32], strides = [1, 1]} : vector<2x128xf32> to vector<2x32xf32>
    %335 = math.tanh %334 : vector<2x32xf32>
    %336 = vector.extract_strided_slice %321 {offsets = [0, 96], sizes = [2, 32], strides = [1, 1]} : vector<2x128xf32> to vector<2x32xf32>
    %337 = arith.negf %336 : vector<2x32xf32>
    %338 = math.exp %337 : vector<2x32xf32>
    %cst_77 = arith.constant 1.000000e+00 : f32
    %339 = vector.broadcast %cst_77 : f32 to vector<2x32xf32>
    %340 = arith.addf %339, %338 : vector<2x32xf32>
    %341 = arith.divf %339, %340 : vector<2x32xf32>
    %342 = arith.mulf %333, %314 : vector<2x32xf32>
    %343 = arith.mulf %327, %335 : vector<2x32xf32>
    %344 = arith.addf %342, %343 : vector<2x32xf32>
    %345 = math.tanh %344 : vector<2x32xf32>
    %346 = arith.mulf %341, %345 : vector<2x32xf32>
    %347 = vector.extract_strided_slice %284 {offsets = [0, 2, 0], sizes = [2, 1, 128], strides = [1, 1, 1]} : vector<2x8x128xf32> to vector<2x1x128xf32>
    %348 = vector.shape_cast %347 : vector<2x1x128xf32> to vector<2x128xf32>
    %349 = arith.truncf %346 : vector<2x32xf32> to vector<2x32xbf16>
    %cst_78 = arith.constant dense<0.000000e+00> : vector<2x128xf32>
    %350 = tpu.matmul %349, %279, %cst_78 {dimension_numbers = #tpu.dot_dimension_numbers<[1], [0], [0], [1], [0, 0, 1, 1], [], []>} : vector<2x32xbf16>, vector<32x128xbf16>, vector<2x128xf32> -> vector<2x128xf32>
    %351 = arith.addf %348, %350 : vector<2x128xf32>
    %352 = vector.extract_strided_slice %351 {offsets = [0, 0], sizes = [2, 32], strides = [1, 1]} : vector<2x128xf32> to vector<2x32xf32>
    %353 = arith.negf %352 : vector<2x32xf32>
    %354 = math.exp %353 : vector<2x32xf32>
    %cst_79 = arith.constant 1.000000e+00 : f32
    %355 = vector.broadcast %cst_79 : f32 to vector<2x32xf32>
    %356 = arith.addf %355, %354 : vector<2x32xf32>
    %357 = arith.divf %355, %356 : vector<2x32xf32>
    %358 = vector.extract_strided_slice %351 {offsets = [0, 32], sizes = [2, 32], strides = [1, 1]} : vector<2x128xf32> to vector<2x32xf32>
    %359 = arith.negf %358 : vector<2x32xf32>
    %360 = math.exp %359 : vector<2x32xf32>
    %cst_80 = arith.constant 1.000000e+00 : f32
    %361 = vector.broadcast %cst_80 : f32 to vector<2x32xf32>
    %362 = arith.addf %361, %360 : vector<2x32xf32>
    %363 = arith.divf %361, %362 : vector<2x32xf32>
    %364 = vector.extract_strided_slice %351 {offsets = [0, 64], sizes = [2, 32], strides = [1, 1]} : vector<2x128xf32> to vector<2x32xf32>
    %365 = math.tanh %364 : vector<2x32xf32>
    %366 = vector.extract_strided_slice %351 {offsets = [0, 96], sizes = [2, 32], strides = [1, 1]} : vector<2x128xf32> to vector<2x32xf32>
    %367 = arith.negf %366 : vector<2x32xf32>
    %368 = math.exp %367 : vector<2x32xf32>
    %cst_81 = arith.constant 1.000000e+00 : f32
    %369 = vector.broadcast %cst_81 : f32 to vector<2x32xf32>
    %370 = arith.addf %369, %368 : vector<2x32xf32>
    %371 = arith.divf %369, %370 : vector<2x32xf32>
    %372 = arith.mulf %363, %344 : vector<2x32xf32>
    %373 = arith.mulf %357, %365 : vector<2x32xf32>
    %374 = arith.addf %372, %373 : vector<2x32xf32>
    %375 = math.tanh %374 : vector<2x32xf32>
    %376 = arith.mulf %371, %375 : vector<2x32xf32>
    %377 = vector.extract_strided_slice %284 {offsets = [0, 3, 0], sizes = [2, 1, 128], strides = [1, 1, 1]} : vector<2x8x128xf32> to vector<2x1x128xf32>
    %378 = vector.shape_cast %377 : vector<2x1x128xf32> to vector<2x128xf32>
    %379 = arith.truncf %376 : vector<2x32xf32> to vector<2x32xbf16>
    %cst_82 = arith.constant dense<0.000000e+00> : vector<2x128xf32>
    %380 = tpu.matmul %379, %279, %cst_82 {dimension_numbers = #tpu.dot_dimension_numbers<[1], [0], [0], [1], [0, 0, 1, 1], [], []>} : vector<2x32xbf16>, vector<32x128xbf16>, vector<2x128xf32> -> vector<2x128xf32>
    %381 = arith.addf %378, %380 : vector<2x128xf32>
    %382 = vector.extract_strided_slice %381 {offsets = [0, 0], sizes = [2, 32], strides = [1, 1]} : vector<2x128xf32> to vector<2x32xf32>
    %383 = arith.negf %382 : vector<2x32xf32>
    %384 = math.exp %383 : vector<2x32xf32>
    %cst_83 = arith.constant 1.000000e+00 : f32
    %385 = vector.broadcast %cst_83 : f32 to vector<2x32xf32>
    %386 = arith.addf %385, %384 : vector<2x32xf32>
    %387 = arith.divf %385, %386 : vector<2x32xf32>
    %388 = vector.extract_strided_slice %381 {offsets = [0, 32], sizes = [2, 32], strides = [1, 1]} : vector<2x128xf32> to vector<2x32xf32>
    %389 = arith.negf %388 : vector<2x32xf32>
    %390 = math.exp %389 : vector<2x32xf32>
    %cst_84 = arith.constant 1.000000e+00 : f32
    %391 = vector.broadcast %cst_84 : f32 to vector<2x32xf32>
    %392 = arith.addf %391, %390 : vector<2x32xf32>
    %393 = arith.divf %391, %392 : vector<2x32xf32>
    %394 = vector.extract_strided_slice %381 {offsets = [0, 64], sizes = [2, 32], strides = [1, 1]} : vector<2x128xf32> to vector<2x32xf32>
    %395 = math.tanh %394 : vector<2x32xf32>
    %396 = vector.extract_strided_slice %381 {offsets = [0, 96], sizes = [2, 32], strides = [1, 1]} : vector<2x128xf32> to vector<2x32xf32>
    %397 = arith.negf %396 : vector<2x32xf32>
    %398 = math.exp %397 : vector<2x32xf32>
    %cst_85 = arith.constant 1.000000e+00 : f32
    %399 = vector.broadcast %cst_85 : f32 to vector<2x32xf32>
    %400 = arith.addf %399, %398 : vector<2x32xf32>
    %401 = arith.divf %399, %400 : vector<2x32xf32>
    %402 = arith.mulf %393, %374 : vector<2x32xf32>
    %403 = arith.mulf %387, %395 : vector<2x32xf32>
    %404 = arith.addf %402, %403 : vector<2x32xf32>
    %405 = math.tanh %404 : vector<2x32xf32>
    %406 = arith.mulf %401, %405 : vector<2x32xf32>
    %407 = vector.extract_strided_slice %284 {offsets = [0, 4, 0], sizes = [2, 1, 128], strides = [1, 1, 1]} : vector<2x8x128xf32> to vector<2x1x128xf32>
    %408 = vector.shape_cast %407 : vector<2x1x128xf32> to vector<2x128xf32>
    %409 = arith.truncf %406 : vector<2x32xf32> to vector<2x32xbf16>
    %cst_86 = arith.constant dense<0.000000e+00> : vector<2x128xf32>
    %410 = tpu.matmul %409, %279, %cst_86 {dimension_numbers = #tpu.dot_dimension_numbers<[1], [0], [0], [1], [0, 0, 1, 1], [], []>} : vector<2x32xbf16>, vector<32x128xbf16>, vector<2x128xf32> -> vector<2x128xf32>
    %411 = arith.addf %408, %410 : vector<2x128xf32>
    %412 = vector.extract_strided_slice %411 {offsets = [0, 0], sizes = [2, 32], strides = [1, 1]} : vector<2x128xf32> to vector<2x32xf32>
    %413 = arith.negf %412 : vector<2x32xf32>
    %414 = math.exp %413 : vector<2x32xf32>
    %cst_87 = arith.constant 1.000000e+00 : f32
    %415 = vector.broadcast %cst_87 : f32 to vector<2x32xf32>
    %416 = arith.addf %415, %414 : vector<2x32xf32>
    %417 = arith.divf %415, %416 : vector<2x32xf32>
    %418 = vector.extract_strided_slice %411 {offsets = [0, 32], sizes = [2, 32], strides = [1, 1]} : vector<2x128xf32> to vector<2x32xf32>
    %419 = arith.negf %418 : vector<2x32xf32>
    %420 = math.exp %419 : vector<2x32xf32>
    %cst_88 = arith.constant 1.000000e+00 : f32
    %421 = vector.broadcast %cst_88 : f32 to vector<2x32xf32>
    %422 = arith.addf %421, %420 : vector<2x32xf32>
    %423 = arith.divf %421, %422 : vector<2x32xf32>
    %424 = vector.extract_strided_slice %411 {offsets = [0, 64], sizes = [2, 32], strides = [1, 1]} : vector<2x128xf32> to vector<2x32xf32>
    %425 = math.tanh %424 : vector<2x32xf32>
    %426 = vector.extract_strided_slice %411 {offsets = [0, 96], sizes = [2, 32], strides = [1, 1]} : vector<2x128xf32> to vector<2x32xf32>
    %427 = arith.negf %426 : vector<2x32xf32>
    %428 = math.exp %427 : vector<2x32xf32>
    %cst_89 = arith.constant 1.000000e+00 : f32
    %429 = vector.broadcast %cst_89 : f32 to vector<2x32xf32>
    %430 = arith.addf %429, %428 : vector<2x32xf32>
    %431 = arith.divf %429, %430 : vector<2x32xf32>
    %432 = arith.mulf %423, %404 : vector<2x32xf32>
    %433 = arith.mulf %417, %425 : vector<2x32xf32>
    %434 = arith.addf %432, %433 : vector<2x32xf32>
    %435 = math.tanh %434 : vector<2x32xf32>
    %436 = arith.mulf %431, %435 : vector<2x32xf32>
    %437 = vector.extract_strided_slice %284 {offsets = [0, 5, 0], sizes = [2, 1, 128], strides = [1, 1, 1]} : vector<2x8x128xf32> to vector<2x1x128xf32>
    %438 = vector.shape_cast %437 : vector<2x1x128xf32> to vector<2x128xf32>
    %439 = arith.truncf %436 : vector<2x32xf32> to vector<2x32xbf16>
    %cst_90 = arith.constant dense<0.000000e+00> : vector<2x128xf32>
    %440 = tpu.matmul %439, %279, %cst_90 {dimension_numbers = #tpu.dot_dimension_numbers<[1], [0], [0], [1], [0, 0, 1, 1], [], []>} : vector<2x32xbf16>, vector<32x128xbf16>, vector<2x128xf32> -> vector<2x128xf32>
    %441 = arith.addf %438, %440 : vector<2x128xf32>
    %442 = vector.extract_strided_slice %441 {offsets = [0, 0], sizes = [2, 32], strides = [1, 1]} : vector<2x128xf32> to vector<2x32xf32>
    %443 = arith.negf %442 : vector<2x32xf32>
    %444 = math.exp %443 : vector<2x32xf32>
    %cst_91 = arith.constant 1.000000e+00 : f32
    %445 = vector.broadcast %cst_91 : f32 to vector<2x32xf32>
    %446 = arith.addf %445, %444 : vector<2x32xf32>
    %447 = arith.divf %445, %446 : vector<2x32xf32>
    %448 = vector.extract_strided_slice %441 {offsets = [0, 32], sizes = [2, 32], strides = [1, 1]} : vector<2x128xf32> to vector<2x32xf32>
    %449 = arith.negf %448 : vector<2x32xf32>
    %450 = math.exp %449 : vector<2x32xf32>
    %cst_92 = arith.constant 1.000000e+00 : f32
    %451 = vector.broadcast %cst_92 : f32 to vector<2x32xf32>
    %452 = arith.addf %451, %450 : vector<2x32xf32>
    %453 = arith.divf %451, %452 : vector<2x32xf32>
    %454 = vector.extract_strided_slice %441 {offsets = [0, 64], sizes = [2, 32], strides = [1, 1]} : vector<2x128xf32> to vector<2x32xf32>
    %455 = math.tanh %454 : vector<2x32xf32>
    %456 = vector.extract_strided_slice %441 {offsets = [0, 96], sizes = [2, 32], strides = [1, 1]} : vector<2x128xf32> to vector<2x32xf32>
    %457 = arith.negf %456 : vector<2x32xf32>
    %458 = math.exp %457 : vector<2x32xf32>
    %cst_93 = arith.constant 1.000000e+00 : f32
    %459 = vector.broadcast %cst_93 : f32 to vector<2x32xf32>
    %460 = arith.addf %459, %458 : vector<2x32xf32>
    %461 = arith.divf %459, %460 : vector<2x32xf32>
    %462 = arith.mulf %453, %434 : vector<2x32xf32>
    %463 = arith.mulf %447, %455 : vector<2x32xf32>
    %464 = arith.addf %462, %463 : vector<2x32xf32>
    %465 = math.tanh %464 : vector<2x32xf32>
    %466 = arith.mulf %461, %465 : vector<2x32xf32>
    %467 = vector.extract_strided_slice %284 {offsets = [0, 6, 0], sizes = [2, 1, 128], strides = [1, 1, 1]} : vector<2x8x128xf32> to vector<2x1x128xf32>
    %468 = vector.shape_cast %467 : vector<2x1x128xf32> to vector<2x128xf32>
    %469 = arith.truncf %466 : vector<2x32xf32> to vector<2x32xbf16>
    %cst_94 = arith.constant dense<0.000000e+00> : vector<2x128xf32>
    %470 = tpu.matmul %469, %279, %cst_94 {dimension_numbers = #tpu.dot_dimension_numbers<[1], [0], [0], [1], [0, 0, 1, 1], [], []>} : vector<2x32xbf16>, vector<32x128xbf16>, vector<2x128xf32> -> vector<2x128xf32>
    %471 = arith.addf %468, %470 : vector<2x128xf32>
    %472 = vector.extract_strided_slice %471 {offsets = [0, 0], sizes = [2, 32], strides = [1, 1]} : vector<2x128xf32> to vector<2x32xf32>
    %473 = arith.negf %472 : vector<2x32xf32>
    %474 = math.exp %473 : vector<2x32xf32>
    %cst_95 = arith.constant 1.000000e+00 : f32
    %475 = vector.broadcast %cst_95 : f32 to vector<2x32xf32>
    %476 = arith.addf %475, %474 : vector<2x32xf32>
    %477 = arith.divf %475, %476 : vector<2x32xf32>
    %478 = vector.extract_strided_slice %471 {offsets = [0, 32], sizes = [2, 32], strides = [1, 1]} : vector<2x128xf32> to vector<2x32xf32>
    %479 = arith.negf %478 : vector<2x32xf32>
    %480 = math.exp %479 : vector<2x32xf32>
    %cst_96 = arith.constant 1.000000e+00 : f32
    %481 = vector.broadcast %cst_96 : f32 to vector<2x32xf32>
    %482 = arith.addf %481, %480 : vector<2x32xf32>
    %483 = arith.divf %481, %482 : vector<2x32xf32>
    %484 = vector.extract_strided_slice %471 {offsets = [0, 64], sizes = [2, 32], strides = [1, 1]} : vector<2x128xf32> to vector<2x32xf32>
    %485 = math.tanh %484 : vector<2x32xf32>
    %486 = vector.extract_strided_slice %471 {offsets = [0, 96], sizes = [2, 32], strides = [1, 1]} : vector<2x128xf32> to vector<2x32xf32>
    %487 = arith.negf %486 : vector<2x32xf32>
    %488 = math.exp %487 : vector<2x32xf32>
    %cst_97 = arith.constant 1.000000e+00 : f32
    %489 = vector.broadcast %cst_97 : f32 to vector<2x32xf32>
    %490 = arith.addf %489, %488 : vector<2x32xf32>
    %491 = arith.divf %489, %490 : vector<2x32xf32>
    %492 = arith.mulf %483, %464 : vector<2x32xf32>
    %493 = arith.mulf %477, %485 : vector<2x32xf32>
    %494 = arith.addf %492, %493 : vector<2x32xf32>
    %495 = math.tanh %494 : vector<2x32xf32>
    %496 = arith.mulf %491, %495 : vector<2x32xf32>
    %497 = vector.extract_strided_slice %284 {offsets = [0, 7, 0], sizes = [2, 1, 128], strides = [1, 1, 1]} : vector<2x8x128xf32> to vector<2x1x128xf32>
    %498 = vector.shape_cast %497 : vector<2x1x128xf32> to vector<2x128xf32>
    %499 = arith.truncf %496 : vector<2x32xf32> to vector<2x32xbf16>
    %cst_98 = arith.constant dense<0.000000e+00> : vector<2x128xf32>
    %500 = tpu.matmul %499, %279, %cst_98 {dimension_numbers = #tpu.dot_dimension_numbers<[1], [0], [0], [1], [0, 0, 1, 1], [], []>} : vector<2x32xbf16>, vector<32x128xbf16>, vector<2x128xf32> -> vector<2x128xf32>
    %501 = arith.addf %498, %500 : vector<2x128xf32>
    %502 = vector.extract_strided_slice %501 {offsets = [0, 0], sizes = [2, 32], strides = [1, 1]} : vector<2x128xf32> to vector<2x32xf32>
    %503 = arith.negf %502 : vector<2x32xf32>
    %504 = math.exp %503 : vector<2x32xf32>
    %cst_99 = arith.constant 1.000000e+00 : f32
    %505 = vector.broadcast %cst_99 : f32 to vector<2x32xf32>
    %506 = arith.addf %505, %504 : vector<2x32xf32>
    %507 = arith.divf %505, %506 : vector<2x32xf32>
    %508 = vector.extract_strided_slice %501 {offsets = [0, 32], sizes = [2, 32], strides = [1, 1]} : vector<2x128xf32> to vector<2x32xf32>
    %509 = arith.negf %508 : vector<2x32xf32>
    %510 = math.exp %509 : vector<2x32xf32>
    %cst_100 = arith.constant 1.000000e+00 : f32
    %511 = vector.broadcast %cst_100 : f32 to vector<2x32xf32>
    %512 = arith.addf %511, %510 : vector<2x32xf32>
    %513 = arith.divf %511, %512 : vector<2x32xf32>
    %514 = vector.extract_strided_slice %501 {offsets = [0, 64], sizes = [2, 32], strides = [1, 1]} : vector<2x128xf32> to vector<2x32xf32>
    %515 = math.tanh %514 : vector<2x32xf32>
    %516 = vector.extract_strided_slice %501 {offsets = [0, 96], sizes = [2, 32], strides = [1, 1]} : vector<2x128xf32> to vector<2x32xf32>
    %517 = arith.negf %516 : vector<2x32xf32>
    %518 = math.exp %517 : vector<2x32xf32>
    %cst_101 = arith.constant 1.000000e+00 : f32
    %519 = vector.broadcast %cst_101 : f32 to vector<2x32xf32>
    %520 = arith.addf %519, %518 : vector<2x32xf32>
    %521 = arith.divf %519, %520 : vector<2x32xf32>
    %522 = arith.mulf %513, %494 : vector<2x32xf32>
    %523 = arith.mulf %507, %515 : vector<2x32xf32>
    %524 = arith.addf %522, %523 : vector<2x32xf32>
    %525 = math.tanh %524 : vector<2x32xf32>
    %526 = arith.mulf %521, %525 : vector<2x32xf32>
    %c0_102 = arith.constant 0 : index
    %c0_103 = arith.constant 0 : index
    %527 = vector.load %arg7[%c0_102, %c0_103] : memref<32x2xf32, #tpu.memory_space<vmem>>, vector<32x2xf32>
    %cst_104 = arith.constant dense<0.000000e+00> : vector<2x2xf32>
    %528 = tpu.matmul %526, %527, %cst_104 {dimension_numbers = #tpu.dot_dimension_numbers<[1], [0], [0], [1], [0, 0, 1, 1], [], []>} : vector<2x32xf32>, vector<32x2xf32>, vector<2x2xf32> -> vector<2x2xf32>
    %c0_105 = arith.constant 0 : index
    %c0_106 = arith.constant 0 : index
    %529 = vector.load %arg8[%c0_105, %c0_106] : memref<1x2xf32, #tpu.memory_space<vmem>>, vector<1x2xf32>
    %530 = vector.broadcast %529 : vector<1x2xf32> to vector<2x2xf32>
    %531 = arith.addf %528, %530 : vector<2x2xf32>
    %c0_107 = arith.constant 0 : index
    %c0_108 = arith.constant 0 : index
    %532 = vector.load %arg9[%c0_107, %c0_108] : memref<2x2xf32, #tpu.memory_space<vmem>>, vector<2x2xf32>
    tpu.vector_store %arg9[%c0_107, %c0_108], %531 {strides = array<i32>} : memref<2x2xf32, #tpu.memory_space<vmem>>, vector<2x2xf32>,
    return
  }
}

</mosaic_0001>

<bundles_post_ra>
// kernel: lstm_block_forward.1
= control target key start
LH: loop header
LB: loop body
LE: loop exit
PB: predicated region body
PF: predicated region fallthrough
CT: control target
= control target key end

     0   :  { %vm53_vm0 = vcmask 130048   ;;  %s2958_s0 = inlined_call_operand.vmem [shape: f32[16,16], index: 0, kind: input, shape index: {}]   ;;  %s2959_s1 = inlined_call_operand.vmem [shape: bf16[16,128], index: 1, kind: input, shape index: {}]   ;;  %s2960_s2 = inlined_call_operand.vmem [shape: bf16[32,128], index: 2, kind: input, shape index: {}]   ;;  %s2961_s3 = inlined_call_operand.vmem [shape: f32[1,128], index: 3, kind: input, shape index: {}]   ;;  %s2962_s4 = inlined_call_operand.vmem [shape: bf16[32,128], index: 4, kind: input, shape index: {}]   ;;  %s2963_s5 = inlined_call_operand.vmem [shape: bf16[32,128], index: 5, kind: input, shape index: {}]   ;;  %s2964_s6 = inlined_call_operand.vmem [shape: f32[1,128], index: 6, kind: input, shape index: {}]   ;;  %s2965_s7 = inlined_call_operand.vmem [shape: f32[32,2], index: 7, kind: input, shape index: {}]   ;;  %s2966_s8 = inlined_call_operand.vmem [shape: f32[1,2], index: 8, kind: input, shape index: {}]   ;;  %s2967_s9 = inlined_call_operand.hbm [shape: f32[2,2], index: 9, kind: output, shape index: {}]  }
   0x1   :  { %v2160_v0 = vld [vmem:[%s2959_s1] sm:$0xff]  ;;  %v2162_v1 = vld [vmem:[%s2960_s2 + $0x8] sm:$0xff] }
   0x2   :  { %v34_v2 = vld [vmem:[%s2958_s0] sm:$0xff]  ;;  %v35_v3 = vld [vmem:[%s2958_s0 + $0x8] sm:$0xff]  ;;  %64 = vmatpush.bf16.msra.mxu0 %v2160_v0  ;;  %93 = vmatpush.bf16.msra.mxu1 %v2162_v1 }
   0x3   :  { %v36_v4 = vpack.c.bf16 %v35_v3, %v34_v2  ;;  %v2161_v5 = vld [vmem:[%s2960_s2] sm:$0xff]  ;;  %212 = vmatpush.bf16.msra.mxu2 %v2162_v1  ;;  %336 = vmatpush.bf16.msra.mxu3 %v2162_v1 }
   0x4   :  { %14 = vsyncpa [#allocation4], 0  ;;  %v2456_v6 = vmov 0   ;;  %v2171_v9 = vld [vmem:[%s2961_s3] ss:$0 sm:$0xff]  ;;  %s2457_s2 = smov 64  }
   0x5   :  { %2087 = vmatmul.msk.bf16.vlgmr.msra.gmra.mxu0 %vm53_vm0, %v36_v4  ;;  %s2458_s3 = smov 32   ;;  %vm198_vm9 = vcmask 1041409   ;;  %vm83_vm10 = vcmask 261120   ;;  %s2074_s18 = sshll.u32 %s2967_s9, 4  ;;  %s2075_s18 = int_to_ptr.hbm [resolvable:$true] %s2074_s18 }
   0x6   :  { %462 = vmatpush.bf16.msrb.mxu0 %v2162_v1  ;;  %94 = vmatpush.bf16.msra.mxu1 %v2161_v5 }
   0x7   :  { %213 = vmatpush.bf16.msra.mxu2 %v2161_v5  ;;  %337 = vmatpush.bf16.msra.mxu3 %v2161_v5 }
   0x9   :  { %95 = vmatmul.bf16.vlgmr.msra.gmra.mxu1 %v2456_v6 }
   0xa   :  { %463 = vmatpush.bf16.msrb.mxu0 %v2161_v5  ;;  %588 = vmatpush.bf16.msrb.mxu1 %v2162_v1 }
   0xb   :  { %714 = vmatpush.bf16.msrb.mxu2 %v2162_v1  ;;  %840 = vmatpush.bf16.msrb.mxu3 %v2162_v1 }
   0xe   :  { %966 = vmatpush.bf16.msra.mxu0 %v2162_v1  ;;  %589 = vmatpush.bf16.msrb.mxu1 %v2161_v5 }
   0xf   :  { %715 = vmatpush.bf16.msrb.mxu2 %v2161_v5  ;;  %841 = vmatpush.bf16.msrb.mxu3 %v2161_v5 }
  0x12   :  { %967 = vmatpush.bf16.msra.mxu0 %v2161_v5 }
  0x82   :  { %v66_v7 = vpop.f32.mrf.mxu0 }
  0x83   :  { %v2532_v15 = vadd.f32 %v2171_v9, %v66_v7 }
  0x86   :  { %v96_v8 = vpop.f32.mrf.mxu1 }
  0x87   :  { %v101_v10 = vrot.slane %v96_v8, 1  ;;  %v104_v16 = vadd.f32 %v96_v8, %v2532_v15 }
  0x89   :  { %v2096_v20 = vmul.f32 -1.442695, %v104_v16 }
  0x8a   :  { %v68_v11 = vpop.f32.mrf.mxu0 }
  0x8b   :  { %v2529_v12 = vadd.f32 %v2171_v9, %v68_v11 }
  0x8d   :  { %v105_v13 = vadd.f32 %v101_v10, %v2529_v12 }
  0x8e   :  { %v98_v14 = vpop.f32.mrf.mxu1 }
  0x8f   :  { %2174 = vtanh.f32 %v105_v13  ;;  %v2097_v19 = vmul.f32 -1.442695, %v105_v13 }
  0x90   :  { %2176 = vtanh.f32 %v104_v16 }
  0x91   :  { %2178 = vpow2.f32 %v2097_v19 }
  0x92   :  { %2180 = vpow2.f32 %v2096_v20 }
  0x95   :  { %v2175_v17 = vpop.eup %2174 }
  0x96   :  { %152 = vrot.lane.b32.xlu0 %v2175_v17, %s2457_s2  ;;  %v2177_v18 = vpop.eup %2176 }
  0x97   :  { %v2179_v21 = vpop.eup %2178 }
  0x98   :  { %v113_v22 = vadd.f32 1.0, %v2179_v21  ;;  %v2181_v23 = vpop.eup %2180 }
  0x99   :  { %v112_v24 = vadd.f32 1.0, %v2181_v23 }
  0x9a   :  { %2182 = vrcp.f32 %v113_v22  ;;  %v140_v33 = vand.u32 2147483648, %v113_v22  ;;  %vm134_vm2 = vweird.f32 %v113_v22  ;;  %v138_v34 = vand.u32 2147483647, %v113_v22 }
  0x9b   :  { %2184 = vrcp.f32 %v112_v24  ;;  %v125_v42 = vand.u32 2147483648, %v112_v24  ;;  %vm119_vm6 = vweird.f32 %v112_v24  ;;  %v123_v43 = vand.u32 2147483647, %v112_v24 }
  0x9c   :  { %v141_v37 = vor.u32 1.1754944e-38, %v140_v33  ;;  %vm139_vm4 = vcmp.eq.f32.partialorder %v138_v34, 8.507059e+37 }
  0x9d   :  { %v126_v45 = vor.u32 1.1754944e-38, %v125_v42  ;;  %vm124_vm8 = vcmp.eq.f32.partialorder %v123_v43, 8.507059e+37 }
  0x9e   :  { %150 = vrot.lane.b32.xlu0 %v2177_v18, %s2457_s2 }
  0xa0   :  { %v2183_v25 = vpop.eup %2182 }
  0xa1   :  { %v130_v26 = vmul.f32 %v2183_v25, %v113_v22  ;;  %v2185_v28 = vpop.eup %2184  ;;  %vm135_vm1 = vweird.f32 %v2183_v25 }
  0xa2   :  { %v115_v30 = vmul.f32 %v2185_v28, %v112_v24  ;;  %vm136_vm3 = vmor %vm134_vm2, %vm135_vm1  ;;  %vm120_vm5 = vweird.f32 %v2185_v28 }
  0xa3   :  { %v131_v27 = vsub.f32 1.0, %v130_v26  ;;  %vm121_vm7 = vmor %vm119_vm6, %vm120_vm5 }
  0xa4   :  { %v116_v32 = vsub.f32 1.0, %v115_v30 }
  0xa5   :  { %v132_v29 = vmul.f32 %v2183_v25, %v131_v27 }
  0xa6   :  { %v117_v36 = vmul.f32 %v2185_v28, %v116_v32 }
  0xa7   :  { %v133_v31 = vadd.f32 %v2183_v25, %v132_v29 }
  0xa8   :  { %v118_v41 = vadd.f32 %v2185_v28, %v117_v36 }
  0xa9   :  { %v137_v35 = vsel %vm136_vm3, %v2183_v25, %v133_v31 }
  0xaa   :  { %v142_v39 = vsel %vm139_vm4, %v141_v37, %v137_v35  ;;  %v122_v44 = vsel %vm121_vm7, %v2185_v28, %v118_v41 }
  0xab   :  { %v127_v47 = vsel %vm124_vm8, %v126_v45, %v122_v44  ;;  %v147_v49 = vmul.f32 0.0, %v142_v39 }
  0xac   :  { %v146_v52 = vmul.f32 0.0, %v127_v47 }
 0x108   :  { %v153_v38 = vpop.permute.xlu0 %152 }
 0x109   :  { %v157_v40 = vmul.f32 %v153_v38, %v142_v39 }
 0x10b   :  { %162 = vrot.lane.b32.xlu1 %v157_v40, %s2458_s3 }
 0x110   :  { %v151_v46 = vpop.permute.xlu0 %150 }
 0x111   :  { %v156_v48 = vmul.f32 %v151_v46, %v127_v47 }
 0x113   :  { %160 = vrot.lane.b32.xlu1 %v156_v48, %s2458_s3 }
 0x17d   :  { %v163_v50 = vpop.permute.xlu1 %162 }
 0x17e   :  { %v2539_v51 = vadd.f32 %v163_v50, %v147_v49 }
 0x180   :  { %2186 = vtanh.f32 %v2539_v51  ;;  %v268_v45 = vrot.slane %v2539_v51, 7 }
 0x185   :  { %v161_v53 = vpop.permute.xlu1 %160 }
 0x186   :  { %v2187_v54 = vpop.eup %2186  ;;  %v2542_v55 = vadd.f32 %v161_v53, %v146_v52 }
 0x187   :  { %174 = vrot.lane.b32.xlu2 %v2187_v54, %s2457_s2 }
 0x188   :  { %2188 = vtanh.f32 %v2542_v55  ;;  %v267_v50 = vrot.slane %v2542_v55, 7 }
 0x18e   :  { %v2189_v56 = vpop.eup %2188 }
 0x18f   :  { %172 = vrot.lane.b32.xlu2 %v2189_v56, %s2457_s2 }
 0x1e1   :  { %v175_v57 = vpop.permute.xlu2 %174 }
 0x1e2   :  { %v2547_v58 = vmul.f32 %v175_v57, %v142_v39 }
 0x1e4   :  { %v192_v59 = vpack.c.bf16 %v2547_v58, %v2547_v58 }
 0x1e6   :  { %v196_v61 = vunpack.c.l.b16 %v192_v59 }
 0x1e8   :  { %v197_v0 = vrot.slane %v196_v61, 7 }
 0x1e9   :  { %v173_v60 = vpop.permute.xlu2 %172 }
 0x1ea   :  { %v2551_v62 = vmul.f32 %v173_v60, %v127_v47 }
 0x1ec   :  { %v191_v63 = vpack.c.bf16 %v2551_v62, %v2551_v62 }
 0x1ee   :  { %v195_v1 = vunpack.c.l.b16 %v191_v63 }
 0x1f0   :  { %v199_v2 = vsel %vm198_vm9, %v197_v0, %v195_v1 }
 0x1f1   :  { %v200_v3 = vpack.c.b16 %v199_v2, %v199_v2 }
 0x1f3   :  { %201 = vrot.lane.b32.xlu0 %v200_v3, %s2458_s3 }
 0x265   :  { %v202_v4 = vpop.permute.xlu0 %201 }
 0x266   :  { %2098 = vmatmul.msk.bf16.vlgmr.msra.gmra.mxu2 %vm83_vm10, %v202_v4 }
 0x2e9   :  { %v215_v5 = vpop.f32.mrf.mxu2 }
 0x2ea   :  { %v220_v7 = vrot.slane %v215_v5, 7  ;;  %v224_v8 = vadd.f32 %v215_v5, %v2529_v12 }
 0x2ec   :  { %v223_v9 = vadd.f32 %v220_v7, %v2532_v15  ;;  %2190 = vtanh.f32 %v224_v8  ;;  %v2100_v14 = vmul.f32 -1.442695, %v224_v8 }
 0x2ee   :  { %2192 = vtanh.f32 %v223_v9  ;;  %v2099_v20 = vmul.f32 -1.442695, %v223_v9 }
 0x2ef   :  { %2194 = vpow2.f32 %v2100_v14 }
 0x2f1   :  { %v217_v10 = vpop.f32.mrf.mxu2 }
 0x2f2   :  { %v2191_v11 = vpop.eup %2190 }
 0x2f3   :  { %277 = vrot.lane.b32.xlu2 %v2191_v11, %s2457_s2 }
 0x2f4   :  { %v2193_v13 = vpop.eup %2192 }
 0x2f5   :  { %275 = vrot.lane.b32.xlu1 %v2193_v13, %s2457_s2  ;;  %v2195_v16 = vpop.eup %2194 }
 0x2f6   :  { %v232_v17 = vadd.f32 1.0, %v2195_v16 }
 0x2f8   :  { %2196 = vrcp.f32 %v232_v17  ;;  %v259_v25 = vand.u32 2147483648, %v232_v17  ;;  %vm253_vm12 = vweird.f32 %v232_v17  ;;  %v257_v27 = vand.u32 2147483647, %v232_v17 }
 0x2f9   :  { %2198 = vpow2.f32 %v2099_v20 }
 0x2fa   :  { %v260_v29 = vor.u32 1.1754944e-38, %v259_v25  ;;  %vm258_vm14 = vcmp.eq.f32.partialorder %v257_v27, 8.507059e+37 }
 0x2fe   :  { %v2197_v18 = vpop.eup %2196 }
 0x2ff   :  { %v249_v19 = vmul.f32 %v2197_v18, %v232_v17  ;;  %v2199_v23 = vpop.eup %2198  ;;  %vm254_vm11 = vweird.f32 %v2197_v18 }
 0x300   :  { %v231_v26 = vadd.f32 1.0, %v2199_v23  ;;  %vm255_vm13 = vmor %vm253_vm12, %vm254_vm11 }
 0x301   :  { %v250_v21 = vsub.f32 1.0, %v249_v19 }
 0x302   :  { %2200 = vrcp.f32 %v231_v26  ;;  %v244_v38 = vand.u32 2147483648, %v231_v26  ;;  %vm238_vm0 = vweird.f32 %v231_v26  ;;  %v242_v39 = vand.u32 2147483647, %v231_v26 }
 0x303   :  { %v251_v22 = vmul.f32 %v2197_v18, %v250_v21 }
 0x304   :  { %v245_v41 = vor.u32 1.1754944e-38, %v244_v38  ;;  %vm243_vm2 = vcmp.eq.f32.partialorder %v242_v39, 8.507059e+37 }
 0x305   :  { %v252_v24 = vadd.f32 %v2197_v18, %v251_v22 }
 0x307   :  { %v256_v28 = vsel %vm255_vm13, %v2197_v18, %v252_v24 }
 0x308   :  { %v261_v31 = vsel %vm258_vm14, %v260_v29, %v256_v28  ;;  %v2201_v33 = vpop.eup %2200 }
 0x309   :  { %v234_v34 = vmul.f32 %v2201_v33, %v231_v26  ;;  %vm239_vm15 = vweird.f32 %v2201_v33  ;;  %v272_v46 = vmul.f32 %v268_v45, %v261_v31 }
 0x30a   :  { %vm240_vm1 = vmor %vm238_vm0, %vm239_vm15 }
 0x30b   :  { %v235_v35 = vsub.f32 1.0, %v234_v34 }
 0x30d   :  { %v236_v36 = vmul.f32 %v2201_v33, %v235_v35 }
 0x30f   :  { %v237_v37 = vadd.f32 %v2201_v33, %v236_v36 }
 0x311   :  { %v241_v40 = vsel %vm240_vm1, %v2201_v33, %v237_v37 }
 0x312   :  { %v246_v43 = vsel %vm243_vm2, %v245_v41, %v241_v40 }
 0x313   :  { %v271_v52 = vmul.f32 %v267_v50, %v246_v43 }
 0x34d   :  { %v278_v30 = vpop.permute.xlu2 %277 }
 0x34e   :  { %v282_v32 = vmul.f32 %v278_v30, %v261_v31 }
 0x350   :  { %287 = vrot.lane.b32.xlu1 %v282_v32, %s2458_s3 }
 0x367   :  { %v276_v42 = vpop.permute.xlu1 %275 }
 0x368   :  { %v281_v44 = vmul.f32 %v276_v42, %v246_v43 }
 0x36a   :  { %285 = vrot.lane.b32.xlu0 %v281_v44, %s2458_s3 }
 0x3c2   :  { %v288_v47 = vpop.permute.xlu1 %287 }
 0x3c3   :  { %v2565_v48 = vadd.f32 %v288_v47, %v272_v46 }
 0x3c5   :  { %2202 = vtanh.f32 %v2565_v48  ;;  %v393_v47 = vrot.slane %v2565_v48, 7 }
 0x3cb   :  { %v2203_v49 = vpop.eup %2202 }
 0x3cc   :  { %299 = vrot.lane.b32.xlu0 %v2203_v49, %s2457_s2 }
 0x3dc   :  { %v286_v53 = vpop.permute.xlu0 %285 }
 0x3dd   :  { %v2570_v54 = vadd.f32 %v286_v53, %v271_v52 }
 0x3df   :  { %2204 = vtanh.f32 %v2570_v54  ;;  %v392_v46 = vrot.slane %v2570_v54, 7 }
 0x3e5   :  { %v2205_v56 = vpop.eup %2204 }
 0x3e6   :  { %297 = vrot.lane.b32.xlu2 %v2205_v56, %s2457_s2 }
 0x43e   :  { %v300_v51 = vpop.permute.xlu0 %299 }
 0x43f   :  { %v2574_v57 = vmul.f32 %v300_v51, %v261_v31 }
 0x440   :  { %v298_v59 = vpop.permute.xlu2 %297 }
 0x441   :  { %v2576_v60 = vmul.f32 %v298_v59, %v246_v43  ;;  %v317_v61 = vpack.c.bf16 %v2574_v57, %v2574_v57 }
 0x443   :  { %v316_v55 = vpack.c.bf16 %v2576_v60, %v2576_v60  ;;  %v321_v0 = vunpack.c.l.b16 %v317_v61 }
 0x445   :  { %v320_v63 = vunpack.c.l.b16 %v316_v55 }
 0x447   :  { %v322_v1 = vrot.slane %v320_v63, 1 }
 0x449   :  { %v323_v2 = vsel %vm198_vm9, %v321_v0, %v322_v1 }
 0x44a   :  { %v324_v3 = vpack.c.b16 %v323_v2, %v323_v2 }
 0x44c   :  { %325 = vrot.lane.b32.xlu1 %v324_v3, %s2458_s3 }
 0x4be   :  { %v326_v4 = vpop.permute.xlu1 %325 }
 0x4bf   :  { %2101 = vmatmul.msk.bf16.vlgmr.msra.gmra.mxu3 %vm83_vm10, %v326_v4 }
 0x542   :  { %v339_v5 = vpop.f32.mrf.mxu3 }
 0x543   :  { %v344_v7 = vrot.slane %v339_v5, 6  ;;  %v345_v8 = vrot.slane %v339_v5, 7 }
 0x545   :  { %v348_v9 = vadd.f32 %v344_v7, %v2532_v15  ;;  %v349_v10 = vadd.f32 %v345_v8, %v2529_v12 }
 0x547   :  { %2206 = vtanh.f32 %v348_v9  ;;  %v2102_v16 = vmul.f32 -1.442695, %v348_v9  ;;  %v2103_v20 = vmul.f32 -1.442695, %v349_v10 }
 0x548   :  { %2208 = vtanh.f32 %v349_v10 }
 0x549   :  { %2210 = vpow2.f32 %v2102_v16 }
 0x54a   :  { %v341_v11 = vpop.f32.mrf.mxu3 }
 0x54d   :  { %v2207_v13 = vpop.eup %2206 }
 0x54e   :  { %v2209_v14 = vpop.eup %2208  ;;  %400 = vrot.lane.b32.xlu2 %v2207_v13, %s2457_s2 }
 0x54f   :  { %402 = vrot.lane.b32.xlu0 %v2209_v14, %s2457_s2  ;;  %v2211_v17 = vpop.eup %2210 }
 0x550   :  { %v356_v18 = vadd.f32 1.0, %v2211_v17 }
 0x552   :  { %2212 = vrcp.f32 %v356_v18  ;;  %v369_v27 = vand.u32 2147483648, %v356_v18  ;;  %vm363_vm4 = vweird.f32 %v356_v18  ;;  %v367_v28 = vand.u32 2147483647, %v356_v18 }
 0x553   :  { %2214 = vpow2.f32 %v2103_v20 }
 0x554   :  { %v370_v30 = vor.u32 1.1754944e-38, %v369_v27  ;;  %vm368_vm6 = vcmp.eq.f32.partialorder %v367_v28, 8.507059e+37 }
 0x558   :  { %v2213_v19 = vpop.eup %2212 }
 0x559   :  { %v359_v21 = vmul.f32 %v2213_v19, %v356_v18  ;;  %v2215_v24 = vpop.eup %2214  ;;  %vm364_vm3 = vweird.f32 %v2213_v19 }
 0x55a   :  { %v357_v25 = vadd.f32 1.0, %v2215_v24  ;;  %vm365_vm5 = vmor %vm363_vm4, %vm364_vm3 }
 0x55b   :  { %v360_v22 = vsub.f32 1.0, %v359_v21 }
 0x55c   :  { %2216 = vrcp.f32 %v357_v25  ;;  %v384_v39 = vand.u32 2147483648, %v357_v25  ;;  %vm378_vm8 = vweird.f32 %v357_v25  ;;  %v382_v40 = vand.u32 2147483647, %v357_v25 }
 0x55d   :  { %v361_v23 = vmul.f32 %v2213_v19, %v360_v22 }
 0x55e   :  { %v385_v42 = vor.u32 1.1754944e-38, %v384_v39  ;;  %vm383_vm12 = vcmp.eq.f32.partialorder %v382_v40, 8.507059e+37 }
 0x55f   :  { %v362_v26 = vadd.f32 %v2213_v19, %v361_v23 }
 0x561   :  { %v366_v29 = vsel %vm365_vm5, %v2213_v19, %v362_v26 }
 0x562   :  { %v371_v32 = vsel %vm368_vm6, %v370_v30, %v366_v29  ;;  %v2217_v34 = vpop.eup %2216 }
 0x563   :  { %v374_v35 = vmul.f32 %v2217_v34, %v357_v25  ;;  %vm379_vm7 = vweird.f32 %v2217_v34  ;;  %v396_v49 = vmul.f32 %v392_v46, %v371_v32 }
 0x564   :  { %vm380_vm11 = vmor %vm378_vm8, %vm379_vm7 }
 0x565   :  { %v375_v36 = vsub.f32 1.0, %v374_v35 }
 0x567   :  { %v376_v37 = vmul.f32 %v2217_v34, %v375_v36 }
 0x569   :  { %v377_v38 = vadd.f32 %v2217_v34, %v376_v37 }
 0x56b   :  { %v381_v41 = vsel %vm380_vm11, %v2217_v34, %v377_v38 }
 0x56c   :  { %v386_v44 = vsel %vm383_vm12, %v385_v42, %v381_v41 }
 0x56d   :  { %v397_v50 = vmul.f32 %v393_v47, %v386_v44 }
 0x5a8   :  { %v401_v31 = vpop.permute.xlu2 %400 }
 0x5a9   :  { %v406_v33 = vmul.f32 %v401_v31, %v371_v32 }
 0x5ab   :  { %410 = vrot.lane.b32.xlu1 %v406_v33, %s2458_s3 }
 0x5c1   :  { %v403_v43 = vpop.permute.xlu0 %402 }
 0x5c2   :  { %v407_v45 = vmul.f32 %v403_v43, %v386_v44 }
 0x5c4   :  { %412 = vrot.lane.b32.xlu2 %v407_v45, %s2458_s3 }
 0x61d   :  { %v411_v52 = vpop.permute.xlu1 %410 }
 0x61e   :  { %v413_v53 = vpop.permute.xlu2 %412  ;;  %v2593_v56 = vadd.f32 %v411_v52, %v396_v49 }
 0x61f   :  { %v2595_v51 = vadd.f32 %v413_v53, %v397_v50 }
 0x620   :  { %2218 = vtanh.f32 %v2593_v56  ;;  %v518_v52 = vrot.slane %v2593_v56, 7 }
 0x621   :  { %2220 = vtanh.f32 %v2595_v51 }
 0x626   :  { %v2219_v59 = vpop.eup %2218 }
 0x627   :  { %v2221_v61 = vpop.eup %2220  ;;  %422 = vrot.lane.b32.xlu0 %v2219_v59, %s2457_s2 }
 0x628   :  { %424 = vrot.lane.b32.xlu1 %v2221_v61, %s2457_s2 }
 0x699   :  { %v423_v54 = vpop.permute.xlu0 %422 }
 0x69a   :  { %v425_v48 = vpop.permute.xlu1 %424  ;;  %v2601_v55 = vmul.f32 %v423_v54, %v371_v32 }
 0x69b   :  { %v2603_v63 = vmul.f32 %v425_v48, %v386_v44  ;;  %v519_v48 = vrot.slane %v2595_v51, 7 }
 0x69c   :  { %v441_v0 = vpack.c.bf16 %v2601_v55, %v2601_v55 }
 0x69d   :  { %v442_v1 = vpack.c.bf16 %v2603_v63, %v2603_v63 }
 0x69e   :  { %v445_v2 = vunpack.c.l.b16 %v441_v0 }
 0x69f   :  { %v446_v3 = vunpack.c.l.b16 %v442_v1 }
 0x6a0   :  { %v447_v4 = vrot.slane %v445_v2, 2 }
 0x6a1   :  { %v448_v5 = vrot.slane %v446_v3, 1 }
 0x6a3   :  { %v449_v7 = vsel %vm198_vm9, %v448_v5, %v447_v4 }
 0x6a4   :  { %v450_v8 = vpack.c.b16 %v449_v7, %v449_v7 }
 0x6a6   :  { %451 = vrot.lane.b32.xlu2 %v450_v8, %s2458_s3 }
 0x700   :  { %v452_v9 = vpop.permute.xlu2 %451 }
 0x701   :  { %2104 = vmatmul.msk.bf16.vlgmr.msrb.gmra.mxu0 %vm83_vm10, %v452_v9 }
 0x77e   :  { %v465_v10 = vpop.f32.mrf.mxu0 }
 0x77f   :  { %v470_v11 = vrot.slane %v465_v10, 5  ;;  %v471_v13 = vrot.slane %v465_v10, 6 }
 0x781   :  { %v474_v14 = vadd.f32 %v470_v11, %v2532_v15  ;;  %v475_v16 = vadd.f32 %v471_v13, %v2529_v12 }
 0x783   :  { %2222 = vtanh.f32 %v474_v14  ;;  %v2105_v20 = vmul.f32 -1.442695, %v474_v14  ;;  %v2106_v21 = vmul.f32 -1.442695, %v475_v16 }
 0x784   :  { %2224 = vtanh.f32 %v475_v16 }
 0x785   :  { %2226 = vpow2.f32 %v2105_v20 }
 0x786   :  { %v467_v17 = vpop.f32.mrf.mxu0  ;;  %2228 = vpow2.f32 %v2106_v21 }
 0x789   :  { %v2223_v18 = vpop.eup %2222 }
 0x78a   :  { %v2225_v19 = vpop.eup %2224  ;;  %526 = vrot.lane.b32.xlu0 %v2223_v18, %s2457_s2 }
 0x78b   :  { %528 = vrot.lane.b32.xlu1 %v2225_v19, %s2457_s2  ;;  %v2227_v22 = vpop.eup %2226 }
 0x78c   :  { %v2229_v23 = vpop.eup %2228  ;;  %v482_v24 = vadd.f32 1.0, %v2227_v22 }
 0x78d   :  { %v483_v25 = vadd.f32 1.0, %v2229_v23 }
 0x78e   :  { %2230 = vrcp.f32 %v482_v24  ;;  %v495_v36 = vand.u32 2147483648, %v482_v24  ;;  %vm489_vm15 = vweird.f32 %v482_v24  ;;  %v493_v38 = vand.u32 2147483647, %v482_v24 }
 0x78f   :  { %2232 = vrcp.f32 %v483_v25  ;;  %v510_v37 = vand.u32 2147483648, %v483_v25  ;;  %vm504_vm0 = vweird.f32 %v483_v25  ;;  %v508_v39 = vand.u32 2147483647, %v483_v25 }
 0x790   :  { %v496_v42 = vor.u32 1.1754944e-38, %v495_v36  ;;  %vm494_vm3 = vcmp.eq.f32.partialorder %v493_v38, 8.507059e+37 }
 0x791   :  { %v511_v43 = vor.u32 1.1754944e-38, %v510_v37  ;;  %vm509_vm4 = vcmp.eq.f32.partialorder %v508_v39, 8.507059e+37 }
 0x794   :  { %v2231_v26 = vpop.eup %2230 }
 0x795   :  { %v2233_v27 = vpop.eup %2232  ;;  %v485_v28 = vmul.f32 %v2231_v26, %v482_v24  ;;  %vm490_vm13 = vweird.f32 %v2231_v26 }
 0x796   :  { %v500_v29 = vmul.f32 %v2233_v27, %v483_v25  ;;  %vm505_vm14 = vweird.f32 %v2233_v27  ;;  %vm491_vm1 = vmor %vm489_vm15, %vm490_vm13 }
 0x797   :  { %v486_v30 = vsub.f32 1.0, %v485_v28  ;;  %vm506_vm2 = vmor %vm504_vm0, %vm505_vm14 }
 0x798   :  { %v501_v31 = vsub.f32 1.0, %v500_v29 }
 0x799   :  { %v487_v32 = vmul.f32 %v2231_v26, %v486_v30 }
 0x79a   :  { %v502_v33 = vmul.f32 %v2233_v27, %v501_v31 }
 0x79b   :  { %v488_v34 = vadd.f32 %v2231_v26, %v487_v32 }
 0x79c   :  { %v503_v35 = vadd.f32 %v2233_v27, %v502_v33 }
 0x79d   :  { %v492_v40 = vsel %vm491_vm1, %v2231_v26, %v488_v34 }
 0x79e   :  { %v507_v41 = vsel %vm506_vm2, %v2233_v27, %v503_v35  ;;  %v497_v45 = vsel %vm494_vm3, %v496_v42, %v492_v40 }
 0x79f   :  { %v512_v47 = vsel %vm509_vm4, %v511_v43, %v507_v41  ;;  %v522_v53 = vmul.f32 %v518_v52, %v497_v45 }
 0x7a0   :  { %v523_v0 = vmul.f32 %v519_v48, %v512_v47 }
 0x7fc   :  { %v527_v44 = vpop.permute.xlu0 %526 }
 0x7fd   :  { %v529_v46 = vpop.permute.xlu1 %528  ;;  %v532_v49 = vmul.f32 %v527_v44, %v497_v45 }
 0x7fe   :  { %v533_v50 = vmul.f32 %v529_v46, %v512_v47 }
 0x7ff   :  { %536 = vrot.lane.b32.xlu2 %v532_v49, %s2458_s3 }
 0x800   :  { %538 = vrot.lane.b32.xlu0 %v533_v50, %s2458_s3 }
 0x859   :  { %v537_v59 = vpop.permute.xlu2 %536 }
 0x85a   :  { %v2619_v61 = vadd.f32 %v537_v59, %v522_v53 }
 0x85c   :  { %2234 = vtanh.f32 %v2619_v61 }
 0x862   :  { %v2235_v54 = vpop.eup %2234 }
 0x863   :  { %548 = vrot.lane.b32.xlu1 %v2235_v54, %s2457_s2 }
 0x872   :  { %v539_v1 = vpop.permute.xlu0 %538 }
 0x873   :  { %v2624_v2 = vadd.f32 %v539_v1, %v523_v0 }
 0x875   :  { %2236 = vtanh.f32 %v2624_v2  ;;  %v645_v1 = vrot.slane %v2624_v2, 7 }
 0x87b   :  { %v2237_v3 = vpop.eup %2236 }
 0x87c   :  { %550 = vrot.lane.b32.xlu2 %v2237_v3, %s2457_s2 }
 0x8d5   :  { %v549_v56 = vpop.permute.xlu1 %548 }
 0x8d6   :  { %v551_v4 = vpop.permute.xlu2 %550  ;;  %v2628_v5 = vmul.f32 %v549_v56, %v497_v45 }
 0x8d7   :  { %v2630_v7 = vmul.f32 %v551_v4, %v512_v47 }
 0x8d8   :  { %v567_v8 = vpack.c.bf16 %v2628_v5, %v2628_v5 }
 0x8d9   :  { %v568_v51 = vpack.c.bf16 %v2630_v7, %v2630_v7 }
 0x8da   :  { %v571_v9 = vunpack.c.l.b16 %v567_v8 }
 0x8db   :  { %v572_v10 = vunpack.c.l.b16 %v568_v51  ;;  %v644_v51 = vrot.slane %v2619_v61, 7 }
 0x8dc   :  { %v573_v11 = vrot.slane %v571_v9, 3 }
 0x8dd   :  { %v574_v13 = vrot.slane %v572_v10, 2 }
 0x8df   :  { %v575_v14 = vsel %vm198_vm9, %v574_v13, %v573_v11 }
 0x8e0   :  { %v576_v16 = vpack.c.b16 %v575_v14, %v575_v14 }
 0x8e2   :  { %577 = vrot.lane.b32.xlu0 %v576_v16, %s2458_s3 }
 0x954   :  { %v578_v17 = vpop.permute.xlu0 %577 }
 0x955   :  { %2107 = vmatmul.msk.bf16.vlgmr.msrb.gmra.mxu1 %vm83_vm10, %v578_v17 }
 0x9d2   :  { %v591_v18 = vpop.f32.mrf.mxu1 }
 0x9d3   :  { %v596_v19 = vrot.slane %v591_v18, 4  ;;  %v597_v20 = vrot.slane %v591_v18, 5 }
 0x9d5   :  { %v600_v21 = vadd.f32 %v596_v19, %v2532_v15  ;;  %v601_v22 = vadd.f32 %v597_v20, %v2529_v12 }
 0x9d7   :  { %2238 = vtanh.f32 %v600_v21  ;;  %v2109_v26 = vmul.f32 -1.442695, %v601_v22  ;;  %v2108_v30 = vmul.f32 -1.442695, %v600_v21 }
 0x9d8   :  { %2240 = vtanh.f32 %v601_v22 }
 0x9d9   :  { %2242 = vpow2.f32 %v2109_v26 }
 0x9da   :  { %v593_v23 = vpop.f32.mrf.mxu1 }
 0x9dd   :  { %v2239_v24 = vpop.eup %2238 }
 0x9de   :  { %v2241_v25 = vpop.eup %2240  ;;  %652 = vrot.lane.b32.xlu1 %v2239_v24, %s2457_s2 }
 0x9df   :  { %654 = vrot.lane.b32.xlu2 %v2241_v25, %s2457_s2  ;;  %v2243_v27 = vpop.eup %2242 }
 0x9e0   :  { %v609_v28 = vadd.f32 1.0, %v2243_v27 }
 0x9e2   :  { %2244 = vrcp.f32 %v609_v28  ;;  %v636_v37 = vand.u32 2147483648, %v609_v28  ;;  %vm630_vm6 = vweird.f32 %v609_v28  ;;  %v634_v38 = vand.u32 2147483647, %v609_v28 }
 0x9e3   :  { %2246 = vpow2.f32 %v2108_v30 }
 0x9e4   :  { %v637_v40 = vor.u32 1.1754944e-38, %v636_v37  ;;  %vm635_vm8 = vcmp.eq.f32.partialorder %v634_v38, 8.507059e+37 }
 0x9e8   :  { %v2245_v29 = vpop.eup %2244 }
 0x9e9   :  { %v626_v31 = vmul.f32 %v2245_v29, %v609_v28  ;;  %v2247_v33 = vpop.eup %2246  ;;  %vm631_vm5 = vweird.f32 %v2245_v29 }
 0x9ea   :  { %v608_v35 = vadd.f32 1.0, %v2247_v33  ;;  %vm632_vm7 = vmor %vm630_vm6, %vm631_vm5 }
 0x9eb   :  { %v627_v32 = vsub.f32 1.0, %v626_v31 }
 0x9ec   :  { %2248 = vrcp.f32 %v608_v35  ;;  %v621_v50 = vand.u32 2147483648, %v608_v35  ;;  %vm615_vm12 = vweird.f32 %v608_v35  ;;  %v619_v52 = vand.u32 2147483647, %v608_v35 }
 0x9ed   :  { %v628_v34 = vmul.f32 %v2245_v29, %v627_v32 }
 0x9ee   :  { %v622_v59 = vor.u32 1.1754944e-38, %v621_v50  ;;  %vm620_vm14 = vcmp.eq.f32.partialorder %v619_v52, 8.507059e+37 }
 0x9ef   :  { %v629_v36 = vadd.f32 %v2245_v29, %v628_v34 }
 0x9f1   :  { %v633_v39 = vsel %vm632_vm7, %v2245_v29, %v629_v36 }
 0x9f2   :  { %v638_v42 = vsel %vm635_vm8, %v637_v40, %v633_v39  ;;  %v2249_v43 = vpop.eup %2248 }
 0x9f3   :  { %v611_v45 = vmul.f32 %v2249_v43, %v608_v35  ;;  %vm616_vm11 = vweird.f32 %v2249_v43  ;;  %v649_v3 = vmul.f32 %v645_v1, %v638_v42 }
 0x9f4   :  { %vm617_vm13 = vmor %vm615_vm12, %vm616_vm11 }
 0x9f5   :  { %v612_v46 = vsub.f32 1.0, %v611_v45 }
 0x9f7   :  { %v613_v47 = vmul.f32 %v2249_v43, %v612_v46 }
 0x9f9   :  { %v614_v49 = vadd.f32 %v2249_v43, %v613_v47 }
 0x9fb   :  { %v618_v53 = vsel %vm617_vm13, %v2249_v43, %v614_v49 }
 0x9fc   :  { %v623_v48 = vsel %vm620_vm14, %v622_v59, %v618_v53 }
 0x9fd   :  { %v648_v9 = vmul.f32 %v644_v51, %v623_v48 }
 0xa39   :  { %v655_v41 = vpop.permute.xlu2 %654 }
 0xa3a   :  { %v659_v44 = vmul.f32 %v655_v41, %v638_v42 }
 0xa3c   :  { %664 = vrot.lane.b32.xlu1 %v659_v44, %s2458_s3 }
 0xa50   :  { %v653_v54 = vpop.permute.xlu1 %652 }
 0xa51   :  { %v658_v0 = vmul.f32 %v653_v54, %v623_v48 }
 0xa53   :  { %662 = vrot.lane.b32.xlu0 %v658_v0, %s2458_s3 }
 0xaae   :  { %v665_v56 = vpop.permute.xlu1 %664 }
 0xaaf   :  { %v2646_v4 = vadd.f32 %v665_v56, %v649_v3 }
 0xab1   :  { %2250 = vtanh.f32 %v2646_v4 }
 0xab7   :  { %v2251_v8 = vpop.eup %2250 }
 0xab8   :  { %676 = vrot.lane.b32.xlu0 %v2251_v8, %s2457_s2 }
 0xac5   :  { %v663_v10 = vpop.permute.xlu0 %662 }
 0xac6   :  { %v2651_v11 = vadd.f32 %v663_v10, %v648_v9 }
 0xac8   :  { %2252 = vtanh.f32 %v2651_v11 }
 0xace   :  { %v2253_v13 = vpop.eup %2252 }
 0xacf   :  { %674 = vrot.lane.b32.xlu2 %v2253_v13, %s2457_s2 }
 0xb29   :  { %v675_v2 = vpop.permute.xlu2 %674 }
 0xb2a   :  { %v677_v14 = vpop.permute.xlu0 %676  ;;  %v2655_v16 = vmul.f32 %v675_v2, %v623_v48  ;;  %v770_v2 = vrot.slane %v2651_v11, 7 }
 0xb2b   :  { %v2657_v17 = vmul.f32 %v677_v14, %v638_v42  ;;  %v771_v14 = vrot.slane %v2646_v4, 7 }
 0xb2c   :  { %v693_v18 = vpack.c.bf16 %v2655_v16, %v2655_v16 }
 0xb2d   :  { %v694_v61 = vpack.c.bf16 %v2657_v17, %v2657_v17 }
 0xb2e   :  { %v697_v19 = vunpack.c.l.b16 %v693_v18 }
 0xb2f   :  { %v698_v20 = vunpack.c.l.b16 %v694_v61 }
 0xb30   :  { %v699_v21 = vrot.slane %v697_v19, 4 }
 0xb31   :  { %v700_v22 = vrot.slane %v698_v20, 3 }
 0xb33   :  { %v701_v23 = vsel %vm198_vm9, %v700_v22, %v699_v21 }
 0xb34   :  { %v702_v24 = vpack.c.b16 %v701_v23, %v701_v23 }
 0xb36   :  { %703 = vrot.lane.b32.xlu1 %v702_v24, %s2458_s3 }
 0xba8   :  { %v704_v25 = vpop.permute.xlu1 %703 }
 0xba9   :  { %2110 = vmatmul.msk.bf16.vlgmr.msrb.gmra.mxu2 %vm83_vm10, %v704_v25 }
 0xc2c   :  { %v717_v26 = vpop.f32.mrf.mxu2 }
 0xc2d   :  { %v722_v27 = vrot.slane %v717_v26, 3  ;;  %v723_v28 = vrot.slane %v717_v26, 4 }
 0xc2f   :  { %v726_v29 = vadd.f32 %v722_v27, %v2532_v15  ;;  %v727_v30 = vadd.f32 %v723_v28, %v2529_v12 }
 0xc31   :  { %2254 = vtanh.f32 %v726_v29  ;;  %v2111_v34 = vmul.f32 -1.442695, %v726_v29  ;;  %v2112_v38 = vmul.f32 -1.442695, %v727_v30 }
 0xc32   :  { %2256 = vtanh.f32 %v727_v30 }
 0xc33   :  { %2258 = vpow2.f32 %v2111_v34 }
 0xc34   :  { %v719_v31 = vpop.f32.mrf.mxu2 }
 0xc37   :  { %v2255_v32 = vpop.eup %2254 }
 0xc38   :  { %v2257_v33 = vpop.eup %2256  ;;  %778 = vrot.lane.b32.xlu2 %v2255_v32, %s2457_s2 }
 0xc39   :  { %780 = vrot.lane.b32.xlu0 %v2257_v33, %s2457_s2  ;;  %v2259_v35 = vpop.eup %2258 }
 0xc3a   :  { %v734_v36 = vadd.f32 1.0, %v2259_v35 }
 0xc3c   :  { %2260 = vrcp.f32 %v734_v36  ;;  %v747_v45 = vand.u32 2147483648, %v734_v36  ;;  %vm741_vm0 = vweird.f32 %v734_v36  ;;  %v745_v46 = vand.u32 2147483647, %v734_v36 }
 0xc3d   :  { %2262 = vpow2.f32 %v2112_v38 }
 0xc3e   :  { %v748_v49 = vor.u32 1.1754944e-38, %v747_v45  ;;  %vm746_vm2 = vcmp.eq.f32.partialorder %v745_v46, 8.507059e+37 }
 0xc42   :  { %v2261_v37 = vpop.eup %2260 }
 0xc43   :  { %v737_v39 = vmul.f32 %v2261_v37, %v734_v36  ;;  %v2263_v42 = vpop.eup %2262  ;;  %vm742_vm15 = vweird.f32 %v2261_v37 }
 0xc44   :  { %v735_v43 = vadd.f32 1.0, %v2263_v42  ;;  %vm743_vm1 = vmor %vm741_vm0, %vm742_vm15 }
 0xc45   :  { %v738_v40 = vsub.f32 1.0, %v737_v39 }
 0xc46   :  { %2264 = vrcp.f32 %v735_v43  ;;  %v762_v3 = vand.u32 2147483648, %v735_v43  ;;  %vm756_vm4 = vweird.f32 %v735_v43  ;;  %v760_v56 = vand.u32 2147483647, %v735_v43 }
 0xc47   :  { %v739_v41 = vmul.f32 %v2261_v37, %v738_v40 }
 0xc48   :  { %v763_v51 = vor.u32 1.1754944e-38, %v762_v3  ;;  %vm761_vm6 = vcmp.eq.f32.partialorder %v760_v56, 8.507059e+37 }
 0xc49   :  { %v740_v44 = vadd.f32 %v2261_v37, %v739_v41 }
 0xc4b   :  { %v744_v47 = vsel %vm743_vm1, %v2261_v37, %v740_v44 }
 0xc4c   :  { %v749_v52 = vsel %vm746_vm2, %v748_v49, %v744_v47  ;;  %v2265_v59 = vpop.eup %2264 }
 0xc4d   :  { %v752_v54 = vmul.f32 %v2265_v59, %v735_v43  ;;  %vm757_vm3 = vweird.f32 %v2265_v59  ;;  %v774_v18 = vmul.f32 %v770_v2, %v749_v52 }
 0xc4e   :  { %vm758_vm5 = vmor %vm756_vm4, %vm757_vm3 }
 0xc4f   :  { %v753_v48 = vsub.f32 1.0, %v752_v54 }
 0xc51   :  { %v754_v0 = vmul.f32 %v2265_v59, %v753_v48 }
 0xc53   :  { %v755_v1 = vadd.f32 %v2265_v59, %v754_v0 }
 0xc55   :  { %v759_v8 = vsel %vm758_vm5, %v2265_v59, %v755_v1 }
 0xc56   :  { %v764_v10 = vsel %vm761_vm6, %v763_v51, %v759_v8 }
 0xc57   :  { %v775_v61 = vmul.f32 %v771_v14, %v764_v10 }
 0xc92   :  { %v779_v50 = vpop.permute.xlu2 %778 }
 0xc93   :  { %v784_v53 = vmul.f32 %v779_v50, %v749_v52 }
 0xc95   :  { %788 = vrot.lane.b32.xlu1 %v784_v53, %s2458_s3 }
 0xcab   :  { %v781_v9 = vpop.permute.xlu0 %780 }
 0xcac   :  { %v785_v13 = vmul.f32 %v781_v9, %v764_v10 }
 0xcae   :  { %790 = vrot.lane.b32.xlu2 %v785_v13, %s2458_s3 }
 0xd07   :  { %v789_v19 = vpop.permute.xlu1 %788 }
 0xd08   :  { %v791_v20 = vpop.permute.xlu2 %790  ;;  %v2674_v21 = vadd.f32 %v789_v19, %v774_v18 }
 0xd09   :  { %v2676_v22 = vadd.f32 %v791_v20, %v775_v61 }
 0xd0a   :  { %2266 = vtanh.f32 %v2674_v21 }
 0xd0b   :  { %2268 = vtanh.f32 %v2676_v22 }
 0xd10   :  { %v2267_v23 = vpop.eup %2266 }
 0xd11   :  { %v2269_v24 = vpop.eup %2268  ;;  %800 = vrot.lane.b32.xlu0 %v2267_v23, %s2457_s2 }
 0xd12   :  { %802 = vrot.lane.b32.xlu1 %v2269_v24, %s2457_s2 }
 0xd83   :  { %v801_v11 = vpop.permute.xlu0 %800 }
 0xd84   :  { %v803_v4 = vpop.permute.xlu1 %802  ;;  %v2682_v25 = vmul.f32 %v801_v11, %v749_v52 }
 0xd85   :  { %v2684_v26 = vmul.f32 %v803_v4, %v764_v10 }
 0xd86   :  { %v819_v27 = vpack.c.bf16 %v2682_v25, %v2682_v25 }
 0xd87   :  { %v820_v28 = vpack.c.bf16 %v2684_v26, %v2684_v26 }
 0xd88   :  { %v823_v29 = vunpack.c.l.b16 %v819_v27  ;;  %v896_v27 = vrot.slane %v2674_v21, 7 }
 0xd89   :  { %v824_v30 = vunpack.c.l.b16 %v820_v28 }
 0xd8a   :  { %v825_v31 = vrot.slane %v823_v29, 5 }
 0xd8b   :  { %v826_v32 = vrot.slane %v824_v30, 4 }
 0xd8d   :  { %v827_v33 = vsel %vm198_vm9, %v826_v32, %v825_v31  ;;  %v897_v32 = vrot.slane %v2676_v22, 7 }
 0xd8e   :  { %v828_v34 = vpack.c.b16 %v827_v33, %v827_v33 }
 0xd90   :  { %829 = vrot.lane.b32.xlu2 %v828_v34, %s2458_s3 }
 0xdea   :  { %v830_v35 = vpop.permute.xlu2 %829 }
 0xdeb   :  { %2113 = vmatmul.msk.bf16.vlgmr.msrb.gmra.mxu3 %vm83_vm10, %v830_v35 }
 0xe6e   :  { %v843_v36 = vpop.f32.mrf.mxu3 }
 0xe6f   :  { %v848_v37 = vrot.slane %v843_v36, 2  ;;  %v849_v38 = vrot.slane %v843_v36, 3 }
 0xe71   :  { %v852_v39 = vadd.f32 %v848_v37, %v2532_v15  ;;  %v853_v40 = vadd.f32 %v849_v38, %v2529_v12 }
 0xe73   :  { %2270 = vtanh.f32 %v852_v39  ;;  %v2114_v44 = vmul.f32 -1.442695, %v852_v39  ;;  %v2115_v45 = vmul.f32 -1.442695, %v853_v40 }
 0xe74   :  { %2272 = vtanh.f32 %v853_v40 }
 0xe75   :  { %2274 = vpow2.f32 %v2114_v44 }
 0xe76   :  { %v845_v41 = vpop.f32.mrf.mxu3  ;;  %2276 = vpow2.f32 %v2115_v45 }
 0xe79   :  { %v2271_v42 = vpop.eup %2270 }
 0xe7a   :  { %v2273_v43 = vpop.eup %2272  ;;  %904 = vrot.lane.b32.xlu0 %v2271_v42, %s2457_s2 }
 0xe7b   :  { %906 = vrot.lane.b32.xlu1 %v2273_v43, %s2457_s2  ;;  %v2275_v46 = vpop.eup %2274 }
 0xe7c   :  { %v2277_v47 = vpop.eup %2276  ;;  %v860_v49 = vadd.f32 1.0, %v2275_v46 }
 0xe7d   :  { %v861_v50 = vadd.f32 1.0, %v2277_v47 }
 0xe7e   :  { %2278 = vrcp.f32 %v860_v49  ;;  %v873_v51 = vand.u32 2147483648, %v860_v49  ;;  %vm867_vm11 = vweird.f32 %v860_v49  ;;  %v871_v10 = vand.u32 2147483647, %v860_v49 }
 0xe7f   :  { %2280 = vrcp.f32 %v861_v50  ;;  %v888_v9 = vand.u32 2147483648, %v861_v50  ;;  %vm882_vm12 = vweird.f32 %v861_v50  ;;  %v886_v13 = vand.u32 2147483647, %v861_v50 }
 0xe80   :  { %v874_v18 = vor.u32 1.1754944e-38, %v873_v51  ;;  %vm872_vm15 = vcmp.eq.f32.partialorder %v871_v10, 8.507059e+37 }
 0xe81   :  { %v889_v61 = vor.u32 1.1754944e-38, %v888_v9  ;;  %vm887_vm0 = vcmp.eq.f32.partialorder %v886_v13, 8.507059e+37 }
 0xe84   :  { %v2279_v52 = vpop.eup %2278 }
 0xe85   :  { %v2281_v53 = vpop.eup %2280  ;;  %v863_v59 = vmul.f32 %v2279_v52, %v860_v49  ;;  %vm868_vm7 = vweird.f32 %v2279_v52 }
 0xe86   :  { %v878_v54 = vmul.f32 %v2281_v53, %v861_v50  ;;  %vm883_vm8 = vweird.f32 %v2281_v53  ;;  %vm869_vm13 = vmor %vm867_vm11, %vm868_vm7  ;;  %vm188_vm11 = vcmask 253952  }
 0xe87   :  { %v864_v48 = vsub.f32 1.0, %v863_v59  ;;  %vm884_vm14 = vmor %vm882_vm12, %vm883_vm8  ;;  %vm313_vm12 = vcmask 254977  }
 0xe88   :  { %v879_v0 = vsub.f32 1.0, %v878_v54 }
 0xe89   :  { %v865_v1 = vmul.f32 %v2279_v52, %v864_v48 }
 0xe8a   :  { %v880_v3 = vmul.f32 %v2281_v53, %v879_v0 }
 0xe8b   :  { %v866_v56 = vadd.f32 %v2279_v52, %v865_v1 }
 0xe8c   :  { %v881_v8 = vadd.f32 %v2281_v53, %v880_v3 }
 0xe8d   :  { %v870_v2 = vsel %vm869_vm13, %v2279_v52, %v866_v56  ;;  %vm564_vm13 = vcmask 257027  }
 0xe8e   :  { %v885_v14 = vsel %vm884_vm14, %v2281_v53, %v881_v8  ;;  %v875_v20 = vsel %vm872_vm15, %v874_v18, %v870_v2  ;;  %vm690_vm14 = vcmask 258052   ;;  %vm942_vm15 = vcmask 260102  }
 0xe8f   :  { %v890_v24 = vsel %vm887_vm0, %v889_v61, %v885_v14  ;;  %v900_v28 = vmul.f32 %v896_v27, %v875_v20  ;;  %vm438_vm0 = vcmask 256002  }
 0xe90   :  { %v901_v33 = vmul.f32 %v897_v32, %v890_v24 }
 0xeec   :  { %v905_v19 = vpop.permute.xlu0 %904 }
 0xeed   :  { %v907_v23 = vpop.permute.xlu1 %906  ;;  %v910_v11 = vmul.f32 %v905_v19, %v875_v20 }
 0xeee   :  { %v911_v4 = vmul.f32 %v907_v23, %v890_v24 }
 0xeef   :  { %914 = vrot.lane.b32.xlu2 %v910_v11, %s2458_s3 }
 0xef0   :  { %916 = vrot.lane.b32.xlu0 %v911_v4, %s2458_s3 }
 0xf49   :  { %v915_v29 = vpop.permute.xlu2 %914 }
 0xf4a   :  { %v2700_v30 = vadd.f32 %v915_v29, %v900_v28 }
 0xf4c   :  { %2282 = vtanh.f32 %v2700_v30 }
 0xf52   :  { %v2283_v31 = vpop.eup %2282 }
 0xf53   :  { %926 = vrot.lane.b32.xlu1 %v2283_v31, %s2457_s2 }
 0xf62   :  { %v917_v34 = vpop.permute.xlu0 %916 }
 0xf63   :  { %v2705_v35 = vadd.f32 %v917_v34, %v901_v33 }
 0xf65   :  { %2284 = vtanh.f32 %v2705_v35 }
 0xf6b   :  { %v2285_v36 = vpop.eup %2284 }
 0xf6c   :  { %928 = vrot.lane.b32.xlu2 %v2285_v36, %s2457_s2 }
 0xfc5   :  { %v927_v21 = vpop.permute.xlu1 %926 }
 0xfc6   :  { %v929_v37 = vpop.permute.xlu2 %928  ;;  %v2709_v38 = vmul.f32 %v927_v21, %v875_v20 }
 0xfc7   :  { %v2711_v39 = vmul.f32 %v929_v37, %v890_v24 }
 0xfc8   :  { %v945_v40 = vpack.c.bf16 %v2709_v38, %v2709_v38 }
 0xfc9   :  { %v946_v22 = vpack.c.bf16 %v2711_v39, %v2711_v39 }
 0xfca   :  { %v949_v41 = vunpack.c.l.b16 %v945_v40 }
 0xfcb   :  { %v950_v42 = vunpack.c.l.b16 %v946_v22 }
 0xfcc   :  { %v951_v43 = vrot.slane %v949_v41, 6 }
 0xfcd   :  { %v952_v44 = vrot.slane %v950_v42, 5 }
 0xfcf   :  { %v953_v45 = vsel %vm198_vm9, %v952_v44, %v951_v43 }
 0xfd0   :  { %v954_v46 = vpack.c.b16 %v953_v45, %v953_v45 }
 0xfd2   :  { %955 = vrot.lane.b32.xlu0 %v954_v46, %s2458_s3 }
0x1044   :  { %v956_v47 = vpop.permute.xlu0 %955 }
0x1045   :  { %2116 = vmatmul.msk.bf16.vlgmr.msra.gmra.mxu0 %vm83_vm10, %v956_v47 }
0x10c2   :  { %v969_v49 = vpop.f32.mrf.mxu0 }
0x10c3   :  { %v974_v50 = vrot.slane %v969_v49, 1  ;;  %v975_v52 = vrot.slane %v969_v49, 2 }
0x10c5   :  { %v978_v53 = vadd.f32 %v974_v50, %v2532_v15  ;;  %v979_v59 = vadd.f32 %v975_v52, %v2529_v12 }
0x10c7   :  { %2286 = vtanh.f32 %v978_v53  ;;  %v2118_v1 = vmul.f32 -1.442695, %v979_v59  ;;  %v2117_v51 = vmul.f32 -1.442695, %v978_v53 }
0x10c8   :  { %2288 = vtanh.f32 %v979_v59  ;;  %v2166_v59 = vld [vmem:[%s2963_s5 + $0x8] sm:$0xff] }
0x10c9   :  { %2290 = vpow2.f32 %v2118_v1  ;;  %1139 = vmatpush.bf16.msra.mxu2 %v2166_v59  ;;  %1246 = vmatpush.bf16.msra.mxu3 %v2166_v59 }
0x10ca   :  { %v971_v54 = vpop.f32.mrf.mxu0  ;;  %1359 = vmatpush.bf16.msrb.mxu0 %v2166_v59 }
0x10cb   :  { %v2163_v54 = vld [vmem:[%s2962_s4] sm:$0xff] }
0x10cd   :  { %v2287_v48 = vpop.eup %2286 }
0x10ce   :  { %v2289_v0 = vpop.eup %2288  ;;  %1030 = vrot.lane.b32.xlu1 %v2287_v48, %s2457_s2  ;;  %v2165_v48 = vld [vmem:[%s2963_s5] sm:$0xff] }
0x10cf   :  { %1032 = vrot.lane.b32.xlu2 %v2289_v0, %s2457_s2  ;;  %v2291_v3 = vpop.eup %2290  ;;  %1140 = vmatpush.bf16.msra.mxu2 %v2165_v48 }
0x10d0   :  { %v987_v56 = vadd.f32 1.0, %v2291_v3  ;;  %1247 = vmatpush.bf16.msra.mxu3 %v2165_v48  ;;  %1360 = vmatpush.bf16.msrb.mxu0 %v2165_v48 }
0x10d2   :  { %2292 = vrcp.f32 %v987_v56  ;;  %v1014_v14 = vand.u32 2147483648, %v987_v56  ;;  %vm1008_vm2 = vweird.f32 %v987_v56  ;;  %v1012_v18 = vand.u32 2147483647, %v987_v56  ;;  %1141 = vmatmul.bf16.vlgmr.msra.gmra.mxu2 %v2456_v6 }
0x10d3   :  { %2294 = vpow2.f32 %v2117_v51  ;;  %1589 = vmatpush.bf16.msrb.mxu2 %v2166_v59 }
0x10d4   :  { %v1015_v19 = vor.u32 1.1754944e-38, %v1014_v14  ;;  %vm1013_vm4 = vcmp.eq.f32.partialorder %v1012_v18, 8.507059e+37  ;;  %1704 = vmatpush.bf16.msrb.mxu3 %v2166_v59  ;;  %1819 = vmatpush.bf16.msra.mxu0 %v2166_v59 }
0x10d7   :  { %1590 = vmatpush.bf16.msrb.mxu2 %v2165_v48 }
0x10d8   :  { %v2293_v8 = vpop.eup %2292  ;;  %1705 = vmatpush.bf16.msrb.mxu3 %v2165_v48  ;;  %1820 = vmatpush.bf16.msra.mxu0 %v2165_v48 }
0x10d9   :  { %v1004_v9 = vmul.f32 %v2293_v8, %v987_v56  ;;  %v2295_v12 = vpop.eup %2294  ;;  %vm1009_vm1 = vweird.f32 %v2293_v8 }
0x10da   :  { %v986_v13 = vadd.f32 1.0, %v2295_v12  ;;  %vm1010_vm3 = vmor %vm1008_vm2, %vm1009_vm1  ;;  %vm816_vm1 = vcmask 259077   ;;  %vm1068_vm2 = vcmask 261127  }
0x10db   :  { %v1005_v15 = vsub.f32 1.0, %v1004_v9 }
0x10dc   :  { %2296 = vrcp.f32 %v986_v13  ;;  %v999_v31 = vand.u32 2147483648, %v986_v13  ;;  %vm993_vm6 = vweird.f32 %v986_v13  ;;  %v997_v32 = vand.u32 2147483647, %v986_v13 }
0x10dd   :  { %v1006_v10 = vmul.f32 %v2293_v8, %v1005_v15 }
0x10de   :  { %v1000_v34 = vor.u32 1.1754944e-38, %v999_v31  ;;  %vm998_vm8 = vcmp.eq.f32.partialorder %v997_v32, 8.507059e+37 }
0x10df   :  { %v1007_v2 = vadd.f32 %v2293_v8, %v1006_v10 }
0x10e1   :  { %v1011_v61 = vsel %vm1010_vm3, %v2293_v8, %v1007_v2 }
0x10e2   :  { %v2724_v23 = vsel %vm1013_vm4, %v1015_v19, %v1011_v61  ;;  %v2297_v24 = vpop.eup %2296 }
0x10e3   :  { %v989_v4 = vmul.f32 %v2297_v24, %v986_v13  ;;  %vm994_vm5 = vweird.f32 %v2297_v24  ;;  %v2172_v13 = vld [vmem:[%s2964_s6] ss:$0 sm:$0xff] }
0x10e4   :  { %vm995_vm7 = vmor %vm993_vm6, %vm994_vm5 }
0x10e5   :  { %v990_v27 = vsub.f32 1.0, %v989_v4 }
0x10e7   :  { %v991_v28 = vmul.f32 %v2297_v24, %v990_v27 }
0x10e9   :  { %v992_v29 = vadd.f32 %v2297_v24, %v991_v28 }
0x10eb   :  { %v996_v33 = vsel %vm995_vm7, %v2297_v24, %v992_v29 }
0x10ec   :  { %v1001_v21 = vsel %vm998_vm8, %v1000_v34, %v996_v33 }
0x1129   :  { %v1033_v20 = vpop.permute.xlu2 %1032 }
0x112a   :  { %v1037_v11 = vmul.f32 %v1033_v20, %v2724_v23 }
0x112c   :  { %1042 = vrot.lane.b32.xlu1 %v1037_v11, %s2458_s3 }
0x1134   :  { %182 = vrot.lane.b32.xlu1 %v2551_v62, %s2458_s3  ;;  %v1023_v62 = vrot.slane %v2705_v35, 7 }
0x113c   :  { %309 = vrot.lane.b32.xlu1 %v2574_v57, %s2458_s3  ;;  %v1027_v57 = vmul.f32 %v1023_v62, %v2724_v23 }
0x1140   :  { %v1031_v36 = vpop.permute.xlu1 %1030 }
0x1141   :  { %v1036_v37 = vmul.f32 %v1031_v36, %v1001_v21 }
0x1143   :  { %1040 = vrot.lane.b32.xlu0 %v1036_v37, %s2458_s3 }
0x1144   :  { %558 = vrot.lane.b32.xlu1 %v2628_v5, %s2458_s3 }
0x114c   :  { %686 = vrot.lane.b32.xlu1 %v2657_v17, %s2458_s3  ;;  %v1022_v17 = vrot.slane %v2700_v30, 7 }
0x114e   :  { %v1026_v35 = vmul.f32 %v1022_v17, %v1001_v21 }
0x1154   :  { %936 = vrot.lane.b32.xlu1 %v2709_v38, %s2458_s3 }
0x1155   :  { %v1142_v6 = vpop.f32.mrf.mxu2 }
0x1156   :  { %v1147_v61 = vrot.slane %v1142_v6, 1 }
0x115d   :  { %v1144_v10 = vpop.f32.mrf.mxu2 }
0x119e   :  { %v1043_v40 = vpop.permute.xlu1 %1042 }
0x119f   :  { %v1047_v22 = vadd.f32 %v1043_v40, %v1027_v57 }
0x11a1   :  { %2298 = vtanh.f32 %v1047_v22 }
0x11a6   :  { %v183_v41 = vpop.permute.xlu1 %182 }
0x11a7   :  { %v2299_v42 = vpop.eup %2298  ;;  %189 = vst.msk [vmem:[#allocation2] sm:$0x1] %vm188_vm11, %v183_v41 }
0x11a8   :  { %1054 = vrot.lane.b32.xlu0 %v2299_v42, %s2457_s2 }
0x11ae   :  { %v310_v5 = vpop.permute.xlu1 %309 }
0x11af   :  { %315 = vst.msk [vmem:[#allocation2 + $0x8] sm:$0x2] %vm313_vm12, %v310_v5 }
0x11b0   :  { %307 = vrot.lane.b32.xlu0 %v2576_v60, %s2458_s3 }
0x11b5   :  { %v1041_v38 = vpop.permute.xlu0 %1040 }
0x11b6   :  { %v559_v43 = vpop.permute.xlu1 %558  ;;  %v1046_v44 = vadd.f32 %v1041_v38, %v1026_v35 }
0x11b7   :  { %565 = vst.msk [vmem:[#allocation2] sm:$0x8] %vm564_vm13, %v559_v43 }
0x11b8   :  { %2300 = vtanh.f32 %v1046_v44  ;;  %434 = vrot.lane.b32.xlu0 %v2603_v63, %s2458_s3 }
0x11be   :  { %v2301_v45 = vpop.eup %2300  ;;  %v687_v46 = vpop.permute.xlu1 %686 }
0x11bf   :  { %692 = vst.msk [vmem:[#allocation2 + $0x8] sm:$0x10] %vm690_vm14, %v687_v46  ;;  %1052 = vrot.lane.b32.xlu2 %v2301_v45, %s2457_s2 }
0x11c0   :  { %684 = vrot.lane.b32.xlu0 %v2655_v16, %s2458_s3 }
0x11c6   :  { %v937_v60 = vpop.permute.xlu1 %936 }
0x11c7   :  { %943 = vst.msk [vmem:[#allocation2] sm:$0x40] %vm942_vm15, %v937_v60  ;;  %184 = vrot.lane.b32.xlu2 %v2547_v58, %s2458_s3 }
0x11c8   :  { %812 = vrot.lane.b32.xlu0 %v2684_v26, %s2458_s3 }
0x11cf   :  { %432 = vrot.lane.b32.xlu2 %v2601_v55, %s2458_s3 }
0x11d7   :  { %560 = vrot.lane.b32.xlu2 %v2630_v7, %s2458_s3  ;;  %v2164_v7 = vld [vmem:[%s2962_s4 + $0x8] sm:$0xff] }
0x11d8   :  { %1113 = vmatpush.bf16.msra.mxu1 %v2164_v7 }
0x11dc   :  { %1114 = vmatpush.bf16.msra.mxu1 %v2163_v54 }
0x11df   :  { %810 = vrot.lane.b32.xlu2 %v2682_v25, %s2458_s3 }
0x11e0   :  { %1474 = vmatpush.bf16.msrb.mxu1 %v2166_v59 }
0x11e4   :  { %1475 = vmatpush.bf16.msrb.mxu1 %v2165_v48 }
0x11e7   :  { %938 = vrot.lane.b32.xlu2 %v2711_v39, %s2458_s3 }
0x1219   :  { %v1053_v63 = vpop.permute.xlu2 %1052 }
0x121a   :  { %v1055_v16 = vpop.permute.xlu0 %1054  ;;  %v1058_v30 = vmul.f32 %v1053_v63, %v1001_v21 }
0x121b   :  { %v1059_v58 = vmul.f32 %v1055_v16, %v2724_v23 }
0x121c   :  { %1062 = vrot.lane.b32.xlu0 %v1058_v30, %s2458_s3 }
0x121d   :  { %1064 = vrot.lane.b32.xlu1 %v1059_v58, %s2458_s3 }
0x1221   :  { %v185_v26 = vpop.permute.xlu2 %184 }
0x1222   :  { %v308_v55 = vpop.permute.xlu0 %307  ;;  %190 = vst.msk [vmem:[#allocation2 + $0x8] sm:$0x1] %vm188_vm11, %v185_v26 }
0x1223   :  { %314 = vst.msk [vmem:[#allocation2] sm:$0x2] %vm313_vm12, %v308_v55 }
0x1229   :  { %v433_v25 = vpop.permute.xlu2 %432 }
0x122a   :  { %v435_v39 = vpop.permute.xlu0 %434  ;;  %439 = vst.msk [vmem:[#allocation2] sm:$0x4] %vm438_vm0, %v433_v25 }
0x122b   :  { %440 = vst.msk [vmem:[#allocation2 + $0x8] sm:$0x4] %vm438_vm0, %v435_v39 }
0x1231   :  { %v561_v47 = vpop.permute.xlu2 %560 }
0x1232   :  { %v685_v49 = vpop.permute.xlu0 %684  ;;  %566 = vst.msk [vmem:[#allocation2 + $0x8] sm:$0x8] %vm564_vm13, %v561_v47 }
0x1233   :  { %691 = vst.msk [vmem:[#allocation2] sm:$0x10] %vm690_vm14, %v685_v49 }
0x1239   :  { %v811_v50 = vpop.permute.xlu2 %810 }
0x123a   :  { %v813_v52 = vpop.permute.xlu0 %812  ;;  %817 = vst.msk [vmem:[#allocation2] sm:$0x20] %vm816_vm1, %v811_v50 }
0x123b   :  { %818 = vst.msk [vmem:[#allocation2 + $0x8] sm:$0x20] %vm816_vm1, %v813_v52 }
0x1241   :  { %v939_v53 = vpop.permute.xlu2 %938 }
0x1242   :  { %944 = vst.msk [vmem:[#allocation2 + $0x8] sm:$0x40] %vm942_vm15, %v939_v53 }
0x128e   :  { %v1063_v0 = vpop.permute.xlu0 %1062 }
0x128f   :  { %v1065_v1 = vpop.permute.xlu1 %1064  ;;  %1069 = vst.msk [vmem:[#allocation2] sm:$0x80] %vm1068_vm2, %v1063_v0 }
0x1290   :  { %1070 = vst.msk [vmem:[#allocation2 + $0x8] sm:$0x80] %vm1068_vm2, %v1065_v1 }
0x1296   :  { %v1071_v3 = vld [vmem:[#allocation2] sm:$0xff] }
0x1297   :  { %v1072_v56 = vld [vmem:[#allocation2 + $0x8] sm:$0xff]  ;;  %v1073_v8 = vpack.c.bf16 %v1071_v3, %v1071_v3 }
0x1298   :  { %v1074_v51 = vpack.c.bf16 %v1072_v56, %v1072_v56 }
0x1299   :  { %v1089_v9 = vunpack.c.l.b16 %v1073_v8 }
0x129a   :  { %v1090_v15 = vunpack.c.l.b16 %v1074_v51 }
0x129c   :  { %v1091_v12 = vpack.c.b16 %v1090_v15, %v1089_v9 }
0x129e   :  { %2127 = vmatmul.msk.bf16.vlgmr.msra.gmra.mxu1 %vm83_vm10, %v1091_v12 }
0x129f   :  { %1934 = vmatpush.bf16.msra.mxu1 %v2166_v59 }
0x12a3   :  { %1935 = vmatpush.bf16.msra.mxu1 %v2165_v48 }
0x131b   :  { %v1116_v2 = vpop.f32.mrf.mxu1 }
0x131c   :  { %v2792_v14 = vadd.f32 %v2172_v13, %v1116_v2 }
0x131e   :  { %v1150_v18 = vadd.f32 %v1142_v6, %v2792_v14 }
0x1320   :  { %2302 = vtanh.f32 %v1150_v18  ;;  %v2136_v29 = vmul.f32 -1.442695, %v1150_v18 }
0x1323   :  { %v1118_v19 = vpop.f32.mrf.mxu1 }
0x1324   :  { %v2795_v20 = vadd.f32 %v2172_v13, %v1118_v19 }
0x1326   :  { %v2303_v23 = vpop.eup %2302  ;;  %v1151_v24 = vadd.f32 %v1147_v61, %v2795_v20 }
0x1327   :  { %1196 = vrot.lane.b32.xlu0 %v2303_v23, %s2457_s2 }
0x1328   :  { %2304 = vtanh.f32 %v1151_v24  ;;  %v2137_v4 = vmul.f32 -1.442695, %v1151_v24 }
0x132a   :  { %2306 = vpow2.f32 %v2137_v4 }
0x132e   :  { %v2305_v11 = vpop.eup %2304 }
0x132f   :  { %1198 = vrot.lane.b32.xlu2 %v2305_v11, %s2457_s2 }
0x1330   :  { %v2307_v27 = vpop.eup %2306 }
0x1331   :  { %v1159_v28 = vadd.f32 1.0, %v2307_v27 }
0x1333   :  { %2308 = vrcp.f32 %v1159_v28  ;;  %v1186_v57 = vand.u32 2147483648, %v1159_v28  ;;  %vm1180_vm4 = vweird.f32 %v1159_v28  ;;  %v1184_v40 = vand.u32 2147483647, %v1159_v28 }
0x1334   :  { %2310 = vpow2.f32 %v2136_v29 }
0x1335   :  { %v1187_v42 = vor.u32 1.1754944e-38, %v1186_v57  ;;  %vm1185_vm6 = vcmp.eq.f32.partialorder %v1184_v40, 8.507059e+37 }
0x1339   :  { %v2309_v31 = vpop.eup %2308 }
0x133a   :  { %v2311_v32 = vpop.eup %2310  ;;  %v1176_v33 = vmul.f32 %v2309_v31, %v1159_v28  ;;  %vm1181_vm3 = vweird.f32 %v2309_v31 }
0x133b   :  { %v1158_v34 = vadd.f32 1.0, %v2311_v32  ;;  %vm1182_vm5 = vmor %vm1180_vm4, %vm1181_vm3 }
0x133c   :  { %v1177_v36 = vsub.f32 1.0, %v1176_v33 }
0x133d   :  { %2312 = vrcp.f32 %v1158_v34  ;;  %v1171_v45 = vand.u32 2147483648, %v1158_v34  ;;  %vm1165_vm8 = vweird.f32 %v1158_v34  ;;  %v1169_v46 = vand.u32 2147483647, %v1158_v34 }
0x133e   :  { %v1178_v21 = vmul.f32 %v2309_v31, %v1177_v36 }
0x133f   :  { %v1172_v63 = vor.u32 1.1754944e-38, %v1171_v45  ;;  %vm1170_vm12 = vcmp.eq.f32.partialorder %v1169_v46, 8.507059e+37 }
0x1340   :  { %v1179_v37 = vadd.f32 %v2309_v31, %v1178_v21 }
0x1342   :  { %v1183_v22 = vsel %vm1182_vm5, %v2309_v31, %v1179_v37 }
0x1343   :  { %v2313_v62 = vpop.eup %2312  ;;  %v1188_v17 = vsel %vm1185_vm6, %v1187_v42, %v1183_v22 }
0x1344   :  { %v1161_v41 = vmul.f32 %v2313_v62, %v1158_v34  ;;  %vm1166_vm7 = vweird.f32 %v2313_v62  ;;  %v1193_v25 = vmul.f32 0.0, %v1188_v17 }
0x1345   :  { %vm1167_vm11 = vmor %vm1165_vm8, %vm1166_vm7 }
0x1346   :  { %v1162_v38 = vsub.f32 1.0, %v1161_v41 }
0x1348   :  { %v1163_v43 = vmul.f32 %v2313_v62, %v1162_v38 }
0x134a   :  { %v1164_v44 = vadd.f32 %v2313_v62, %v1163_v43 }
0x134c   :  { %v1168_v60 = vsel %vm1167_vm11, %v2313_v62, %v1164_v44 }
0x134d   :  { %v1173_v30 = vsel %vm1170_vm12, %v1172_v63, %v1168_v60 }
0x134e   :  { %v1192_v26 = vmul.f32 0.0, %v1173_v30 }
0x1389   :  { %v1199_v5 = vpop.permute.xlu2 %1198 }
0x138a   :  { %v1203_v35 = vmul.f32 %v1199_v5, %v1188_v17 }
0x138c   :  { %1208 = vrot.lane.b32.xlu1 %v1203_v35, %s2458_s3 }
0x1399   :  { %v1197_v16 = vpop.permute.xlu0 %1196 }
0x139a   :  { %v1202_v58 = vmul.f32 %v1197_v16, %v1173_v30 }
0x139c   :  { %1206 = vrot.lane.b32.xlu2 %v1202_v58, %s2458_s3 }
0x13f6   :  { %v1207_v55 = vpop.permute.xlu2 %1206 }
0x13f7   :  { %v2802_v7 = vadd.f32 %v1207_v55, %v1192_v26 }
0x13f9   :  { %2314 = vtanh.f32 %v2802_v7  ;;  %v1301_v60 = vrot.slane %v2802_v7, 7 }
0x13fe   :  { %v1209_v39 = vpop.permute.xlu1 %1208 }
0x13ff   :  { %v2315_v47 = vpop.eup %2314  ;;  %v2805_v49 = vadd.f32 %v1209_v39, %v1193_v25 }
0x1400   :  { %1218 = vrot.lane.b32.xlu1 %v2315_v47, %s2457_s2 }
0x1401   :  { %2316 = vtanh.f32 %v2805_v49  ;;  %v1302_v26 = vrot.slane %v2805_v49, 7 }
0x1407   :  { %v2317_v50 = vpop.eup %2316 }
0x1408   :  { %1220 = vrot.lane.b32.xlu0 %v2317_v50, %s2457_s2 }
0x1472   :  { %v1219_v52 = vpop.permute.xlu1 %1218 }
0x1473   :  { %v1224_v53 = vmul.f32 %v1219_v52, %v1173_v30 }
0x1475   :  { %v1226_v48 = vpack.c.bf16 %v1224_v53, %v1224_v53 }
0x1477   :  { %v1230_v3 = vunpack.c.l.b16 %v1226_v48 }
0x147a   :  { %v1221_v59 = vpop.permute.xlu0 %1220 }
0x147b   :  { %v1225_v54 = vmul.f32 %v1221_v59, %v1188_v17 }
0x147d   :  { %v1227_v0 = vpack.c.bf16 %v1225_v54, %v1225_v54 }
0x147f   :  { %v1231_v1 = vunpack.c.l.b16 %v1227_v0 }
0x1481   :  { %v1232_v56 = vrot.slane %v1231_v1, 7 }
0x1483   :  { %v1233_v8 = vsel %vm198_vm9, %v1232_v56, %v1230_v3 }
0x1484   :  { %v1234_v51 = vpack.c.b16 %v1233_v8, %v1233_v8 }
0x1486   :  { %1235 = vrot.lane.b32.xlu2 %v1234_v51, %s2458_s3 }
0x14e0   :  { %v1236_v9 = vpop.permute.xlu2 %1235 }
0x14e1   :  { %2138 = vmatmul.msk.bf16.vlgmr.msra.gmra.mxu3 %vm83_vm10, %v1236_v9 }
0x1564   :  { %v1249_v15 = vpop.f32.mrf.mxu3 }
0x1565   :  { %v1254_v12 = vrot.slane %v1249_v15, 7  ;;  %v1258_v6 = vadd.f32 %v1249_v15, %v2795_v20 }
0x1567   :  { %v1257_v10 = vadd.f32 %v1254_v12, %v2792_v14  ;;  %2318 = vtanh.f32 %v1258_v6  ;;  %v2140_v61 = vmul.f32 -1.442695, %v1258_v6 }
0x1569   :  { %2320 = vtanh.f32 %v1257_v10  ;;  %v2139_v19 = vmul.f32 -1.442695, %v1257_v10 }
0x156a   :  { %2322 = vpow2.f32 %v2140_v61 }
0x156b   :  { %2324 = vpow2.f32 %v2139_v19 }
0x156c   :  { %v1251_v13 = vpop.f32.mrf.mxu3 }
0x156d   :  { %v2319_v2 = vpop.eup %2318 }
0x156e   :  { %1311 = vrot.lane.b32.xlu1 %v2319_v2, %s2457_s2 }
0x156f   :  { %v2321_v18 = vpop.eup %2320 }
0x1570   :  { %1309 = vrot.lane.b32.xlu0 %v2321_v18, %s2457_s2  ;;  %v2323_v23 = vpop.eup %2322 }
0x1571   :  { %v2325_v24 = vpop.eup %2324  ;;  %v1266_v11 = vadd.f32 1.0, %v2323_v23 }
0x1572   :  { %v1265_v4 = vadd.f32 1.0, %v2325_v24 }
0x1573   :  { %2326 = vrcp.f32 %v1266_v11  ;;  %v1293_v37 = vand.u32 2147483648, %v1266_v11  ;;  %vm1287_vm14 = vweird.f32 %v1266_v11  ;;  %v1291_v62 = vand.u32 2147483647, %v1266_v11 }
0x1574   :  { %2328 = vrcp.f32 %v1265_v4  ;;  %v1278_v22 = vand.u32 2147483648, %v1265_v4  ;;  %vm1272_vm1 = vweird.f32 %v1265_v4  ;;  %v1276_v42 = vand.u32 2147483647, %v1265_v4 }
0x1575   :  { %v1294_v41 = vor.u32 1.1754944e-38, %v1293_v37  ;;  %vm1292_vm2 = vcmp.eq.f32.partialorder %v1291_v62, 8.507059e+37 }
0x1576   :  { %v1279_v43 = vor.u32 1.1754944e-38, %v1278_v22  ;;  %vm1277_vm4 = vcmp.eq.f32.partialorder %v1276_v42, 8.507059e+37 }
0x1579   :  { %v2327_v27 = vpop.eup %2326 }
0x157a   :  { %v2329_v28 = vpop.eup %2328  ;;  %v1283_v29 = vmul.f32 %v2327_v27, %v1266_v11  ;;  %vm1288_vm13 = vweird.f32 %v2327_v27 }
0x157b   :  { %v1268_v31 = vmul.f32 %v2329_v28, %v1265_v4  ;;  %vm1289_vm15 = vmor %vm1287_vm14, %vm1288_vm13  ;;  %vm1273_vm0 = vweird.f32 %v2329_v28 }
0x157c   :  { %v1284_v32 = vsub.f32 1.0, %v1283_v29  ;;  %vm1274_vm3 = vmor %vm1272_vm1, %vm1273_vm0 }
0x157d   :  { %v1269_v33 = vsub.f32 1.0, %v1268_v31 }
0x157e   :  { %v1285_v34 = vmul.f32 %v2327_v27, %v1284_v32 }
0x157f   :  { %v1270_v36 = vmul.f32 %v2329_v28, %v1269_v33 }
0x1580   :  { %v1286_v21 = vadd.f32 %v2327_v27, %v1285_v34 }
0x1581   :  { %v1271_v57 = vadd.f32 %v2329_v28, %v1270_v36 }
0x1582   :  { %v1290_v40 = vsel %vm1289_vm15, %v2327_v27, %v1286_v21 }
0x1583   :  { %v1295_v17 = vsel %vm1292_vm2, %v1294_v41, %v1290_v40  ;;  %v1275_v35 = vsel %vm1274_vm3, %v2329_v28, %v1271_v57 }
0x1584   :  { %v1280_v45 = vsel %vm1277_vm4, %v1279_v43, %v1275_v35  ;;  %v1306_v55 = vmul.f32 %v1302_v26, %v1295_v17 }
0x1585   :  { %v1305_v63 = vmul.f32 %v1301_v60, %v1280_v45 }
0x15e0   :  { %v1312_v5 = vpop.permute.xlu1 %1311 }
0x15e1   :  { %v1316_v38 = vmul.f32 %v1312_v5, %v1295_v17 }
0x15e2   :  { %v1310_v44 = vpop.permute.xlu0 %1309 }
0x15e3   :  { %1321 = vrot.lane.b32.xlu0 %v1316_v38, %s2458_s3  ;;  %v1315_v46 = vmul.f32 %v1310_v44, %v1280_v45 }
0x15e5   :  { %1319 = vrot.lane.b32.xlu2 %v1315_v46, %s2458_s3 }
0x163f   :  { %v1320_v16 = vpop.permute.xlu2 %1319 }
0x1640   :  { %v2820_v30 = vadd.f32 %v1320_v16, %v1305_v63 }
0x1642   :  { %2330 = vtanh.f32 %v2820_v30 }
0x1648   :  { %v2331_v58 = vpop.eup %2330 }
0x1649   :  { %1331 = vrot.lane.b32.xlu1 %v2331_v58, %s2457_s2  ;;  %v1415_v58 = vrot.slane %v2820_v30, 7 }
0x1655   :  { %v1322_v25 = vpop.permute.xlu0 %1321 }
0x1656   :  { %v2825_v39 = vadd.f32 %v1322_v25, %v1306_v55 }
0x1658   :  { %2332 = vtanh.f32 %v2825_v39 }
0x165e   :  { %v2333_v47 = vpop.eup %2332 }
0x165f   :  { %1333 = vrot.lane.b32.xlu2 %v2333_v47, %s2457_s2 }
0x16b9   :  { %v1334_v7 = vpop.permute.xlu2 %1333 }
0x16ba   :  { %v1338_v50 = vmul.f32 %v1334_v7, %v1295_v17 }
0x16bb   :  { %v1332_v52 = vpop.permute.xlu1 %1331 }
0x16bc   :  { %v1337_v53 = vmul.f32 %v1332_v52, %v1280_v45  ;;  %v1340_v59 = vpack.c.bf16 %v1338_v50, %v1338_v50  ;;  %v1416_v45 = vrot.slane %v2825_v39, 7 }
0x16be   :  { %v1339_v54 = vpack.c.bf16 %v1337_v53, %v1337_v53  ;;  %v1344_v0 = vunpack.c.l.b16 %v1340_v59 }
0x16c0   :  { %v1343_v48 = vunpack.c.l.b16 %v1339_v54 }
0x16c2   :  { %v1345_v1 = vrot.slane %v1343_v48, 1 }
0x16c4   :  { %v1346_v49 = vsel %vm198_vm9, %v1344_v0, %v1345_v1 }
0x16c5   :  { %v1347_v3 = vpack.c.b16 %v1346_v49, %v1346_v49 }
0x16c7   :  { %1348 = vrot.lane.b32.xlu0 %v1347_v3, %s2458_s3 }
0x1739   :  { %v1349_v56 = vpop.permute.xlu0 %1348 }
0x173a   :  { %2141 = vmatmul.msk.bf16.vlgmr.msrb.gmra.mxu0 %vm83_vm10, %v1349_v56 }
0x17b7   :  { %v1362_v8 = vpop.f32.mrf.mxu0 }
0x17b8   :  { %v1367_v51 = vrot.slane %v1362_v8, 6  ;;  %v1368_v9 = vrot.slane %v1362_v8, 7 }
0x17ba   :  { %v1371_v15 = vadd.f32 %v1367_v51, %v2792_v14  ;;  %v1372_v12 = vadd.f32 %v1368_v9, %v2795_v20 }
0x17bc   :  { %2334 = vtanh.f32 %v1371_v15  ;;  %v2143_v2 = vmul.f32 -1.442695, %v1372_v12  ;;  %v2142_v23 = vmul.f32 -1.442695, %v1371_v15 }
0x17bd   :  { %2336 = vtanh.f32 %v1372_v12 }
0x17be   :  { %2338 = vpow2.f32 %v2143_v2 }
0x17bf   :  { %v1364_v6 = vpop.f32.mrf.mxu0 }
0x17c2   :  { %v2335_v10 = vpop.eup %2334 }
0x17c3   :  { %v2337_v13 = vpop.eup %2336  ;;  %1423 = vrot.lane.b32.xlu1 %v2335_v10, %s2457_s2 }
0x17c4   :  { %1425 = vrot.lane.b32.xlu2 %v2337_v13, %s2457_s2  ;;  %v2339_v18 = vpop.eup %2338 }
0x17c5   :  { %v1380_v61 = vadd.f32 1.0, %v2339_v18 }
0x17c7   :  { %2340 = vrcp.f32 %v1380_v61  ;;  %v1407_v31 = vand.u32 2147483648, %v1380_v61  ;;  %vm1401_vm6 = vweird.f32 %v1380_v61  ;;  %v1405_v32 = vand.u32 2147483647, %v1380_v61 }
0x17c8   :  { %2342 = vpow2.f32 %v2142_v23 }
0x17c9   :  { %v1408_v34 = vor.u32 1.1754944e-38, %v1407_v31  ;;  %vm1406_vm8 = vcmp.eq.f32.partialorder %v1405_v32, 8.507059e+37 }
0x17cd   :  { %v2341_v19 = vpop.eup %2340 }
0x17ce   :  { %v1397_v24 = vmul.f32 %v2341_v19, %v1380_v61  ;;  %v2343_v4 = vpop.eup %2342  ;;  %vm1402_vm5 = vweird.f32 %v2341_v19 }
0x17cf   :  { %v1379_v28 = vadd.f32 1.0, %v2343_v4  ;;  %vm1403_vm7 = vmor %vm1401_vm6, %vm1402_vm5 }
0x17d0   :  { %v1398_v11 = vsub.f32 1.0, %v1397_v24 }
0x17d1   :  { %2344 = vrcp.f32 %v1379_v28  ;;  %v1392_v42 = vand.u32 2147483648, %v1379_v28  ;;  %vm1386_vm12 = vweird.f32 %v1379_v28  ;;  %v1390_v5 = vand.u32 2147483647, %v1379_v28 }
0x17d2   :  { %v1399_v27 = vmul.f32 %v2341_v19, %v1398_v11 }
0x17d3   :  { %v1393_v35 = vor.u32 1.1754944e-38, %v1392_v42  ;;  %vm1391_vm14 = vcmp.eq.f32.partialorder %v1390_v5, 8.507059e+37 }
0x17d4   :  { %v1400_v29 = vadd.f32 %v2341_v19, %v1399_v27 }
0x17d6   :  { %v1404_v33 = vsel %vm1403_vm7, %v2341_v19, %v1400_v29 }
0x17d7   :  { %v1409_v21 = vsel %vm1406_vm8, %v1408_v34, %v1404_v33  ;;  %v2345_v37 = vpop.eup %2344 }
0x17d8   :  { %v1382_v57 = vmul.f32 %v2345_v37, %v1379_v28  ;;  %vm1387_vm11 = vweird.f32 %v2345_v37  ;;  %v1420_v46 = vmul.f32 %v1416_v45, %v1409_v21 }
0x17d9   :  { %vm1388_vm13 = vmor %vm1386_vm12, %vm1387_vm11 }
0x17da   :  { %v1383_v40 = vsub.f32 1.0, %v1382_v57 }
0x17dc   :  { %v1384_v22 = vmul.f32 %v2345_v37, %v1383_v40 }
0x17de   :  { %v1385_v41 = vadd.f32 %v2345_v37, %v1384_v22 }
0x17e0   :  { %v1389_v17 = vsel %vm1388_vm13, %v2345_v37, %v1385_v41 }
0x17e1   :  { %v1394_v43 = vsel %vm1391_vm14, %v1393_v35, %v1389_v17 }
0x17e2   :  { %v1419_v26 = vmul.f32 %v1415_v58, %v1394_v43 }
0x181e   :  { %v1426_v36 = vpop.permute.xlu2 %1425 }
0x181f   :  { %v1430_v62 = vmul.f32 %v1426_v36, %v1409_v21 }
0x1821   :  { %1435 = vrot.lane.b32.xlu1 %v1430_v62, %s2458_s3 }
0x1835   :  { %v1424_v38 = vpop.permute.xlu1 %1423 }
0x1836   :  { %v1429_v44 = vmul.f32 %v1424_v38, %v1394_v43 }
0x1838   :  { %1433 = vrot.lane.b32.xlu0 %v1429_v44, %s2458_s3 }
0x1893   :  { %v1436_v60 = vpop.permute.xlu1 %1435 }
0x1894   :  { %v2839_v63 = vadd.f32 %v1436_v60, %v1420_v46 }
0x1896   :  { %2346 = vtanh.f32 %v2839_v63  ;;  %v1531_v45 = vrot.slane %v2839_v63, 7 }
0x189c   :  { %v2347_v16 = vpop.eup %2346 }
0x189d   :  { %1447 = vrot.lane.b32.xlu0 %v2347_v16, %s2457_s2 }
0x18aa   :  { %v1434_v55 = vpop.permute.xlu0 %1433 }
0x18ab   :  { %v2844_v25 = vadd.f32 %v1434_v55, %v1419_v26 }
0x18ad   :  { %2348 = vtanh.f32 %v2844_v25  ;;  %v1530_v44 = vrot.slane %v2844_v25, 7 }
0x18b3   :  { %v2349_v47 = vpop.eup %2348 }
0x18b4   :  { %1445 = vrot.lane.b32.xlu2 %v2349_v47, %s2457_s2 }
0x190e   :  { %v1446_v39 = vpop.permute.xlu2 %1445 }
0x190f   :  { %v1448_v7 = vpop.permute.xlu0 %1447  ;;  %v1451_v50 = vmul.f32 %v1446_v39, %v1394_v43 }
0x1910   :  { %v1452_v52 = vmul.f32 %v1448_v7, %v1409_v21 }
0x1911   :  { %v1453_v53 = vpack.c.bf16 %v1451_v50, %v1451_v50 }
0x1912   :  { %v1454_v59 = vpack.c.bf16 %v1452_v52, %v1452_v52 }
0x1913   :  { %v1457_v54 = vunpack.c.l.b16 %v1453_v53 }
0x1914   :  { %v1458_v48 = vunpack.c.l.b16 %v1454_v59 }
0x1915   :  { %v1459_v0 = vrot.slane %v1457_v54, 2 }
0x1916   :  { %v1460_v1 = vrot.slane %v1458_v48, 1 }
0x1918   :  { %v1461_v30 = vsel %vm198_vm9, %v1460_v1, %v1459_v0 }
0x1919   :  { %v1462_v49 = vpack.c.b16 %v1461_v30, %v1461_v30 }
0x191b   :  { %1463 = vrot.lane.b32.xlu1 %v1462_v49, %s2458_s3 }
0x198d   :  { %v1464_v3 = vpop.permute.xlu1 %1463 }
0x198e   :  { %2144 = vmatmul.msk.bf16.vlgmr.msrb.gmra.mxu1 %vm83_vm10, %v1464_v3 }
0x1a0b   :  { %v1477_v56 = vpop.f32.mrf.mxu1 }
0x1a0c   :  { %v1482_v8 = vrot.slane %v1477_v56, 5  ;;  %v1483_v51 = vrot.slane %v1477_v56, 6 }
0x1a0e   :  { %v1486_v9 = vadd.f32 %v1482_v8, %v2792_v14  ;;  %v1487_v15 = vadd.f32 %v1483_v51, %v2795_v20 }
0x1a10   :  { %2350 = vtanh.f32 %v1486_v9  ;;  %v2145_v13 = vmul.f32 -1.442695, %v1486_v9  ;;  %v2146_v19 = vmul.f32 -1.442695, %v1487_v15 }
0x1a11   :  { %2352 = vtanh.f32 %v1487_v15 }
0x1a12   :  { %2354 = vpow2.f32 %v2145_v13 }
0x1a13   :  { %v1479_v12 = vpop.f32.mrf.mxu1 }
0x1a16   :  { %v2351_v6 = vpop.eup %2350 }
0x1a17   :  { %v2353_v10 = vpop.eup %2352  ;;  %1538 = vrot.lane.b32.xlu2 %v2351_v6, %s2457_s2 }
0x1a18   :  { %1540 = vrot.lane.b32.xlu0 %v2353_v10, %s2457_s2  ;;  %v2355_v2 = vpop.eup %2354 }
0x1a19   :  { %v1494_v18 = vadd.f32 1.0, %v2355_v2 }
0x1a1b   :  { %2356 = vrcp.f32 %v1494_v18  ;;  %v1507_v29 = vand.u32 2147483648, %v1494_v18  ;;  %vm1501_vm0 = vweird.f32 %v1494_v18  ;;  %v1505_v31 = vand.u32 2147483647, %v1494_v18 }
0x1a1c   :  { %2358 = vpow2.f32 %v2146_v19 }
0x1a1d   :  { %v1508_v33 = vor.u32 1.1754944e-38, %v1507_v29  ;;  %vm1506_vm2 = vcmp.eq.f32.partialorder %v1505_v31, 8.507059e+37 }
0x1a21   :  { %v2357_v61 = vpop.eup %2356 }
0x1a22   :  { %v1497_v23 = vmul.f32 %v2357_v61, %v1494_v18  ;;  %v2359_v4 = vpop.eup %2358  ;;  %vm1502_vm15 = vweird.f32 %v2357_v61 }
0x1a23   :  { %v1495_v27 = vadd.f32 1.0, %v2359_v4  ;;  %vm1503_vm1 = vmor %vm1501_vm0, %vm1502_vm15 }
0x1a24   :  { %v1498_v24 = vsub.f32 1.0, %v1497_v23 }
0x1a25   :  { %2360 = vrcp.f32 %v1495_v27  ;;  %v1522_v41 = vand.u32 2147483648, %v1495_v27  ;;  %vm1516_vm4 = vweird.f32 %v1495_v27  ;;  %v1520_v42 = vand.u32 2147483647, %v1495_v27 }
0x1a26   :  { %v1499_v11 = vmul.f32 %v2357_v61, %v1498_v24 }
0x1a27   :  { %v1523_v17 = vor.u32 1.1754944e-38, %v1522_v41  ;;  %vm1521_vm6 = vcmp.eq.f32.partialorder %v1520_v42, 8.507059e+37 }
0x1a28   :  { %v1500_v28 = vadd.f32 %v2357_v61, %v1499_v11 }
0x1a2a   :  { %v1504_v32 = vsel %vm1503_vm1, %v2357_v61, %v1500_v28 }
0x1a2b   :  { %v1509_v36 = vsel %vm1506_vm2, %v1508_v33, %v1504_v32  ;;  %v2361_v37 = vpop.eup %2360 }
0x1a2c   :  { %v1512_v62 = vmul.f32 %v2361_v37, %v1495_v27  ;;  %vm1517_vm3 = vweird.f32 %v2361_v37  ;;  %v1534_v46 = vmul.f32 %v1530_v44, %v1509_v36 }
0x1a2d   :  { %vm1518_vm5 = vmor %vm1516_vm4, %vm1517_vm3 }
0x1a2e   :  { %v1513_v57 = vsub.f32 1.0, %v1512_v62 }
0x1a30   :  { %v1514_v40 = vmul.f32 %v2361_v37, %v1513_v57 }
0x1a32   :  { %v1515_v22 = vadd.f32 %v2361_v37, %v1514_v40 }
0x1a34   :  { %v1519_v5 = vsel %vm1518_vm5, %v2361_v37, %v1515_v22 }
0x1a35   :  { %v1524_v38 = vsel %vm1521_vm6, %v1523_v17, %v1519_v5 }
0x1a36   :  { %v1535_v60 = vmul.f32 %v1531_v45, %v1524_v38 }
0x1a71   :  { %v1539_v34 = vpop.permute.xlu2 %1538 }
0x1a72   :  { %v1544_v21 = vmul.f32 %v1539_v34, %v1509_v36 }
0x1a74   :  { %1548 = vrot.lane.b32.xlu1 %v1544_v21, %s2458_s3 }
0x1a8a   :  { %v1541_v35 = vpop.permute.xlu0 %1540 }
0x1a8b   :  { %v1545_v43 = vmul.f32 %v1541_v35, %v1524_v38 }
0x1a8d   :  { %1550 = vrot.lane.b32.xlu2 %v1545_v43, %s2458_s3 }
0x1ae6   :  { %v1549_v16 = vpop.permute.xlu1 %1548 }
0x1ae7   :  { %v1551_v58 = vpop.permute.xlu2 %1550  ;;  %v2859_v26 = vadd.f32 %v1549_v16, %v1534_v46 }
0x1ae8   :  { %v2861_v55 = vadd.f32 %v1551_v58, %v1535_v60 }
0x1ae9   :  { %2362 = vtanh.f32 %v2859_v26  ;;  %v1645_v43 = vrot.slane %v2859_v26, 7 }
0x1aea   :  { %2364 = vtanh.f32 %v2861_v55  ;;  %v1646_v16 = vrot.slane %v2861_v55, 7 }
0x1aef   :  { %v2363_v47 = vpop.eup %2362 }
0x1af0   :  { %v2365_v39 = vpop.eup %2364  ;;  %1560 = vrot.lane.b32.xlu0 %v2363_v47, %s2457_s2 }
0x1af1   :  { %1562 = vrot.lane.b32.xlu1 %v2365_v39, %s2457_s2 }
0x1b62   :  { %v1561_v25 = vpop.permute.xlu0 %1560 }
0x1b63   :  { %v1563_v63 = vpop.permute.xlu1 %1562  ;;  %v1566_v7 = vmul.f32 %v1561_v25, %v1509_v36 }
0x1b64   :  { %v1567_v50 = vmul.f32 %v1563_v63, %v1524_v38 }
0x1b65   :  { %v1568_v52 = vpack.c.bf16 %v1566_v7, %v1566_v7 }
0x1b66   :  { %v1569_v53 = vpack.c.bf16 %v1567_v50, %v1567_v50 }
0x1b67   :  { %v1572_v59 = vunpack.c.l.b16 %v1568_v52 }
0x1b68   :  { %v1573_v54 = vunpack.c.l.b16 %v1569_v53 }
0x1b69   :  { %v1574_v48 = vrot.slane %v1572_v59, 3 }
0x1b6a   :  { %v1575_v0 = vrot.slane %v1573_v54, 2 }
0x1b6c   :  { %v1576_v1 = vsel %vm198_vm9, %v1575_v0, %v1574_v48 }
0x1b6d   :  { %v1577_v30 = vpack.c.b16 %v1576_v1, %v1576_v1 }
0x1b6f   :  { %1578 = vrot.lane.b32.xlu2 %v1577_v30, %s2458_s3 }
0x1bc9   :  { %v1579_v49 = vpop.permute.xlu2 %1578 }
0x1bca   :  { %2147 = vmatmul.msk.bf16.vlgmr.msrb.gmra.mxu2 %vm83_vm10, %v1579_v49 }
0x1c4d   :  { %v1592_v3 = vpop.f32.mrf.mxu2 }
0x1c4e   :  { %v1597_v56 = vrot.slane %v1592_v3, 4  ;;  %v1598_v8 = vrot.slane %v1592_v3, 5 }
0x1c50   :  { %v1601_v51 = vadd.f32 %v1597_v56, %v2792_v14  ;;  %v1602_v9 = vadd.f32 %v1598_v8, %v2795_v20 }
0x1c52   :  { %2366 = vtanh.f32 %v1601_v51  ;;  %v2148_v10 = vmul.f32 -1.442695, %v1601_v51  ;;  %v2149_v13 = vmul.f32 -1.442695, %v1602_v9 }
0x1c53   :  { %2368 = vtanh.f32 %v1602_v9 }
0x1c54   :  { %2370 = vpow2.f32 %v2148_v10 }
0x1c55   :  { %v1594_v15 = vpop.f32.mrf.mxu2  ;;  %2372 = vpow2.f32 %v2149_v13 }
0x1c58   :  { %v2367_v12 = vpop.eup %2366 }
0x1c59   :  { %v2369_v6 = vpop.eup %2368  ;;  %1653 = vrot.lane.b32.xlu0 %v2367_v12, %s2457_s2 }
0x1c5a   :  { %1655 = vrot.lane.b32.xlu1 %v2369_v6, %s2457_s2  ;;  %v2371_v2 = vpop.eup %2370 }
0x1c5b   :  { %v2373_v18 = vpop.eup %2372  ;;  %v1609_v61 = vadd.f32 1.0, %v2371_v2 }
0x1c5c   :  { %v1610_v19 = vadd.f32 1.0, %v2373_v18 }
0x1c5d   :  { %2374 = vrcp.f32 %v1609_v61  ;;  %v1622_v34 = vand.u32 2147483648, %v1609_v61  ;;  %vm1616_vm11 = vweird.f32 %v1609_v61  ;;  %v1620_v21 = vand.u32 2147483647, %v1609_v61 }
0x1c5e   :  { %2376 = vrcp.f32 %v1610_v19  ;;  %v1637_v36 = vand.u32 2147483648, %v1610_v19  ;;  %vm1631_vm12 = vweird.f32 %v1610_v19  ;;  %v1635_v37 = vand.u32 2147483647, %v1610_v19 }
0x1c5f   :  { %v1623_v40 = vor.u32 1.1754944e-38, %v1622_v34  ;;  %vm1621_vm15 = vcmp.eq.f32.partialorder %v1620_v21, 8.507059e+37 }
0x1c60   :  { %v1638_v22 = vor.u32 1.1754944e-38, %v1637_v36  ;;  %vm1636_vm0 = vcmp.eq.f32.partialorder %v1635_v37, 8.507059e+37 }
0x1c63   :  { %v2375_v23 = vpop.eup %2374 }
0x1c64   :  { %v2377_v24 = vpop.eup %2376  ;;  %v1612_v11 = vmul.f32 %v2375_v23, %v1609_v61  ;;  %vm1617_vm7 = vweird.f32 %v2375_v23 }
0x1c65   :  { %v1627_v4 = vmul.f32 %v2377_v24, %v1610_v19  ;;  %vm1632_vm8 = vweird.f32 %v2377_v24  ;;  %vm1618_vm13 = vmor %vm1616_vm11, %vm1617_vm7 }
0x1c66   :  { %v1613_v27 = vsub.f32 1.0, %v1612_v11  ;;  %vm1633_vm14 = vmor %vm1631_vm12, %vm1632_vm8 }
0x1c67   :  { %v1628_v28 = vsub.f32 1.0, %v1627_v4 }
0x1c68   :  { %v1614_v29 = vmul.f32 %v2375_v23, %v1613_v27 }
0x1c69   :  { %v1629_v31 = vmul.f32 %v2377_v24, %v1628_v28 }
0x1c6a   :  { %v1615_v32 = vadd.f32 %v2375_v23, %v1614_v29 }
0x1c6b   :  { %v1630_v33 = vadd.f32 %v2377_v24, %v1629_v31 }
0x1c6c   :  { %v1619_v62 = vsel %vm1618_vm13, %v2375_v23, %v1615_v32 }
0x1c6d   :  { %v1634_v57 = vsel %vm1633_vm14, %v2377_v24, %v1630_v33  ;;  %v1624_v42 = vsel %vm1621_vm15, %v1623_v40, %v1619_v62 }
0x1c6e   :  { %v1639_v17 = vsel %vm1636_vm0, %v1638_v22, %v1634_v57  ;;  %v1649_v44 = vmul.f32 %v1645_v43, %v1624_v42 }
0x1c6f   :  { %v1650_v58 = vmul.f32 %v1646_v16, %v1639_v17 }
0x1ccb   :  { %v1654_v41 = vpop.permute.xlu0 %1653 }
0x1ccc   :  { %v1656_v5 = vpop.permute.xlu1 %1655  ;;  %v1659_v35 = vmul.f32 %v1654_v41, %v1624_v42 }
0x1ccd   :  { %v1660_v38 = vmul.f32 %v1656_v5, %v1639_v17 }
0x1cce   :  { %1663 = vrot.lane.b32.xlu2 %v1659_v35, %s2458_s3 }
0x1ccf   :  { %1665 = vrot.lane.b32.xlu0 %v1660_v38, %s2458_s3 }
0x1d28   :  { %v1664_v45 = vpop.permute.xlu2 %1663 }
0x1d29   :  { %v2877_v46 = vadd.f32 %v1664_v45, %v1649_v44 }
0x1d2b   :  { %2378 = vtanh.f32 %v2877_v46  ;;  %v1760_v16 = vrot.slane %v2877_v46, 7 }
0x1d31   :  { %v2379_v60 = vpop.eup %2378 }
0x1d32   :  { %1675 = vrot.lane.b32.xlu1 %v2379_v60, %s2457_s2 }
0x1d41   :  { %v1666_v47 = vpop.permute.xlu0 %1665 }
0x1d42   :  { %v2882_v39 = vadd.f32 %v1666_v47, %v1650_v58 }
0x1d44   :  { %2380 = vtanh.f32 %v2882_v39  ;;  %v1761_v38 = vrot.slane %v2882_v39, 7 }
0x1d4a   :  { %v2381_v25 = vpop.eup %2380 }
0x1d4b   :  { %1677 = vrot.lane.b32.xlu2 %v2381_v25, %s2457_s2 }
0x1da4   :  { %v1676_v26 = vpop.permute.xlu1 %1675 }
0x1da5   :  { %v1678_v63 = vpop.permute.xlu2 %1677  ;;  %v1681_v7 = vmul.f32 %v1676_v26, %v1624_v42 }
0x1da6   :  { %v1682_v50 = vmul.f32 %v1678_v63, %v1639_v17 }
0x1da7   :  { %v1683_v52 = vpack.c.bf16 %v1681_v7, %v1681_v7 }
0x1da8   :  { %v1684_v53 = vpack.c.bf16 %v1682_v50, %v1682_v50 }
0x1da9   :  { %v1687_v59 = vunpack.c.l.b16 %v1683_v52 }
0x1daa   :  { %v1688_v54 = vunpack.c.l.b16 %v1684_v53 }
0x1dab   :  { %v1689_v48 = vrot.slane %v1687_v59, 4 }
0x1dac   :  { %v1690_v0 = vrot.slane %v1688_v54, 3 }
0x1dae   :  { %v1691_v55 = vsel %vm198_vm9, %v1690_v0, %v1689_v48 }
0x1daf   :  { %v1692_v1 = vpack.c.b16 %v1691_v55, %v1691_v55 }
0x1db1   :  { %1693 = vrot.lane.b32.xlu0 %v1692_v1, %s2458_s3 }
0x1e23   :  { %v1694_v30 = vpop.permute.xlu0 %1693 }
0x1e24   :  { %2150 = vmatmul.msk.bf16.vlgmr.msrb.gmra.mxu3 %vm83_vm10, %v1694_v30 }
0x1ea7   :  { %v1707_v49 = vpop.f32.mrf.mxu3 }
0x1ea8   :  { %v1712_v3 = vrot.slane %v1707_v49, 3  ;;  %v1713_v56 = vrot.slane %v1707_v49, 4 }
0x1eaa   :  { %v1716_v8 = vadd.f32 %v1712_v3, %v2792_v14  ;;  %v1717_v51 = vadd.f32 %v1713_v56, %v2795_v20 }
0x1eac   :  { %2382 = vtanh.f32 %v1716_v8  ;;  %v2152_v6 = vmul.f32 -1.442695, %v1717_v51  ;;  %v2151_v18 = vmul.f32 -1.442695, %v1716_v8 }
0x1ead   :  { %2384 = vtanh.f32 %v1717_v51 }
0x1eae   :  { %2386 = vpow2.f32 %v2152_v6 }
0x1eaf   :  { %v1709_v9 = vpop.f32.mrf.mxu3 }
0x1eb2   :  { %v2383_v15 = vpop.eup %2382 }
0x1eb3   :  { %v2385_v12 = vpop.eup %2384  ;;  %1768 = vrot.lane.b32.xlu1 %v2383_v15, %s2457_s2 }
0x1eb4   :  { %1770 = vrot.lane.b32.xlu2 %v2385_v12, %s2457_s2  ;;  %v2387_v10 = vpop.eup %2386 }
0x1eb5   :  { %v1725_v13 = vadd.f32 1.0, %v2387_v10 }
0x1eb7   :  { %2388 = vrcp.f32 %v1725_v13  ;;  %v1752_v27 = vand.u32 2147483648, %v1725_v13  ;;  %vm1746_vm2 = vweird.f32 %v1725_v13  ;;  %v1750_v28 = vand.u32 2147483647, %v1725_v13 }
0x1eb8   :  { %2390 = vpow2.f32 %v2151_v18 }
0x1eb9   :  { %v1753_v31 = vor.u32 1.1754944e-38, %v1752_v27  ;;  %vm1751_vm4 = vcmp.eq.f32.partialorder %v1750_v28, 8.507059e+37 }
0x1ebd   :  { %v2389_v2 = vpop.eup %2388 }
0x1ebe   :  { %v1742_v61 = vmul.f32 %v2389_v2, %v1725_v13  ;;  %v2391_v23 = vpop.eup %2390  ;;  %vm1747_vm1 = vweird.f32 %v2389_v2 }
0x1ebf   :  { %v1724_v11 = vadd.f32 1.0, %v2391_v23  ;;  %vm1748_vm3 = vmor %vm1746_vm2, %vm1747_vm1 }
0x1ec0   :  { %v1743_v19 = vsub.f32 1.0, %v1742_v61 }
0x1ec1   :  { %2392 = vrcp.f32 %v1724_v11  ;;  %v1737_v40 = vand.u32 2147483648, %v1724_v11  ;;  %vm1731_vm6 = vweird.f32 %v1724_v11  ;;  %v1735_v22 = vand.u32 2147483647, %v1724_v11 }
0x1ec2   :  { %v1744_v24 = vmul.f32 %v2389_v2, %v1743_v19 }
0x1ec3   :  { %v1738_v42 = vor.u32 1.1754944e-38, %v1737_v40  ;;  %vm1736_vm8 = vcmp.eq.f32.partialorder %v1735_v22, 8.507059e+37 }
0x1ec4   :  { %v1745_v4 = vadd.f32 %v2389_v2, %v1744_v24 }
0x1ec6   :  { %v1749_v29 = vsel %vm1748_vm3, %v2389_v2, %v1745_v4 }
0x1ec7   :  { %v1754_v33 = vsel %vm1751_vm4, %v1753_v31, %v1749_v29  ;;  %v2393_v34 = vpop.eup %2392 }
0x1ec8   :  { %v1727_v21 = vmul.f32 %v2393_v34, %v1724_v11  ;;  %vm1732_vm5 = vweird.f32 %v2393_v34  ;;  %v1765_v43 = vmul.f32 %v1761_v38, %v1754_v33 }
0x1ec9   :  { %vm1733_vm7 = vmor %vm1731_vm6, %vm1732_vm5 }
0x1eca   :  { %v1728_v37 = vsub.f32 1.0, %v1727_v21 }
0x1ecc   :  { %v1729_v62 = vmul.f32 %v2393_v34, %v1728_v37 }
0x1ece   :  { %v1730_v57 = vadd.f32 %v2393_v34, %v1729_v62 }
0x1ed0   :  { %v1734_v41 = vsel %vm1733_vm7, %v2393_v34, %v1730_v57 }
0x1ed1   :  { %v1739_v17 = vsel %vm1736_vm8, %v1738_v42, %v1734_v41 }
0x1ed2   :  { %v1764_v58 = vmul.f32 %v1760_v16, %v1739_v17 }
0x1f0e   :  { %v1771_v32 = vpop.permute.xlu2 %1770 }
0x1f0f   :  { %v1775_v36 = vmul.f32 %v1771_v32, %v1754_v33 }
0x1f11   :  { %1780 = vrot.lane.b32.xlu1 %v1775_v36, %s2458_s3 }
0x1f25   :  { %v1769_v5 = vpop.permute.xlu1 %1768 }
0x1f26   :  { %v1774_v35 = vmul.f32 %v1769_v5, %v1739_v17 }
0x1f28   :  { %1778 = vrot.lane.b32.xlu0 %v1774_v35, %s2458_s3 }
0x1f83   :  { %v1781_v44 = vpop.permute.xlu1 %1780 }
0x1f84   :  { %v2896_v45 = vadd.f32 %v1781_v44, %v1765_v43 }
0x1f86   :  { %2394 = vtanh.f32 %v2896_v45  ;;  %v1876_v38 = vrot.slane %v2896_v45, 7 }
0x1f8c   :  { %v2395_v60 = vpop.eup %2394 }
0x1f8d   :  { %1792 = vrot.lane.b32.xlu0 %v2395_v60, %s2457_s2 }
0x1f9a   :  { %v1779_v47 = vpop.permute.xlu0 %1778 }
0x1f9b   :  { %v2901_v25 = vadd.f32 %v1779_v47, %v1764_v58 }
0x1f9d   :  { %2396 = vtanh.f32 %v2901_v25  ;;  %v1875_v35 = vrot.slane %v2901_v25, 7 }
0x1fa3   :  { %v2397_v26 = vpop.eup %2396 }
0x1fa4   :  { %1790 = vrot.lane.b32.xlu2 %v2397_v26, %s2457_s2 }
0x1ffe   :  { %v1791_v39 = vpop.permute.xlu2 %1790 }
0x1fff   :  { %v1793_v63 = vpop.permute.xlu0 %1792  ;;  %v1796_v7 = vmul.f32 %v1791_v39, %v1739_v17 }
0x2000   :  { %v1797_v50 = vmul.f32 %v1793_v63, %v1754_v33 }
0x2001   :  { %v1798_v52 = vpack.c.bf16 %v1796_v7, %v1796_v7 }
0x2002   :  { %v1799_v53 = vpack.c.bf16 %v1797_v50, %v1797_v50 }
0x2003   :  { %v1802_v59 = vunpack.c.l.b16 %v1798_v52 }
0x2004   :  { %v1803_v54 = vunpack.c.l.b16 %v1799_v53 }
0x2005   :  { %v1804_v48 = vrot.slane %v1802_v59, 5 }
0x2006   :  { %v1805_v0 = vrot.slane %v1803_v54, 4 }
0x2008   :  { %v1806_v46 = vsel %vm198_vm9, %v1805_v0, %v1804_v48 }
0x2009   :  { %v1807_v55 = vpack.c.b16 %v1806_v46, %v1806_v46 }
0x200b   :  { %1808 = vrot.lane.b32.xlu1 %v1807_v55, %s2458_s3 }
0x207d   :  { %v1809_v1 = vpop.permute.xlu1 %1808 }
0x207e   :  { %2153 = vmatmul.msk.bf16.vlgmr.msra.gmra.mxu0 %vm83_vm10, %v1809_v1 }
0x20fb   :  { %v1822_v30 = vpop.f32.mrf.mxu0 }
0x20fc   :  { %v1827_v49 = vrot.slane %v1822_v30, 2  ;;  %v1828_v3 = vrot.slane %v1822_v30, 3 }
0x20fe   :  { %v1831_v56 = vadd.f32 %v1827_v49, %v2792_v14  ;;  %v1832_v8 = vadd.f32 %v1828_v3, %v2795_v20 }
0x2100   :  { %2398 = vtanh.f32 %v1831_v56  ;;  %v2154_v12 = vmul.f32 -1.442695, %v1831_v56  ;;  %v2155_v2 = vmul.f32 -1.442695, %v1832_v8 }
0x2101   :  { %2400 = vtanh.f32 %v1832_v8 }
0x2102   :  { %2402 = vpow2.f32 %v2154_v12 }
0x2103   :  { %v1824_v51 = vpop.f32.mrf.mxu0 }
0x2106   :  { %v2399_v9 = vpop.eup %2398 }
0x2107   :  { %v2401_v15 = vpop.eup %2400  ;;  %1883 = vrot.lane.b32.xlu2 %v2399_v9, %s2457_s2 }
0x2108   :  { %1885 = vrot.lane.b32.xlu0 %v2401_v15, %s2457_s2  ;;  %v2403_v6 = vpop.eup %2402 }
0x2109   :  { %v1839_v10 = vadd.f32 1.0, %v2403_v6 }
0x210b   :  { %2404 = vrcp.f32 %v1839_v10  ;;  %v1852_v4 = vand.u32 2147483648, %v1839_v10  ;;  %vm1846_vm12 = vweird.f32 %v1839_v10  ;;  %v1850_v27 = vand.u32 2147483647, %v1839_v10 }
0x210c   :  { %2406 = vpow2.f32 %v2155_v2 }
0x210d   :  { %v1853_v29 = vor.u32 1.1754944e-38, %v1852_v4  ;;  %vm1851_vm14 = vcmp.eq.f32.partialorder %v1850_v27, 8.507059e+37 }
0x2111   :  { %v2405_v13 = vpop.eup %2404 }
0x2112   :  { %v1842_v18 = vmul.f32 %v2405_v13, %v1839_v10  ;;  %v2407_v23 = vpop.eup %2406  ;;  %vm1847_vm11 = vweird.f32 %v2405_v13 }
0x2113   :  { %v1840_v24 = vadd.f32 1.0, %v2407_v23  ;;  %vm1848_vm13 = vmor %vm1846_vm12, %vm1847_vm11 }
0x2114   :  { %v1843_v61 = vsub.f32 1.0, %v1842_v18 }
0x2115   :  { %2408 = vrcp.f32 %v1840_v24  ;;  %v1867_v57 = vand.u32 2147483648, %v1840_v24  ;;  %vm1861_vm0 = vweird.f32 %v1840_v24  ;;  %v1865_v40 = vand.u32 2147483647, %v1840_v24 }
0x2116   :  { %v1844_v19 = vmul.f32 %v2405_v13, %v1843_v61 }
0x2117   :  { %v1868_v41 = vor.u32 1.1754944e-38, %v1867_v57  ;;  %vm1866_vm2 = vcmp.eq.f32.partialorder %v1865_v40, 8.507059e+37 }
0x2118   :  { %v1845_v11 = vadd.f32 %v2405_v13, %v1844_v19 }
0x211a   :  { %v1849_v28 = vsel %vm1848_vm13, %v2405_v13, %v1845_v11  ;;  %vm2065_vm13 = vcmask 9216  }
0x211b   :  { %v1854_v32 = vsel %vm1851_vm14, %v1853_v29, %v1849_v28  ;;  %v2409_v34 = vpop.eup %2408 }
0x211c   :  { %v1857_v36 = vmul.f32 %v2409_v34, %v1840_v24  ;;  %vm1862_vm15 = vweird.f32 %v2409_v34  ;;  %v1879_v43 = vmul.f32 %v1875_v35, %v1854_v32 }
0x211d   :  { %vm1863_vm1 = vmor %vm1861_vm0, %vm1862_vm15 }
0x211e   :  { %v1858_v21 = vsub.f32 1.0, %v1857_v36 }
0x2120   :  { %v1859_v37 = vmul.f32 %v2409_v34, %v1858_v21 }
0x2122   :  { %v1860_v62 = vadd.f32 %v2409_v34, %v1859_v37 }
0x2124   :  { %v1864_v22 = vsel %vm1863_vm1, %v2409_v34, %v1860_v62 }
0x2125   :  { %v1869_v5 = vsel %vm1866_vm2, %v1868_v41, %v1864_v22 }
0x2126   :  { %v1880_v44 = vmul.f32 %v1876_v38, %v1869_v5 }
0x2161   :  { %v1884_v31 = vpop.permute.xlu2 %1883 }
0x2162   :  { %v1889_v33 = vmul.f32 %v1884_v31, %v1854_v32 }
0x2164   :  { %1893 = vrot.lane.b32.xlu1 %v1889_v33, %s2458_s3 }
0x217a   :  { %v1886_v42 = vpop.permute.xlu0 %1885 }
0x217b   :  { %v1890_v17 = vmul.f32 %v1886_v42, %v1869_v5 }
0x217d   :  { %1895 = vrot.lane.b32.xlu2 %v1890_v17, %s2458_s3 }
0x21d6   :  { %v1894_v60 = vpop.permute.xlu1 %1893 }
0x21d7   :  { %v1896_v16 = vpop.permute.xlu2 %1895  ;;  %v2916_v58 = vadd.f32 %v1894_v60, %v1879_v43 }
0x21d8   :  { %v2918_v47 = vadd.f32 %v1896_v16, %v1880_v44 }
0x21d9   :  { %2410 = vtanh.f32 %v2916_v58  ;;  %v1990_v42 = vrot.slane %v2916_v58, 7  ;;  %v2031_v58 = vld [vmem:[%s2965_s7 + $0x18] sm:$0xff] }
0x21da   :  { %2412 = vtanh.f32 %v2918_v47  ;;  %v1991_v43 = vrot.slane %v2918_v47, 7  ;;  %2057 = vmatpush.msra.mxu2 %v2031_v58  ;;  %v2029_v47 = vld [vmem:[%s2965_s7 + $0x8] sm:$0xff] }
0x21df   :  { %v2411_v26 = vpop.eup %2410 }
0x21e0   :  { %v2413_v39 = vpop.eup %2412  ;;  %1905 = vrot.lane.b32.xlu0 %v2411_v26, %s2457_s2 }
0x21e1   :  { %1907 = vrot.lane.b32.xlu1 %v2413_v39, %s2457_s2  ;;  %v2030_v39 = vld [vmem:[%s2965_s7 + $0x10] sm:$0xff] }
0x21e2   :  { %2058 = vmatpush.msra.mxu2 %v2030_v39 }
0x21e4   :  { %2059 = vmatpush.msra.mxu2 %v2029_v47 }
0x2252   :  { %v1906_v25 = vpop.permute.xlu0 %1905 }
0x2253   :  { %v1908_v45 = vpop.permute.xlu1 %1907  ;;  %v1911_v63 = vmul.f32 %v1906_v25, %v1854_v32  ;;  %v2028_v25 = vld [vmem:[%s2965_s7] sm:$0xff]  ;;  %s2459_s7 = smov [#allocation3]  }
0x2254   :  { %v1912_v7 = vmul.f32 %v1908_v45, %v1869_v5  ;;  %2060 = vmatpush.msra.mxu2 %v2028_v25  ;;  %s2072_s15 = sshll.u32 %s2459_s7, 4  ;;  %s2073_s15 = int_to_ptr.vmem [resolvable:$true] %s2072_s15 }
0x2255   :  { %v1913_v50 = vpack.c.bf16 %v1911_v63, %v1911_v63 }
0x2256   :  { %v1914_v52 = vpack.c.bf16 %v1912_v7, %v1912_v7 }
0x2257   :  { %v1917_v53 = vunpack.c.l.b16 %v1913_v50 }
0x2258   :  { %v1918_v59 = vunpack.c.l.b16 %v1914_v52 }
0x2259   :  { %v1919_v54 = vrot.slane %v1917_v53, 6 }
0x225a   :  { %v1920_v48 = vrot.slane %v1918_v59, 5 }
0x225c   :  { %v1921_v0 = vsel %vm198_vm9, %v1920_v48, %v1919_v54  ;;  %v2173_v48 = vld [vmem:[%s2966_s8] ss:$0 sm:$0xff] }
0x225d   :  { %v1922_v46 = vpack.c.b16 %v1921_v0, %v1921_v0 }
0x225f   :  { %1923 = vrot.lane.b32.xlu2 %v1922_v46, %s2458_s3 }
0x22b9   :  { %v1924_v55 = vpop.permute.xlu2 %1923 }
0x22ba   :  { %2156 = vmatmul.msk.bf16.vlgmr.msra.gmra.mxu1 %vm83_vm10, %v1924_v55 }
0x2337   :  { %v1937_v1 = vpop.f32.mrf.mxu1 }
0x2338   :  { %v1942_v30 = vrot.slane %v1937_v1, 1  ;;  %v1943_v49 = vrot.slane %v1937_v1, 2 }
0x233a   :  { %v1946_v3 = vadd.f32 %v1942_v30, %v2792_v14  ;;  %v1947_v56 = vadd.f32 %v1943_v49, %v2795_v20 }
0x233c   :  { %2414 = vtanh.f32 %v1946_v3  ;;  %v2157_v15 = vmul.f32 -1.442695, %v1946_v3  ;;  %v2158_v12 = vmul.f32 -1.442695, %v1947_v56 }
0x233d   :  { %2416 = vtanh.f32 %v1947_v56 }
0x233e   :  { %2418 = vpow2.f32 %v2157_v15 }
0x233f   :  { %v1939_v8 = vpop.f32.mrf.mxu1  ;;  %2420 = vpow2.f32 %v2158_v12 }
0x2342   :  { %v2415_v51 = vpop.eup %2414 }
0x2343   :  { %v2417_v9 = vpop.eup %2416  ;;  %1998 = vrot.lane.b32.xlu0 %v2415_v51, %s2457_s2 }
0x2344   :  { %2000 = vrot.lane.b32.xlu1 %v2417_v9, %s2457_s2  ;;  %v2419_v6 = vpop.eup %2418 }
0x2345   :  { %v2421_v10 = vpop.eup %2420  ;;  %v1954_v13 = vadd.f32 1.0, %v2419_v6 }
0x2346   :  { %v1955_v2 = vadd.f32 1.0, %v2421_v10 }
0x2347   :  { %2422 = vrcp.f32 %v1954_v13  ;;  %v1967_v28 = vand.u32 2147483648, %v1954_v13  ;;  %vm1961_vm5 = vweird.f32 %v1954_v13  ;;  %v1965_v31 = vand.u32 2147483647, %v1954_v13 }
0x2348   :  { %2424 = vrcp.f32 %v1955_v2  ;;  %v1982_v29 = vand.u32 2147483648, %v1955_v2  ;;  %vm1976_vm6 = vweird.f32 %v1955_v2  ;;  %v1980_v32 = vand.u32 2147483647, %v1955_v2 }
0x2349   :  { %v1968_v36 = vor.u32 1.1754944e-38, %v1967_v28  ;;  %vm1966_vm11 = vcmp.eq.f32.partialorder %v1965_v31, 8.507059e+37 }
0x234a   :  { %v1983_v21 = vor.u32 1.1754944e-38, %v1982_v29  ;;  %vm1981_vm12 = vcmp.eq.f32.partialorder %v1980_v32, 8.507059e+37 }
0x234d   :  { %v2423_v14 = vpop.eup %2422 }
0x234e   :  { %v2425_v20 = vpop.eup %2424  ;;  %v1957_v18 = vmul.f32 %v2423_v14, %v1954_v13  ;;  %vm1962_vm3 = vweird.f32 %v2423_v14 }
0x234f   :  { %v1972_v61 = vmul.f32 %v2425_v20, %v1955_v2  ;;  %vm1977_vm4 = vweird.f32 %v2425_v20  ;;  %vm1963_vm7 = vmor %vm1961_vm5, %vm1962_vm3 }
0x2350   :  { %v1958_v19 = vsub.f32 1.0, %v1957_v18  ;;  %vm1978_vm8 = vmor %vm1976_vm6, %vm1977_vm4 }
0x2351   :  { %v1973_v23 = vsub.f32 1.0, %v1972_v61 }
0x2352   :  { %v1959_v24 = vmul.f32 %v2423_v14, %v1958_v19 }
0x2353   :  { %v1974_v11 = vmul.f32 %v2425_v20, %v1973_v23 }
0x2354   :  { %v1960_v4 = vadd.f32 %v2423_v14, %v1959_v24 }
0x2355   :  { %v1975_v27 = vadd.f32 %v2425_v20, %v1974_v11 }
0x2356   :  { %v1964_v33 = vsel %vm1963_vm7, %v2423_v14, %v1960_v4 }
0x2357   :  { %v1979_v34 = vsel %vm1978_vm8, %v2425_v20, %v1975_v27  ;;  %v1969_v62 = vsel %vm1966_vm11, %v1968_v36, %v1964_v33 }
0x2358   :  { %v1984_v40 = vsel %vm1981_vm12, %v1983_v21, %v1979_v34  ;;  %v1994_v5 = vmul.f32 %v1990_v42, %v1969_v62 }
0x2359   :  { %v1995_v44 = vmul.f32 %v1991_v43, %v1984_v40 }
0x23b5   :  { %v1999_v37 = vpop.permute.xlu0 %1998 }
0x23b6   :  { %v2001_v57 = vpop.permute.xlu1 %2000  ;;  %v2004_v22 = vmul.f32 %v1999_v37, %v1969_v62 }
0x23b7   :  { %v2005_v41 = vmul.f32 %v2001_v57, %v1984_v40 }
0x23b8   :  { %2008 = vrot.lane.b32.xlu2 %v2004_v22, %s2458_s3 }
0x23b9   :  { %2010 = vrot.lane.b32.xlu0 %v2005_v41, %s2458_s3 }
0x2412   :  { %v2009_v17 = vpop.permute.xlu2 %2008 }
0x2413   :  { %v2014_v35 = vadd.f32 %v2009_v17, %v1994_v5 }
0x2415   :  { %2426 = vtanh.f32 %v2014_v35 }
0x241b   :  { %v2427_v38 = vpop.eup %2426 }
0x241c   :  { %2020 = vrot.lane.b32.xlu1 %v2427_v38, %s2457_s2 }
0x242b   :  { %v2011_v60 = vpop.permute.xlu0 %2010 }
0x242c   :  { %v2015_v16 = vadd.f32 %v2011_v60, %v1995_v44 }
0x242e   :  { %2428 = vtanh.f32 %v2015_v16 }
0x2434   :  { %v2429_v26 = vpop.eup %2428 }
0x2435   :  { %2022 = vrot.lane.b32.xlu2 %v2429_v26, %s2457_s2 }
0x248e   :  { %v2021_v45 = vpop.permute.xlu1 %2020 }
0x248f   :  { %v2023_v63 = vpop.permute.xlu2 %2022  ;;  %v2026_v7 = vmul.f32 %v2021_v45, %v1969_v62 }
0x2490   :  { %v2027_v50 = vmul.f32 %v2023_v63, %v1984_v40 }
0x2491   :  { %v2038_v52 = vrot.slane %v2026_v7, 7 }
0x2492   :  { %v2039_v53 = vrot.slane %v2027_v50, 6 }
0x2494   :  { %v2040_v59 = vsel %vm198_vm9, %v2039_v53, %v2038_v52 }
0x2495   :  { %2041 = vrot.lane.b32.xlu0 %v2040_v59, %s2458_s3 }
0x2507   :  { %v2042_v54 = vpop.permute.xlu0 %2041 }
0x2508   :  { %2159 = vmatmul.msk.f32.vlgmr.msra.gmra.mxu2 %vm83_vm10, %v2042_v54 }
0x258b   :  { %v2062_v0 = vpop.f32.mrf.mxu2 }
0x258c   :  { %v2063_v46 = vadd.f32 %v2173_v48, %v2062_v0 }
0x258e   :  { %2066 = vst.msk [vmem:[#allocation3] sm:$0x3] %vm2065_vm13, %v2063_v46 }
0x258f   :  { %2077 = dma.vmem_to_hbm [thread:$0]  %s2073_s15, 32, %s2075_s18, [#allocation4]  }
0x2590   :  { %2454 = dma.done.wait [#allocation4], 32  }
0x2591   :  { %2455 = vsyncadd [#allocation4], 4294967264 }
0x2592   :  { %2082 = vsyncpa [#allocation4], 1 }

</bundles_post_ra>
